<compile_context>
chip_gen: v7x
topology: tpu7x:2x2x1
jax: 0.10.0
libtpu: 0.0.40
codegen_flags: <defaults>
</compile_context>

<pallas_src>
import functools
import math

import jax
import jax.numpy as jnp
from jax.experimental import pallas as pl
from jax.experimental.pallas import tpu as pltpu


# ----------------------------------------------------------------------------
# In-kernel helpers (pure jnp, operate on loaded values)
# ----------------------------------------------------------------------------
def _layernorm(x, g, b, eps=1e-5):
    m = jnp.mean(x, axis=-1, keepdims=True)
    v = jnp.mean(jnp.square(x - m), axis=-1, keepdims=True)
    return (x - m) * jax.lax.rsqrt(v + eps) * g + b


def _dense(x, w, b, act=None):
    """x (S,K) f32, w (K,N) bf16, b (1,N) f32 -> (S,N) f32 (MXU bf16, f32 acc)."""
    y = jnp.dot(x.astype(jnp.bfloat16), w,
                preferred_element_type=jnp.float32) + b
    if act == "relu":
        y = jnp.maximum(y, 0.0)
    return y


def _mha(q, k, v, mask, n_heads, scale):
    """Multi-head attention; q (Sq,D), k/v (Sk,D) f32; mask (Sq,Sk) additive or None."""
    d_model = q.shape[-1]
    hd = d_model // n_heads
    qb = q.astype(jnp.bfloat16)
    kb = k.astype(jnp.bfloat16)
    vb = v.astype(jnp.bfloat16)
    heads = []
    for h in range(n_heads):
        lo, hi = h * hd, (h + 1) * hd
        # Contract last axes of q and k directly (no explicit transpose).
        s = jax.lax.dot_general(
            qb[:, lo:hi], kb[:, lo:hi],
            dimension_numbers=(((1,), (1,)), ((), ())),
            preferred_element_type=jnp.float32) * scale
        if mask is not None:
            s = s + mask
        s = s - jnp.max(s, axis=-1, keepdims=True)
        p = jnp.exp(s)
        denom = jnp.sum(p, axis=-1, keepdims=True)
        p = p * pl.reciprocal(denom, approx=True)
        heads.append(jnp.dot(p.astype(jnp.bfloat16), vb[:, lo:hi],
                             preferred_element_type=jnp.float32))
    return jnp.concatenate(heads, axis=-1)


def _preprocess(x_raw, proj_w, proj_b, pe, g, b, d_model):
    """proj(x) * sqrt(d_model) + pe, then LayerNorm."""
    y = _dense(x_raw, proj_w, proj_b)
    y = y * math.sqrt(d_model) + pe
    return _layernorm(y, g, b)


# ----------------------------------------------------------------------------
# Kernel bodies
# ----------------------------------------------------------------------------
def _encoder_stack_kernel(src_raw_ref, proj_w_ref, proj_b_ref, pe_ref,
                          ppg_ref, ppb_ref,
                          w_qkv_ref, b_qkv_ref, w_o_ref, b_o_ref,
                          n1g_ref, n1b_ref, ff_w1_ref, ff_b1_ref,
                          ff_w2_ref, ff_b2_ref, n2g_ref, n2b_ref,
                          fng_ref, fnb_ref, out_ref, carry_ref, *,
                          n_heads, d_model):
    layer = pl.program_id(1)
    n_layers = pl.num_programs(1)

    @pl.when(layer == 0)                                      # fused preprocess
    def _():
        carry_ref[...] = _preprocess(src_raw_ref[0], proj_w_ref[...],
                                     proj_b_ref[...], pe_ref[...],
                                     ppg_ref[...], ppb_ref[...], d_model)

    x = carry_ref[...]                                        # (S, D) f32
    scale = 1.0 / math.sqrt(d_model // n_heads)

    # --- self-attention (fused QKV projection) ---
    qkv = _dense(x, w_qkv_ref[0], b_qkv_ref[0])
    q, k, v = (qkv[:, :d_model], qkv[:, d_model:2 * d_model],
               qkv[:, 2 * d_model:])
    a = _mha(q, k, v, None, n_heads, scale)
    a = _dense(a, w_o_ref[0], b_o_ref[0])
    x = _layernorm(x + a, n1g_ref[0], n1b_ref[0])             # residual + LN1

    # --- feed-forward (fused linear -> relu -> linear) ---
    h = _dense(x, ff_w1_ref[0], ff_b1_ref[0], act="relu")
    f = _dense(h, ff_w2_ref[0], ff_b2_ref[0])
    y = _layernorm(x + f, n2g_ref[0], n2b_ref[0])             # residual + LN2

    carry_ref[...] = y

    @pl.when(layer == n_layers - 1)                           # encoder final norm
    def _():
        out_ref[0] = _layernorm(y, fng_ref[...], fnb_ref[...]).astype(out_ref.dtype)


def _decoder_stack_kernel(tgt_raw_ref, mem_ref, mask_ref,
                          proj_w_ref, proj_b_ref, pe_ref, ppg_ref, ppb_ref,
                          sa_wqkv_ref, sa_bqkv_ref, sa_wo_ref, sa_bo_ref,
                          n1g_ref, n1b_ref,
                          ca_wq_ref, ca_bq_ref, ca_wkv_ref, ca_bkv_ref,
                          ca_wo_ref, ca_bo_ref, n2g_ref, n2b_ref,
                          ff_w1_ref, ff_b1_ref, ff_w2_ref, ff_b2_ref,
                          n3g_ref, n3b_ref, fng_ref, fnb_ref,
                          out_w_ref, out_b_ref,
                          out_ref, carry_ref, *, n_heads, d_model):
    layer = pl.program_id(1)
    n_layers = pl.num_programs(1)

    @pl.when(layer == 0)                                      # fused preprocess
    def _():
        carry_ref[...] = _preprocess(tgt_raw_ref[0], proj_w_ref[...],
                                     proj_b_ref[...], pe_ref[...],
                                     ppg_ref[...], ppb_ref[...], d_model)

    x = carry_ref[...]                                        # (St, D) f32
    mem = mem_ref[0]                                          # (Ss, D) f32
    scale = 1.0 / math.sqrt(d_model // n_heads)

    # --- masked self-attention (fused QKV projection) ---
    qkv = _dense(x, sa_wqkv_ref[0], sa_bqkv_ref[0])
    q, k, v = (qkv[:, :d_model], qkv[:, d_model:2 * d_model],
               qkv[:, 2 * d_model:])
    a = _mha(q, k, v, mask_ref[...], n_heads, scale)
    a = _dense(a, sa_wo_ref[0], sa_bo_ref[0])
    x = _layernorm(x + a, n1g_ref[0], n1b_ref[0])

    # --- cross-attention (fused KV projection of memory) ---
    q = _dense(x, ca_wq_ref[0], ca_bq_ref[0])
    kv = _dense(mem, ca_wkv_ref[0], ca_bkv_ref[0])
    k, v = kv[:, :d_model], kv[:, d_model:]
    a = _mha(q, k, v, None, n_heads, scale)
    a = _dense(a, ca_wo_ref[0], ca_bo_ref[0])
    x = _layernorm(x + a, n2g_ref[0], n2b_ref[0])

    # --- feed-forward ---
    h = _dense(x, ff_w1_ref[0], ff_b1_ref[0], act="relu")
    f = _dense(h, ff_w2_ref[0], ff_b2_ref[0])
    y = _layernorm(x + f, n3g_ref[0], n3b_ref[0])

    carry_ref[...] = y

    @pl.when(layer == n_layers - 1)   # decoder final norm + output projection
    def _():
        z = _layernorm(y, fng_ref[...], fnb_ref[...])
        out_ref[0] = _dense(z, out_w_ref[...], out_b_ref[...]).astype(out_ref.dtype)


# ----------------------------------------------------------------------------
# pallas_call wrappers
# ----------------------------------------------------------------------------
def pallas_encoder_stack(src_raw, params, n_heads, d_model):
    enc = params["enc"]
    B, S, F = src_raw.shape
    D = d_model
    L = enc["w_qkv"].shape[0]
    FF = enc["ff_w1"].shape[-1]
    pe = params["pe"][:S]                                     # (S, D)
    batch3 = lambda b, l: (b, 0, 0)
    layer3 = lambda b, l: (l, 0, 0)
    const2 = lambda b, l: (0, 0)
    return pl.pallas_call(
        functools.partial(_encoder_stack_kernel, n_heads=n_heads, d_model=D),
        out_shape=jax.ShapeDtypeStruct((B, S, D), jnp.float32),
        grid=(B, L),
        in_specs=[
            pl.BlockSpec((1, S, F), batch3),                  # raw source
            pl.BlockSpec((F, D), const2),                     # proj_w
            pl.BlockSpec((1, D), const2),                     # proj_b
            pl.BlockSpec((S, D), const2),                     # positional enc
            pl.BlockSpec((1, D), const2),                     # preprocess norm g
            pl.BlockSpec((1, D), const2),                     # preprocess norm b
            pl.BlockSpec((1, D, 3 * D), layer3),              # w_qkv
            pl.BlockSpec((1, 1, 3 * D), layer3),              # b_qkv
            pl.BlockSpec((1, D, D), layer3),                  # w_o
            pl.BlockSpec((1, 1, D), layer3),                  # b_o
            pl.BlockSpec((1, 1, D), layer3),                  # n1_g
            pl.BlockSpec((1, 1, D), layer3),                  # n1_b
            pl.BlockSpec((1, D, FF), layer3),                 # ff_w1
            pl.BlockSpec((1, 1, FF), layer3),                 # ff_b1
            pl.BlockSpec((1, FF, D), layer3),                 # ff_w2
            pl.BlockSpec((1, 1, D), layer3),                  # ff_b2
            pl.BlockSpec((1, 1, D), layer3),                  # n2_g
            pl.BlockSpec((1, 1, D), layer3),                  # n2_b
            pl.BlockSpec((1, D), const2),                     # enc final norm g
            pl.BlockSpec((1, D), const2),                     # enc final norm b
        ],
        out_specs=pl.BlockSpec((1, S, D), batch3),
        scratch_shapes=[pltpu.VMEM((S, D), jnp.float32)],
        compiler_params=pltpu.CompilerParams(
            dimension_semantics=("parallel", "arbitrary")),
    )(src_raw, params["proj_w"], params["proj_b"], pe,
      params["pp_norm_g"], params["pp_norm_b"],
      enc["w_qkv"], enc["b_qkv"], enc["w_o"], enc["b_o"],
      enc["n1_g"], enc["n1_b"], enc["ff_w1"], enc["ff_b1"],
      enc["ff_w2"], enc["ff_b2"], enc["n2_g"], enc["n2_b"],
      params["enc_norm_g"], params["enc_norm_b"])


def pallas_decoder_stack(tgt_raw, mem, params, n_heads, d_model, n_features):
    dec = params["dec"]
    B, St, Fin = tgt_raw.shape
    Ss = mem.shape[1]
    D = d_model
    L = dec["sa_wqkv"].shape[0]
    FF = dec["ff_w1"].shape[-1]
    F = n_features
    pe = params["pe"][:St]                                    # (St, D)
    batch3 = lambda b, l: (b, 0, 0)
    layer3 = lambda b, l: (l, 0, 0)
    const2 = lambda b, l: (0, 0)
    return pl.pallas_call(
        functools.partial(_decoder_stack_kernel, n_heads=n_heads, d_model=D),
        out_shape=jax.ShapeDtypeStruct((B, St, F), jnp.float32),
        grid=(B, L),
        in_specs=[
            pl.BlockSpec((1, St, Fin), batch3),               # raw shifted target
            pl.BlockSpec((1, Ss, D), batch3),                 # memory
            pl.BlockSpec((St, St), const2),                   # causal mask
            pl.BlockSpec((Fin, D), const2),                   # proj_w
            pl.BlockSpec((1, D), const2),                     # proj_b
            pl.BlockSpec((St, D), const2),                    # positional enc
            pl.BlockSpec((1, D), const2),                     # preprocess norm g
            pl.BlockSpec((1, D), const2),                     # preprocess norm b
            pl.BlockSpec((1, D, 3 * D), layer3),              # sa_wqkv
            pl.BlockSpec((1, 1, 3 * D), layer3),              # sa_bqkv
            pl.BlockSpec((1, D, D), layer3),                  # sa_wo
            pl.BlockSpec((1, 1, D), layer3),                  # sa_bo
            pl.BlockSpec((1, 1, D), layer3),                  # n1_g
            pl.BlockSpec((1, 1, D), layer3),                  # n1_b
            pl.BlockSpec((1, D, D), layer3),                  # ca_wq
            pl.BlockSpec((1, 1, D), layer3),                  # ca_bq
            pl.BlockSpec((1, D, 2 * D), layer3),              # ca_wkv
            pl.BlockSpec((1, 1, 2 * D), layer3),              # ca_bkv
            pl.BlockSpec((1, D, D), layer3),                  # ca_wo
            pl.BlockSpec((1, 1, D), layer3),                  # ca_bo
            pl.BlockSpec((1, 1, D), layer3),                  # n2_g
            pl.BlockSpec((1, 1, D), layer3),                  # n2_b
            pl.BlockSpec((1, D, FF), layer3),                 # ff_w1
            pl.BlockSpec((1, 1, FF), layer3),                 # ff_b1
            pl.BlockSpec((1, FF, D), layer3),                 # ff_w2
            pl.BlockSpec((1, 1, D), layer3),                  # ff_b2
            pl.BlockSpec((1, 1, D), layer3),                  # n3_g
            pl.BlockSpec((1, 1, D), layer3),                  # n3_b
            pl.BlockSpec((1, D), const2),                     # dec final norm g
            pl.BlockSpec((1, D), const2),                     # dec final norm b
            pl.BlockSpec((D, F), const2),                     # out_w
            pl.BlockSpec((1, F), const2),                     # out_b
        ],
        out_specs=pl.BlockSpec((1, St, F), batch3),
        scratch_shapes=[pltpu.VMEM((St, D), jnp.float32)],
        compiler_params=pltpu.CompilerParams(
            dimension_semantics=("parallel", "arbitrary")),
    )(tgt_raw, mem, params["trg_mask"],
      params["proj_w"], params["proj_b"], pe,
      params["pp_norm_g"], params["pp_norm_b"],
      dec["sa_wqkv"], dec["sa_bqkv"], dec["sa_wo"], dec["sa_bo"],
      dec["n1_g"], dec["n1_b"],
      dec["ca_wq"], dec["ca_bq"], dec["ca_wkv"], dec["ca_bkv"],
      dec["ca_wo"], dec["ca_bo"], dec["n2_g"], dec["n2_b"],
      dec["ff_w1"], dec["ff_b1"], dec["ff_w2"], dec["ff_b2"],
      dec["n3_g"], dec["n3_b"],
      params["dec_norm_g"], params["dec_norm_b"],
      params["out_w"], params["out_b"])


# ----------------------------------------------------------------------------
# Forward pass (training branch of TransformerModel.forward)
# ----------------------------------------------------------------------------
def transformer_model_forward(params, X, *, input_len, target_len, d_model,
                              n_heads, n_features):
    source_seq = X[:, :input_len, :]
    shifted_target_seq = X[:, input_len - 1:-1, :]

    mem = pallas_encoder_stack(source_seq, params, n_heads, d_model)
    out = pallas_decoder_stack(shifted_target_seq, mem, params, n_heads,
                               d_model, n_features)
    return out


# ----------------------------------------------------------------------------
# Deterministic parameter construction (weights stored bf16, stats/biases f32)
# ----------------------------------------------------------------------------
def _w(key, shape, scale=0.05):
    return (scale * jax.random.normal(key, shape, jnp.float32)).astype(jnp.bfloat16)


def make_positional_encoding(max_len, d_model):
    pos = jnp.arange(max_len, dtype=jnp.float32)[:, None]
    ang = jnp.exp(jnp.arange(0, d_model, 2, dtype=jnp.float32)
                  * (-math.log(10000.0) / d_model))
    pe = jnp.zeros((max_len, d_model), jnp.float32)
    pe = pe.at[:, 0::2].set(jnp.sin(pos * ang))
    pe = pe.at[:, 1::2].set(jnp.cos(pos * ang))
    return pe


def make_square_subsequent_mask(n):
    # large finite negative instead of -inf (avoids NaN if a row were fully masked)
    r = jnp.arange(n)
    return jnp.where(r[None, :] > r[:, None], -1e9, 0.0).astype(jnp.float32)


def init_params(key, *, n_features, d_model, n_heads, ffn, n_enc, n_dec,
                input_len, target_len):
    D, F = d_model, n_features
    ones = lambda s: jnp.ones(s, jnp.float32)
    zeros = lambda s: jnp.zeros(s, jnp.float32)
    k_proj, k_out, k_enc, k_dec = jax.random.split(key, 4)

    ek = jax.random.split(k_enc, 4)
    enc = {
        "w_qkv": _w(ek[0], (n_enc, D, 3 * D)), "b_qkv": zeros((n_enc, 1, 3 * D)),
        "w_o": _w(ek[1], (n_enc, D, D)), "b_o": zeros((n_enc, 1, D)),
        "n1_g": ones((n_enc, 1, D)), "n1_b": zeros((n_enc, 1, D)),
        "ff_w1": _w(ek[2], (n_enc, D, ffn)), "ff_b1": zeros((n_enc, 1, ffn)),
        "ff_w2": _w(ek[3], (n_enc, ffn, D)), "ff_b2": zeros((n_enc, 1, D)),
        "n2_g": ones((n_enc, 1, D)), "n2_b": zeros((n_enc, 1, D)),
    }
    dk = jax.random.split(k_dec, 7)
    dec = {
        "sa_wqkv": _w(dk[0], (n_dec, D, 3 * D)), "sa_bqkv": zeros((n_dec, 1, 3 * D)),
        "sa_wo": _w(dk[1], (n_dec, D, D)), "sa_bo": zeros((n_dec, 1, D)),
        "n1_g": ones((n_dec, 1, D)), "n1_b": zeros((n_dec, 1, D)),
        "ca_wq": _w(dk[2], (n_dec, D, D)), "ca_bq": zeros((n_dec, 1, D)),
        "ca_wkv": _w(dk[3], (n_dec, D, 2 * D)), "ca_bkv": zeros((n_dec, 1, 2 * D)),
        "ca_wo": _w(dk[4], (n_dec, D, D)), "ca_bo": zeros((n_dec, 1, D)),
        "n2_g": ones((n_dec, 1, D)), "n2_b": zeros((n_dec, 1, D)),
        "ff_w1": _w(dk[5], (n_dec, D, ffn)), "ff_b1": zeros((n_dec, 1, ffn)),
        "ff_w2": _w(dk[6], (n_dec, ffn, D)), "ff_b2": zeros((n_dec, 1, D)),
        "n3_g": ones((n_dec, 1, D)), "n3_b": zeros((n_dec, 1, D)),
    }
    return {
        "proj_w": _w(k_proj, (F, D)), "proj_b": zeros((1, D)),
        "pp_norm_g": ones((1, D)), "pp_norm_b": zeros((1, D)),
        "enc_norm_g": ones((1, D)), "enc_norm_b": zeros((1, D)),
        "dec_norm_g": ones((1, D)), "dec_norm_b": zeros((1, D)),
        "out_w": _w(k_out, (D, F)), "out_b": zeros((1, F)),
        "pe": make_positional_encoding(max(input_len, target_len), D),
        "trg_mask": make_square_subsequent_mask(target_len),
        "enc": enc, "dec": dec,
    }


# ----------------------------------------------------------------------------
if __name__ == "__main__":
    B = 2
    N_FEATURES = 4
    INPUT_LEN = 8
    TARGET_LEN = 4
    D_MODEL = 32
    N_HEADS = 4
    FFN = 64
    N_ENC = 2
    N_DEC = 2

    root = jax.random.PRNGKey(0)
    pkey, xkey = jax.random.split(root)

    params = init_params(
        pkey, n_features=N_FEATURES, d_model=D_MODEL, n_heads=N_HEADS, ffn=FFN,
        n_enc=N_ENC, n_dec=N_DEC, input_len=INPUT_LEN, target_len=TARGET_LEN)

    # X holds source (first input_len steps) followed by target (target_len steps)
    X = jax.random.normal(xkey, (B, INPUT_LEN + TARGET_LEN, N_FEATURES), jnp.float32)

    fwd = jax.jit(functools.partial(
        transformer_model_forward,
        input_len=INPUT_LEN, target_len=TARGET_LEN,
        d_model=D_MODEL, n_heads=N_HEADS, n_features=N_FEATURES))

    out = fwd(params, X)
    out = jax.block_until_ready(out)

    assert out.shape == (B, TARGET_LEN, N_FEATURES), out.shape
    assert bool(jnp.all(jnp.isfinite(out)))
    print("KERNEL_OK")
</pallas_src>

<mosaic_0001>
module attributes {stable_mosaic.version = 11 : i64} {
  func.func @_encoder_stack_kernel(%arg0: i32, %arg1: i32, %arg2: memref<1x8x4xf32, #tpu.memory_space<vmem>>, %arg3: memref<4x32xbf16, #tpu.memory_space<vmem>>, %arg4: memref<1x32xf32, #tpu.memory_space<vmem>>, %arg5: memref<8x32xf32, #tpu.memory_space<vmem>>, %arg6: memref<1x32xf32, #tpu.memory_space<vmem>>, %arg7: memref<1x32xf32, #tpu.memory_space<vmem>>, %arg8: memref<1x32x96xbf16, #tpu.memory_space<vmem>>, %arg9: memref<1x1x96xf32, #tpu.memory_space<vmem>>, %arg10: memref<1x32x32xbf16, #tpu.memory_space<vmem>>, %arg11: memref<1x1x32xf32, #tpu.memory_space<vmem>>, %arg12: memref<1x1x32xf32, #tpu.memory_space<vmem>>, %arg13: memref<1x1x32xf32, #tpu.memory_space<vmem>>, %arg14: memref<1x32x64xbf16, #tpu.memory_space<vmem>>, %arg15: memref<1x1x64xf32, #tpu.memory_space<vmem>>, %arg16: memref<1x64x32xbf16, #tpu.memory_space<vmem>>, %arg17: memref<1x1x32xf32, #tpu.memory_space<vmem>>, %arg18: memref<1x1x32xf32, #tpu.memory_space<vmem>>, %arg19: memref<1x1x32xf32, #tpu.memory_space<vmem>>, %arg20: memref<1x32xf32, #tpu.memory_space<vmem>>, %arg21: memref<1x32xf32, #tpu.memory_space<vmem>>, %arg22: memref<1x8x32xf32, #tpu.memory_space<vmem>>, %arg23: memref<8x32xf32, #tpu.memory_space<vmem>>) attributes {dimension_semantics = [#tpu.dimension_semantics<parallel>, #tpu.dimension_semantics<arbitrary>], iteration_bounds = array<i64: 2, 2>, scalar_prefetch = 0 : i64, scratch_operands = 1 : i64, tpu.core_type = #tpu.core_type<tc>, window_params = [{transform_indices = @transform_0, window_bounds = array<i64: 1, 8, 4>}, {pipeline_mode = #tpu.pipeline_mode<synchronous>, transform_indices = @transform_1, window_bounds = array<i64: 4, 32>}, {pipeline_mode = #tpu.pipeline_mode<synchronous>, transform_indices = @transform_2, window_bounds = array<i64: 1, 32>}, {pipeline_mode = #tpu.pipeline_mode<synchronous>, transform_indices = @transform_3, window_bounds = array<i64: 8, 32>}, {pipeline_mode = #tpu.pipeline_mode<synchronous>, transform_indices = @transform_4, window_bounds = array<i64: 1, 32>}, {pipeline_mode = #tpu.pipeline_mode<synchronous>, transform_indices = @transform_5, window_bounds = array<i64: 1, 32>}, {transform_indices = @transform_6, window_bounds = array<i64: 1, 32, 96>}, {transform_indices = @transform_7, window_bounds = array<i64: 1, 1, 96>}, {transform_indices = @transform_8, window_bounds = array<i64: 1, 32, 32>}, {transform_indices = @transform_9, window_bounds = array<i64: 1, 1, 32>}, {transform_indices = @transform_10, window_bounds = array<i64: 1, 1, 32>}, {transform_indices = @transform_11, window_bounds = array<i64: 1, 1, 32>}, {transform_indices = @transform_12, window_bounds = array<i64: 1, 32, 64>}, {transform_indices = @transform_13, window_bounds = array<i64: 1, 1, 64>}, {transform_indices = @transform_14, window_bounds = array<i64: 1, 64, 32>}, {transform_indices = @transform_15, window_bounds = array<i64: 1, 1, 32>}, {transform_indices = @transform_16, window_bounds = array<i64: 1, 1, 32>}, {transform_indices = @transform_17, window_bounds = array<i64: 1, 1, 32>}, {pipeline_mode = #tpu.pipeline_mode<synchronous>, transform_indices = @transform_18, window_bounds = array<i64: 1, 32>}, {pipeline_mode = #tpu.pipeline_mode<synchronous>, transform_indices = @transform_19, window_bounds = array<i64: 1, 32>}, {transform_indices = @transform_20, window_bounds = array<i64: 1, 8, 32>}]} {
    %c0_i32 = arith.constant 0 : i32
    %0 = arith.cmpi eq, %arg1, %c0_i32 : i32
    %1 = arith.extui %0 : i1 to i32
    %c0_i32_0 = arith.constant 0 : i32
    %2 = arith.cmpi ne, %1, %c0_i32_0 : i32
    scf.if %2 {
      %c0_75 = arith.constant 0 : index
      %c0_76 = arith.constant 0 : index
      %c0_77 = arith.constant 0 : index
      %175 = vector.load %arg2[%c0_75, %c0_76, %c0_77] : memref<1x8x4xf32, #tpu.memory_space<vmem>>, vector<1x8x4xf32>
      %176 = vector.shape_cast %175 : vector<1x8x4xf32> to vector<8x4xf32>
      %c0_78 = arith.constant 0 : index
      %c0_79 = arith.constant 0 : index
      %177 = vector.load %arg3[%c0_78, %c0_79] : memref<4x32xbf16, #tpu.memory_space<vmem>>, vector<4x32xbf16>
      %c0_80 = arith.constant 0 : index
      %c0_81 = arith.constant 0 : index
      %178 = vector.load %arg4[%c0_80, %c0_81] : memref<1x32xf32, #tpu.memory_space<vmem>>, vector<1x32xf32>
      %c0_82 = arith.constant 0 : index
      %c0_83 = arith.constant 0 : index
      %179 = vector.load %arg5[%c0_82, %c0_83] : memref<8x32xf32, #tpu.memory_space<vmem>>, vector<8x32xf32>
      %c0_84 = arith.constant 0 : index
      %c0_85 = arith.constant 0 : index
      %180 = vector.load %arg6[%c0_84, %c0_85] : memref<1x32xf32, #tpu.memory_space<vmem>>, vector<1x32xf32>
      %c0_86 = arith.constant 0 : index
      %c0_87 = arith.constant 0 : index
      %181 = vector.load %arg7[%c0_86, %c0_87] : memref<1x32xf32, #tpu.memory_space<vmem>>, vector<1x32xf32>
      %182 = arith.truncf %176 : vector<8x4xf32> to vector<8x4xbf16>
      %cst_88 = arith.constant dense<0.000000e+00> : vector<8x32xf32>
      %183 = tpu.matmul %182, %177, %cst_88 {dimension_numbers = #tpu.dot_dimension_numbers<[1], [0], [0], [1], [0, 0, 1, 1], [], []>} : vector<8x4xbf16>, vector<4x32xbf16>, vector<8x32xf32> -> vector<8x32xf32>
      %184 = vector.broadcast %178 : vector<1x32xf32> to vector<8x32xf32>
      %185 = arith.addf %183, %184 : vector<8x32xf32>
      %cst_89 = arith.constant 5.65685415 : f32
      %186 = vector.broadcast %cst_89 : f32 to vector<8x32xf32>
      %187 = arith.mulf %185, %186 : vector<8x32xf32>
      %188 = arith.addf %187, %179 : vector<8x32xf32>
      %cst_90 = arith.constant dense<0.000000e+00> : vector<8xf32>
      %189 = vector.multi_reduction <add>, %188, %cst_90 [1] : vector<8x32xf32> to vector<8xf32>
      %190 = vector.shape_cast %189 : vector<8xf32> to vector<8x1xf32>
      %cst_91 = arith.constant 3.200000e+01 : f32
      %191 = vector.broadcast %cst_91 : f32 to vector<8x1xf32>
      %192 = arith.divf %190, %191 : vector<8x1xf32>
      %193 = vector.broadcast %192 : vector<8x1xf32> to vector<8x32xf32>
      %194 = arith.subf %188, %193 : vector<8x32xf32>
      %195 = arith.mulf %194, %194 : vector<8x32xf32>
      %cst_92 = arith.constant dense<0.000000e+00> : vector<8xf32>
      %196 = vector.multi_reduction <add>, %195, %cst_92 [1] : vector<8x32xf32> to vector<8xf32>
      %197 = vector.shape_cast %196 : vector<8xf32> to vector<8x1xf32>
      %cst_93 = arith.constant 3.200000e+01 : f32
      %198 = vector.broadcast %cst_93 : f32 to vector<8x1xf32>
      %199 = arith.divf %197, %198 : vector<8x1xf32>
      %200 = vector.broadcast %192 : vector<8x1xf32> to vector<8x32xf32>
      %201 = arith.subf %188, %200 : vector<8x32xf32>
      %cst_94 = arith.constant 9.99999974E-6 : f32
      %202 = vector.broadcast %cst_94 : f32 to vector<8x1xf32>
      %203 = arith.addf %199, %202 : vector<8x1xf32>
      %204 = math.rsqrt %203 : vector<8x1xf32>
      %205 = vector.broadcast %204 : vector<8x1xf32> to vector<8x32xf32>
      %206 = arith.mulf %201, %205 : vector<8x32xf32>
      %207 = vector.broadcast %180 : vector<1x32xf32> to vector<8x32xf32>
      %208 = arith.mulf %206, %207 : vector<8x32xf32>
      %209 = vector.broadcast %181 : vector<1x32xf32> to vector<8x32xf32>
      %210 = arith.addf %208, %209 : vector<8x32xf32>
      %c0_95 = arith.constant 0 : index
      %c0_96 = arith.constant 0 : index
      %211 = vector.load %arg23[%c0_95, %c0_96] : memref<8x32xf32, #tpu.memory_space<vmem>>, vector<8x32xf32>
      tpu.vector_store %arg23[%c0_95, %c0_96], %210 {strides = array<i32>} : memref<8x32xf32, #tpu.memory_space<vmem>>, vector<8x32xf32>,
    } else {
    }
    %c0 = arith.constant 0 : index
    %c0_1 = arith.constant 0 : index
    %3 = vector.load %arg23[%c0, %c0_1] : memref<8x32xf32, #tpu.memory_space<vmem>>, vector<8x32xf32>
    %c0_2 = arith.constant 0 : index
    %c0_3 = arith.constant 0 : index
    %c0_4 = arith.constant 0 : index
    %4 = vector.load %arg8[%c0_2, %c0_3, %c0_4] : memref<1x32x96xbf16, #tpu.memory_space<vmem>>, vector<1x32x96xbf16>
    %5 = vector.shape_cast %4 : vector<1x32x96xbf16> to vector<32x96xbf16>
    %c0_5 = arith.constant 0 : index
    %c0_6 = arith.constant 0 : index
    %c0_7 = arith.constant 0 : index
    %6 = vector.load %arg9[%c0_5, %c0_6, %c0_7] : memref<1x1x96xf32, #tpu.memory_space<vmem>>, vector<1x1x96xf32>
    %7 = vector.shape_cast %6 : vector<1x1x96xf32> to vector<1x96xf32>
    %8 = arith.truncf %3 : vector<8x32xf32> to vector<8x32xbf16>
    %cst = arith.constant dense<0.000000e+00> : vector<8x96xf32>
    %9 = tpu.matmul %8, %5, %cst {dimension_numbers = #tpu.dot_dimension_numbers<[1], [0], [0], [1], [0, 0, 1, 1], [], []>} : vector<8x32xbf16>, vector<32x96xbf16>, vector<8x96xf32> -> vector<8x96xf32>
    %10 = vector.broadcast %7 : vector<1x96xf32> to vector<8x96xf32>
    %11 = arith.addf %9, %10 : vector<8x96xf32>
    %12 = vector.extract_strided_slice %11 {offsets = [0, 0], sizes = [8, 32], strides = [1, 1]} : vector<8x96xf32> to vector<8x32xf32>
    %13 = vector.extract_strided_slice %11 {offsets = [0, 32], sizes = [8, 32], strides = [1, 1]} : vector<8x96xf32> to vector<8x32xf32>
    %14 = vector.extract_strided_slice %11 {offsets = [0, 64], sizes = [8, 32], strides = [1, 1]} : vector<8x96xf32> to vector<8x32xf32>
    %15 = arith.truncf %12 : vector<8x32xf32> to vector<8x32xbf16>
    %16 = arith.truncf %13 : vector<8x32xf32> to vector<8x32xbf16>
    %17 = arith.truncf %14 : vector<8x32xf32> to vector<8x32xbf16>
    %18 = vector.extract_strided_slice %15 {offsets = [0, 0], sizes = [8, 8], strides = [1, 1]} : vector<8x32xbf16> to vector<8x8xbf16>
    %19 = vector.extract_strided_slice %16 {offsets = [0, 0], sizes = [8, 8], strides = [1, 1]} : vector<8x32xbf16> to vector<8x8xbf16>
    %cst_8 = arith.constant dense<0.000000e+00> : vector<8x8xf32>
    %20 = tpu.matmul %18, %19, %cst_8 {dimension_numbers = #tpu.dot_dimension_numbers<[1], [1], [0], [0], [0, 0, 1, 0], [], []>} : vector<8x8xbf16>, vector<8x8xbf16>, vector<8x8xf32> -> vector<8x8xf32>
    %cst_9 = arith.constant 0.353553385 : f32
    %21 = vector.broadcast %cst_9 : f32 to vector<8x8xf32>
    %22 = arith.mulf %20, %21 : vector<8x8xf32>
    %cst_10 = arith.constant dense<0xFF800000> : vector<8xf32>
    %23 = vector.multi_reduction <maximumf>, %22, %cst_10 [1] : vector<8x8xf32> to vector<8xf32>
    %24 = vector.shape_cast %23 : vector<8xf32> to vector<8x1xf32>
    %25 = vector.broadcast %24 : vector<8x1xf32> to vector<8x8xf32>
    %26 = arith.subf %22, %25 : vector<8x8xf32>
    %27 = math.exp %26 : vector<8x8xf32>
    %cst_11 = arith.constant dense<0.000000e+00> : vector<8xf32>
    %28 = vector.multi_reduction <add>, %27, %cst_11 [1] : vector<8x8xf32> to vector<8xf32>
    %29 = vector.shape_cast %28 : vector<8xf32> to vector<8x1xf32>
    %30 = tpu.reciprocal %29 {approx = true} : vector<8x1xf32> -> vector<8x1xf32>
    %31 = vector.broadcast %30 : vector<8x1xf32> to vector<8x8xf32>
    %32 = arith.mulf %27, %31 : vector<8x8xf32>
    %33 = arith.truncf %32 : vector<8x8xf32> to vector<8x8xbf16>
    %34 = vector.extract_strided_slice %17 {offsets = [0, 0], sizes = [8, 8], strides = [1, 1]} : vector<8x32xbf16> to vector<8x8xbf16>
    %cst_12 = arith.constant dense<0.000000e+00> : vector<8x8xf32>
    %35 = tpu.matmul %33, %34, %cst_12 {dimension_numbers = #tpu.dot_dimension_numbers<[1], [0], [0], [1], [0, 0, 1, 1], [], []>} : vector<8x8xbf16>, vector<8x8xbf16>, vector<8x8xf32> -> vector<8x8xf32>
    %36 = vector.extract_strided_slice %15 {offsets = [0, 8], sizes = [8, 8], strides = [1, 1]} : vector<8x32xbf16> to vector<8x8xbf16>
    %37 = vector.extract_strided_slice %16 {offsets = [0, 8], sizes = [8, 8], strides = [1, 1]} : vector<8x32xbf16> to vector<8x8xbf16>
    %cst_13 = arith.constant dense<0.000000e+00> : vector<8x8xf32>
    %38 = tpu.matmul %36, %37, %cst_13 {dimension_numbers = #tpu.dot_dimension_numbers<[1], [1], [0], [0], [0, 0, 1, 0], [], []>} : vector<8x8xbf16>, vector<8x8xbf16>, vector<8x8xf32> -> vector<8x8xf32>
    %cst_14 = arith.constant 0.353553385 : f32
    %39 = vector.broadcast %cst_14 : f32 to vector<8x8xf32>
    %40 = arith.mulf %38, %39 : vector<8x8xf32>
    %cst_15 = arith.constant dense<0xFF800000> : vector<8xf32>
    %41 = vector.multi_reduction <maximumf>, %40, %cst_15 [1] : vector<8x8xf32> to vector<8xf32>
    %42 = vector.shape_cast %41 : vector<8xf32> to vector<8x1xf32>
    %43 = vector.broadcast %42 : vector<8x1xf32> to vector<8x8xf32>
    %44 = arith.subf %40, %43 : vector<8x8xf32>
    %45 = math.exp %44 : vector<8x8xf32>
    %cst_16 = arith.constant dense<0.000000e+00> : vector<8xf32>
    %46 = vector.multi_reduction <add>, %45, %cst_16 [1] : vector<8x8xf32> to vector<8xf32>
    %47 = vector.shape_cast %46 : vector<8xf32> to vector<8x1xf32>
    %48 = tpu.reciprocal %47 {approx = true} : vector<8x1xf32> -> vector<8x1xf32>
    %49 = vector.broadcast %48 : vector<8x1xf32> to vector<8x8xf32>
    %50 = arith.mulf %45, %49 : vector<8x8xf32>
    %51 = arith.truncf %50 : vector<8x8xf32> to vector<8x8xbf16>
    %52 = vector.extract_strided_slice %17 {offsets = [0, 8], sizes = [8, 8], strides = [1, 1]} : vector<8x32xbf16> to vector<8x8xbf16>
    %cst_17 = arith.constant dense<0.000000e+00> : vector<8x8xf32>
    %53 = tpu.matmul %51, %52, %cst_17 {dimension_numbers = #tpu.dot_dimension_numbers<[1], [0], [0], [1], [0, 0, 1, 1], [], []>} : vector<8x8xbf16>, vector<8x8xbf16>, vector<8x8xf32> -> vector<8x8xf32>
    %54 = vector.extract_strided_slice %15 {offsets = [0, 16], sizes = [8, 8], strides = [1, 1]} : vector<8x32xbf16> to vector<8x8xbf16>
    %55 = vector.extract_strided_slice %16 {offsets = [0, 16], sizes = [8, 8], strides = [1, 1]} : vector<8x32xbf16> to vector<8x8xbf16>
    %cst_18 = arith.constant dense<0.000000e+00> : vector<8x8xf32>
    %56 = tpu.matmul %54, %55, %cst_18 {dimension_numbers = #tpu.dot_dimension_numbers<[1], [1], [0], [0], [0, 0, 1, 0], [], []>} : vector<8x8xbf16>, vector<8x8xbf16>, vector<8x8xf32> -> vector<8x8xf32>
    %cst_19 = arith.constant 0.353553385 : f32
    %57 = vector.broadcast %cst_19 : f32 to vector<8x8xf32>
    %58 = arith.mulf %56, %57 : vector<8x8xf32>
    %cst_20 = arith.constant dense<0xFF800000> : vector<8xf32>
    %59 = vector.multi_reduction <maximumf>, %58, %cst_20 [1] : vector<8x8xf32> to vector<8xf32>
    %60 = vector.shape_cast %59 : vector<8xf32> to vector<8x1xf32>
    %61 = vector.broadcast %60 : vector<8x1xf32> to vector<8x8xf32>
    %62 = arith.subf %58, %61 : vector<8x8xf32>
    %63 = math.exp %62 : vector<8x8xf32>
    %cst_21 = arith.constant dense<0.000000e+00> : vector<8xf32>
    %64 = vector.multi_reduction <add>, %63, %cst_21 [1] : vector<8x8xf32> to vector<8xf32>
    %65 = vector.shape_cast %64 : vector<8xf32> to vector<8x1xf32>
    %66 = tpu.reciprocal %65 {approx = true} : vector<8x1xf32> -> vector<8x1xf32>
    %67 = vector.broadcast %66 : vector<8x1xf32> to vector<8x8xf32>
    %68 = arith.mulf %63, %67 : vector<8x8xf32>
    %69 = arith.truncf %68 : vector<8x8xf32> to vector<8x8xbf16>
    %70 = vector.extract_strided_slice %17 {offsets = [0, 16], sizes = [8, 8], strides = [1, 1]} : vector<8x32xbf16> to vector<8x8xbf16>
    %cst_22 = arith.constant dense<0.000000e+00> : vector<8x8xf32>
    %71 = tpu.matmul %69, %70, %cst_22 {dimension_numbers = #tpu.dot_dimension_numbers<[1], [0], [0], [1], [0, 0, 1, 1], [], []>} : vector<8x8xbf16>, vector<8x8xbf16>, vector<8x8xf32> -> vector<8x8xf32>
    %72 = vector.extract_strided_slice %15 {offsets = [0, 24], sizes = [8, 8], strides = [1, 1]} : vector<8x32xbf16> to vector<8x8xbf16>
    %73 = vector.extract_strided_slice %16 {offsets = [0, 24], sizes = [8, 8], strides = [1, 1]} : vector<8x32xbf16> to vector<8x8xbf16>
    %cst_23 = arith.constant dense<0.000000e+00> : vector<8x8xf32>
    %74 = tpu.matmul %72, %73, %cst_23 {dimension_numbers = #tpu.dot_dimension_numbers<[1], [1], [0], [0], [0, 0, 1, 0], [], []>} : vector<8x8xbf16>, vector<8x8xbf16>, vector<8x8xf32> -> vector<8x8xf32>
    %cst_24 = arith.constant 0.353553385 : f32
    %75 = vector.broadcast %cst_24 : f32 to vector<8x8xf32>
    %76 = arith.mulf %74, %75 : vector<8x8xf32>
    %cst_25 = arith.constant dense<0xFF800000> : vector<8xf32>
    %77 = vector.multi_reduction <maximumf>, %76, %cst_25 [1] : vector<8x8xf32> to vector<8xf32>
    %78 = vector.shape_cast %77 : vector<8xf32> to vector<8x1xf32>
    %79 = vector.broadcast %78 : vector<8x1xf32> to vector<8x8xf32>
    %80 = arith.subf %76, %79 : vector<8x8xf32>
    %81 = math.exp %80 : vector<8x8xf32>
    %cst_26 = arith.constant dense<0.000000e+00> : vector<8xf32>
    %82 = vector.multi_reduction <add>, %81, %cst_26 [1] : vector<8x8xf32> to vector<8xf32>
    %83 = vector.shape_cast %82 : vector<8xf32> to vector<8x1xf32>
    %84 = tpu.reciprocal %83 {approx = true} : vector<8x1xf32> -> vector<8x1xf32>
    %85 = vector.broadcast %84 : vector<8x1xf32> to vector<8x8xf32>
    %86 = arith.mulf %81, %85 : vector<8x8xf32>
    %87 = arith.truncf %86 : vector<8x8xf32> to vector<8x8xbf16>
    %88 = vector.extract_strided_slice %17 {offsets = [0, 24], sizes = [8, 8], strides = [1, 1]} : vector<8x32xbf16> to vector<8x8xbf16>
    %cst_27 = arith.constant dense<0.000000e+00> : vector<8x8xf32>
    %89 = tpu.matmul %87, %88, %cst_27 {dimension_numbers = #tpu.dot_dimension_numbers<[1], [0], [0], [1], [0, 0, 1, 1], [], []>} : vector<8x8xbf16>, vector<8x8xbf16>, vector<8x8xf32> -> vector<8x8xf32>
    %90 = tpu.concatenate %35, %53, %71, %89 in 1 : vector<8x8xf32>, vector<8x8xf32>, vector<8x8xf32>, vector<8x8xf32> -> vector<8x32xf32>
    %c0_28 = arith.constant 0 : index
    %c0_29 = arith.constant 0 : index
    %c0_30 = arith.constant 0 : index
    %91 = vector.load %arg10[%c0_28, %c0_29, %c0_30] : memref<1x32x32xbf16, #tpu.memory_space<vmem>>, vector<1x32x32xbf16>
    %92 = vector.shape_cast %91 : vector<1x32x32xbf16> to vector<32x32xbf16>
    %c0_31 = arith.constant 0 : index
    %c0_32 = arith.constant 0 : index
    %c0_33 = arith.constant 0 : index
    %93 = vector.load %arg11[%c0_31, %c0_32, %c0_33] : memref<1x1x32xf32, #tpu.memory_space<vmem>>, vector<1x1x32xf32>
    %94 = vector.shape_cast %93 : vector<1x1x32xf32> to vector<1x32xf32>
    %95 = arith.truncf %90 : vector<8x32xf32> to vector<8x32xbf16>
    %cst_34 = arith.constant dense<0.000000e+00> : vector<8x32xf32>
    %96 = tpu.matmul %95, %92, %cst_34 {dimension_numbers = #tpu.dot_dimension_numbers<[1], [0], [0], [1], [0, 0, 1, 1], [], []>} : vector<8x32xbf16>, vector<32x32xbf16>, vector<8x32xf32> -> vector<8x32xf32>
    %97 = vector.broadcast %94 : vector<1x32xf32> to vector<8x32xf32>
    %98 = arith.addf %96, %97 : vector<8x32xf32>
    %99 = arith.addf %3, %98 : vector<8x32xf32>
    %c0_35 = arith.constant 0 : index
    %c0_36 = arith.constant 0 : index
    %c0_37 = arith.constant 0 : index
    %100 = vector.load %arg12[%c0_35, %c0_36, %c0_37] : memref<1x1x32xf32, #tpu.memory_space<vmem>>, vector<1x1x32xf32>
    %101 = vector.shape_cast %100 : vector<1x1x32xf32> to vector<1x32xf32>
    %c0_38 = arith.constant 0 : index
    %c0_39 = arith.constant 0 : index
    %c0_40 = arith.constant 0 : index
    %102 = vector.load %arg13[%c0_38, %c0_39, %c0_40] : memref<1x1x32xf32, #tpu.memory_space<vmem>>, vector<1x1x32xf32>
    %103 = vector.shape_cast %102 : vector<1x1x32xf32> to vector<1x32xf32>
    %cst_41 = arith.constant dense<0.000000e+00> : vector<8xf32>
    %104 = vector.multi_reduction <add>, %99, %cst_41 [1] : vector<8x32xf32> to vector<8xf32>
    %105 = vector.shape_cast %104 : vector<8xf32> to vector<8x1xf32>
    %cst_42 = arith.constant 3.200000e+01 : f32
    %106 = vector.broadcast %cst_42 : f32 to vector<8x1xf32>
    %107 = arith.divf %105, %106 : vector<8x1xf32>
    %108 = vector.broadcast %107 : vector<8x1xf32> to vector<8x32xf32>
    %109 = arith.subf %99, %108 : vector<8x32xf32>
    %110 = arith.mulf %109, %109 : vector<8x32xf32>
    %cst_43 = arith.constant dense<0.000000e+00> : vector<8xf32>
    %111 = vector.multi_reduction <add>, %110, %cst_43 [1] : vector<8x32xf32> to vector<8xf32>
    %112 = vector.shape_cast %111 : vector<8xf32> to vector<8x1xf32>
    %cst_44 = arith.constant 3.200000e+01 : f32
    %113 = vector.broadcast %cst_44 : f32 to vector<8x1xf32>
    %114 = arith.divf %112, %113 : vector<8x1xf32>
    %115 = vector.broadcast %107 : vector<8x1xf32> to vector<8x32xf32>
    %116 = arith.subf %99, %115 : vector<8x32xf32>
    %cst_45 = arith.constant 9.99999974E-6 : f32
    %117 = vector.broadcast %cst_45 : f32 to vector<8x1xf32>
    %118 = arith.addf %114, %117 : vector<8x1xf32>
    %119 = math.rsqrt %118 : vector<8x1xf32>
    %120 = vector.broadcast %119 : vector<8x1xf32> to vector<8x32xf32>
    %121 = arith.mulf %116, %120 : vector<8x32xf32>
    %122 = vector.broadcast %101 : vector<1x32xf32> to vector<8x32xf32>
    %123 = arith.mulf %121, %122 : vector<8x32xf32>
    %124 = vector.broadcast %103 : vector<1x32xf32> to vector<8x32xf32>
    %125 = arith.addf %123, %124 : vector<8x32xf32>
    %c0_46 = arith.constant 0 : index
    %c0_47 = arith.constant 0 : index
    %c0_48 = arith.constant 0 : index
    %126 = vector.load %arg14[%c0_46, %c0_47, %c0_48] : memref<1x32x64xbf16, #tpu.memory_space<vmem>>, vector<1x32x64xbf16>
    %127 = vector.shape_cast %126 : vector<1x32x64xbf16> to vector<32x64xbf16>
    %c0_49 = arith.constant 0 : index
    %c0_50 = arith.constant 0 : index
    %c0_51 = arith.constant 0 : index
    %128 = vector.load %arg15[%c0_49, %c0_50, %c0_51] : memref<1x1x64xf32, #tpu.memory_space<vmem>>, vector<1x1x64xf32>
    %129 = vector.shape_cast %128 : vector<1x1x64xf32> to vector<1x64xf32>
    %130 = arith.truncf %125 : vector<8x32xf32> to vector<8x32xbf16>
    %cst_52 = arith.constant dense<0.000000e+00> : vector<8x64xf32>
    %131 = tpu.matmul %130, %127, %cst_52 {dimension_numbers = #tpu.dot_dimension_numbers<[1], [0], [0], [1], [0, 0, 1, 1], [], []>} : vector<8x32xbf16>, vector<32x64xbf16>, vector<8x64xf32> -> vector<8x64xf32>
    %132 = vector.broadcast %129 : vector<1x64xf32> to vector<8x64xf32>
    %133 = arith.addf %131, %132 : vector<8x64xf32>
    %cst_53 = arith.constant 0.000000e+00 : f32
    %134 = vector.broadcast %cst_53 : f32 to vector<8x64xf32>
    %135 = arith.maximumf %133, %134 : vector<8x64xf32>
    %c0_54 = arith.constant 0 : index
    %c0_55 = arith.constant 0 : index
    %c0_56 = arith.constant 0 : index
    %136 = vector.load %arg16[%c0_54, %c0_55, %c0_56] : memref<1x64x32xbf16, #tpu.memory_space<vmem>>, vector<1x64x32xbf16>
    %137 = vector.shape_cast %136 : vector<1x64x32xbf16> to vector<64x32xbf16>
    %c0_57 = arith.constant 0 : index
    %c0_58 = arith.constant 0 : index
    %c0_59 = arith.constant 0 : index
    %138 = vector.load %arg17[%c0_57, %c0_58, %c0_59] : memref<1x1x32xf32, #tpu.memory_space<vmem>>, vector<1x1x32xf32>
    %139 = vector.shape_cast %138 : vector<1x1x32xf32> to vector<1x32xf32>
    %140 = arith.truncf %135 : vector<8x64xf32> to vector<8x64xbf16>
    %cst_60 = arith.constant dense<0.000000e+00> : vector<8x32xf32>
    %141 = tpu.matmul %140, %137, %cst_60 {dimension_numbers = #tpu.dot_dimension_numbers<[1], [0], [0], [1], [0, 0, 1, 1], [], []>} : vector<8x64xbf16>, vector<64x32xbf16>, vector<8x32xf32> -> vector<8x32xf32>
    %142 = vector.broadcast %139 : vector<1x32xf32> to vector<8x32xf32>
    %143 = arith.addf %141, %142 : vector<8x32xf32>
    %144 = arith.addf %125, %143 : vector<8x32xf32>
    %c0_61 = arith.constant 0 : index
    %c0_62 = arith.constant 0 : index
    %c0_63 = arith.constant 0 : index
    %145 = vector.load %arg18[%c0_61, %c0_62, %c0_63] : memref<1x1x32xf32, #tpu.memory_space<vmem>>, vector<1x1x32xf32>
    %146 = vector.shape_cast %145 : vector<1x1x32xf32> to vector<1x32xf32>
    %c0_64 = arith.constant 0 : index
    %c0_65 = arith.constant 0 : index
    %c0_66 = arith.constant 0 : index
    %147 = vector.load %arg19[%c0_64, %c0_65, %c0_66] : memref<1x1x32xf32, #tpu.memory_space<vmem>>, vector<1x1x32xf32>
    %148 = vector.shape_cast %147 : vector<1x1x32xf32> to vector<1x32xf32>
    %cst_67 = arith.constant dense<0.000000e+00> : vector<8xf32>
    %149 = vector.multi_reduction <add>, %144, %cst_67 [1] : vector<8x32xf32> to vector<8xf32>
    %150 = vector.shape_cast %149 : vector<8xf32> to vector<8x1xf32>
    %cst_68 = arith.constant 3.200000e+01 : f32
    %151 = vector.broadcast %cst_68 : f32 to vector<8x1xf32>
    %152 = arith.divf %150, %151 : vector<8x1xf32>
    %153 = vector.broadcast %152 : vector<8x1xf32> to vector<8x32xf32>
    %154 = arith.subf %144, %153 : vector<8x32xf32>
    %155 = arith.mulf %154, %154 : vector<8x32xf32>
    %cst_69 = arith.constant dense<0.000000e+00> : vector<8xf32>
    %156 = vector.multi_reduction <add>, %155, %cst_69 [1] : vector<8x32xf32> to vector<8xf32>
    %157 = vector.shape_cast %156 : vector<8xf32> to vector<8x1xf32>
    %cst_70 = arith.constant 3.200000e+01 : f32
    %158 = vector.broadcast %cst_70 : f32 to vector<8x1xf32>
    %159 = arith.divf %157, %158 : vector<8x1xf32>
    %160 = vector.broadcast %152 : vector<8x1xf32> to vector<8x32xf32>
    %161 = arith.subf %144, %160 : vector<8x32xf32>
    %cst_71 = arith.constant 9.99999974E-6 : f32
    %162 = vector.broadcast %cst_71 : f32 to vector<8x1xf32>
    %163 = arith.addf %159, %162 : vector<8x1xf32>
    %164 = math.rsqrt %163 : vector<8x1xf32>
    %165 = vector.broadcast %164 : vector<8x1xf32> to vector<8x32xf32>
    %166 = arith.mulf %161, %165 : vector<8x32xf32>
    %167 = vector.broadcast %146 : vector<1x32xf32> to vector<8x32xf32>
    %168 = arith.mulf %166, %167 : vector<8x32xf32>
    %169 = vector.broadcast %148 : vector<1x32xf32> to vector<8x32xf32>
    %170 = arith.addf %168, %169 : vector<8x32xf32>
    %c0_72 = arith.constant 0 : index
    %c0_73 = arith.constant 0 : index
    %171 = vector.load %arg23[%c0_72, %c0_73] : memref<8x32xf32, #tpu.memory_space<vmem>>, vector<8x32xf32>
    tpu.vector_store %arg23[%c0_72, %c0_73], %170 {strides = array<i32>} : memref<8x32xf32, #tpu.memory_space<vmem>>, vector<8x32xf32>,
    %c1_i32 = arith.constant 1 : i32
    %172 = arith.cmpi eq, %arg1, %c1_i32 : i32
    %173 = arith.extui %172 : i1 to i32
    %c0_i32_74 = arith.constant 0 : i32
    %174 = arith.cmpi ne, %173, %c0_i32_74 : i32
    scf.if %174 {
      %c0_75 = arith.constant 0 : index
      %c0_76 = arith.constant 0 : index
      %175 = vector.load %arg20[%c0_75, %c0_76] : memref<1x32xf32, #tpu.memory_space<vmem>>, vector<1x32xf32>
      %c0_77 = arith.constant 0 : index
      %c0_78 = arith.constant 0 : index
      %176 = vector.load %arg21[%c0_77, %c0_78] : memref<1x32xf32, #tpu.memory_space<vmem>>, vector<1x32xf32>
      %cst_79 = arith.constant dense<0.000000e+00> : vector<8xf32>
      %177 = vector.multi_reduction <add>, %170, %cst_79 [1] : vector<8x32xf32> to vector<8xf32>
      %178 = vector.shape_cast %177 : vector<8xf32> to vector<8x1xf32>
      %cst_80 = arith.constant 3.200000e+01 : f32
      %179 = vector.broadcast %cst_80 : f32 to vector<8x1xf32>
      %180 = arith.divf %178, %179 : vector<8x1xf32>
      %181 = vector.broadcast %180 : vector<8x1xf32> to vector<8x32xf32>
      %182 = arith.subf %170, %181 : vector<8x32xf32>
      %183 = arith.mulf %182, %182 : vector<8x32xf32>
      %cst_81 = arith.constant dense<0.000000e+00> : vector<8xf32>
      %184 = vector.multi_reduction <add>, %183, %cst_81 [1] : vector<8x32xf32> to vector<8xf32>
      %185 = vector.shape_cast %184 : vector<8xf32> to vector<8x1xf32>
      %cst_82 = arith.constant 3.200000e+01 : f32
      %186 = vector.broadcast %cst_82 : f32 to vector<8x1xf32>
      %187 = arith.divf %185, %186 : vector<8x1xf32>
      %188 = vector.broadcast %180 : vector<8x1xf32> to vector<8x32xf32>
      %189 = arith.subf %170, %188 : vector<8x32xf32>
      %cst_83 = arith.constant 9.99999974E-6 : f32
      %190 = vector.broadcast %cst_83 : f32 to vector<8x1xf32>
      %191 = arith.addf %187, %190 : vector<8x1xf32>
      %192 = math.rsqrt %191 : vector<8x1xf32>
      %193 = vector.broadcast %192 : vector<8x1xf32> to vector<8x32xf32>
      %194 = arith.mulf %189, %193 : vector<8x32xf32>
      %195 = vector.broadcast %175 : vector<1x32xf32> to vector<8x32xf32>
      %196 = arith.mulf %194, %195 : vector<8x32xf32>
      %197 = vector.broadcast %176 : vector<1x32xf32> to vector<8x32xf32>
      %198 = arith.addf %196, %197 : vector<8x32xf32>
      %c0_84 = arith.constant 0 : index
      %c0_85 = arith.constant 0 : index
      %c0_86 = arith.constant 0 : index
      %199 = vector.load %arg22[%c0_84, %c0_85, %c0_86] : memref<1x8x32xf32, #tpu.memory_space<vmem>>, vector<1x8x32xf32>
      %200 = vector.shape_cast %199 : vector<1x8x32xf32> to vector<8x32xf32>
      %201 = vector.shape_cast %198 : vector<8x32xf32> to vector<1x8x32xf32>
      tpu.vector_store %arg22[%c0_84, %c0_85, %c0_86], %201 {strides = array<i32>} : memref<1x8x32xf32, #tpu.memory_space<vmem>>, vector<1x8x32xf32>,
    } else {
    }
    return
  }
  func.func @transform_0(%arg0: i32, %arg1: i32) -> (i32, i32, i32) {
    %c0_i32 = arith.constant 0 : i32
    %c0_i32_0 = arith.constant 0 : i32
    %c0_i32_1 = arith.constant 0 : i32
    return %arg0, %c0_i32, %c0_i32_0 : i32, i32, i32
  }
  func.func @transform_1(%arg0: i32, %arg1: i32) -> (i32, i32) {
    %c0_i32 = arith.constant 0 : i32
    %c0_i32_0 = arith.constant 0 : i32
    %c0_i32_1 = arith.constant 0 : i32
    return %c0_i32, %c0_i32_0 : i32, i32
  }
  func.func @transform_2(%arg0: i32, %arg1: i32) -> (i32, i32) {
    %c0_i32 = arith.constant 0 : i32
    %c0_i32_0 = arith.constant 0 : i32
    %c0_i32_1 = arith.constant 0 : i32
    return %c0_i32, %c0_i32_0 : i32, i32
  }
  func.func @transform_3(%arg0: i32, %arg1: i32) -> (i32, i32) {
    %c0_i32 = arith.constant 0 : i32
    %c0_i32_0 = arith.constant 0 : i32
    %c0_i32_1 = arith.constant 0 : i32
    return %c0_i32, %c0_i32_0 : i32, i32
  }
  func.func @transform_4(%arg0: i32, %arg1: i32) -> (i32, i32) {
    %c0_i32 = arith.constant 0 : i32
    %c0_i32_0 = arith.constant 0 : i32
    %c0_i32_1 = arith.constant 0 : i32
    return %c0_i32, %c0_i32_0 : i32, i32
  }
  func.func @transform_5(%arg0: i32, %arg1: i32) -> (i32, i32) {
    %c0_i32 = arith.constant 0 : i32
    %c0_i32_0 = arith.constant 0 : i32
    %c0_i32_1 = arith.constant 0 : i32
    return %c0_i32, %c0_i32_0 : i32, i32
  }
  func.func @transform_6(%arg0: i32, %arg1: i32) -> (i32, i32, i32) {
    %c0_i32 = arith.constant 0 : i32
    %c0_i32_0 = arith.constant 0 : i32
    %c0_i32_1 = arith.constant 0 : i32
    return %arg1, %c0_i32, %c0_i32_0 : i32, i32, i32
  }
  func.func @transform_7(%arg0: i32, %arg1: i32) -> (i32, i32, i32) {
    %c0_i32 = arith.constant 0 : i32
    %c0_i32_0 = arith.constant 0 : i32
    %c0_i32_1 = arith.constant 0 : i32
    return %arg1, %c0_i32, %c0_i32_0 : i32, i32, i32
  }
  func.func @transform_8(%arg0: i32, %arg1: i32) -> (i32, i32, i32) {
    %c0_i32 = arith.constant 0 : i32
    %c0_i32_0 = arith.constant 0 : i32
    %c0_i32_1 = arith.constant 0 : i32
    return %arg1, %c0_i32, %c0_i32_0 : i32, i32, i32
  }
  func.func @transform_9(%arg0: i32, %arg1: i32) -> (i32, i32, i32) {
    %c0_i32 = arith.constant 0 : i32
    %c0_i32_0 = arith.constant 0 : i32
    %c0_i32_1 = arith.constant 0 : i32
    return %arg1, %c0_i32, %c0_i32_0 : i32, i32, i32
  }
  func.func @transform_10(%arg0: i32, %arg1: i32) -> (i32, i32, i32) {
    %c0_i32 = arith.constant 0 : i32
    %c0_i32_0 = arith.constant 0 : i32
    %c0_i32_1 = arith.constant 0 : i32
    return %arg1, %c0_i32, %c0_i32_0 : i32, i32, i32
  }
  func.func @transform_11(%arg0: i32, %arg1: i32) -> (i32, i32, i32) {
    %c0_i32 = arith.constant 0 : i32
    %c0_i32_0 = arith.constant 0 : i32
    %c0_i32_1 = arith.constant 0 : i32
    return %arg1, %c0_i32, %c0_i32_0 : i32, i32, i32
  }
  func.func @transform_12(%arg0: i32, %arg1: i32) -> (i32, i32, i32) {
    %c0_i32 = arith.constant 0 : i32
    %c0_i32_0 = arith.constant 0 : i32
    %c0_i32_1 = arith.constant 0 : i32
    return %arg1, %c0_i32, %c0_i32_0 : i32, i32, i32
  }
  func.func @transform_13(%arg0: i32, %arg1: i32) -> (i32, i32, i32) {
    %c0_i32 = arith.constant 0 : i32
    %c0_i32_0 = arith.constant 0 : i32
    %c0_i32_1 = arith.constant 0 : i32
    return %arg1, %c0_i32, %c0_i32_0 : i32, i32, i32
  }
  func.func @transform_14(%arg0: i32, %arg1: i32) -> (i32, i32, i32) {
    %c0_i32 = arith.constant 0 : i32
    %c0_i32_0 = arith.constant 0 : i32
    %c0_i32_1 = arith.constant 0 : i32
    return %arg1, %c0_i32, %c0_i32_0 : i32, i32, i32
  }
  func.func @transform_15(%arg0: i32, %arg1: i32) -> (i32, i32, i32) {
    %c0_i32 = arith.constant 0 : i32
    %c0_i32_0 = arith.constant 0 : i32
    %c0_i32_1 = arith.constant 0 : i32
    return %arg1, %c0_i32, %c0_i32_0 : i32, i32, i32
  }
  func.func @transform_16(%arg0: i32, %arg1: i32) -> (i32, i32, i32) {
    %c0_i32 = arith.constant 0 : i32
    %c0_i32_0 = arith.constant 0 : i32
    %c0_i32_1 = arith.constant 0 : i32
    return %arg1, %c0_i32, %c0_i32_0 : i32, i32, i32
  }
  func.func @transform_17(%arg0: i32, %arg1: i32) -> (i32, i32, i32) {
    %c0_i32 = arith.constant 0 : i32
    %c0_i32_0 = arith.constant 0 : i32
    %c0_i32_1 = arith.constant 0 : i32
    return %arg1, %c0_i32, %c0_i32_0 : i32, i32, i32
  }
  func.func @transform_18(%arg0: i32, %arg1: i32) -> (i32, i32) {
    %c0_i32 = arith.constant 0 : i32
    %c0_i32_0 = arith.constant 0 : i32
    %c0_i32_1 = arith.constant 0 : i32
    return %c0_i32, %c0_i32_0 : i32, i32
  }
  func.func @transform_19(%arg0: i32, %arg1: i32) -> (i32, i32) {
    %c0_i32 = arith.constant 0 : i32
    %c0_i32_0 = arith.constant 0 : i32
    %c0_i32_1 = arith.constant 0 : i32
    return %c0_i32, %c0_i32_0 : i32, i32
  }
  func.func @transform_20(%arg0: i32, %arg1: i32) -> (i32, i32, i32) {
    %c0_i32 = arith.constant 0 : i32
    %c0_i32_0 = arith.constant 0 : i32
    %c0_i32_1 = arith.constant 0 : i32
    return %arg0, %c0_i32, %c0_i32_0 : i32, i32, i32
  }
}

module attributes {stable_mosaic.version = 11 : i64} {
  func.func @_decoder_stack_kernel(%arg0: i32, %arg1: i32, %arg2: memref<1x4x4xf32, #tpu.memory_space<vmem>>, %arg3: memref<1x8x32xf32, #tpu.memory_space<vmem>>, %arg4: memref<4x4xf32, #tpu.memory_space<vmem>>, %arg5: memref<4x32xbf16, #tpu.memory_space<vmem>>, %arg6: memref<1x32xf32, #tpu.memory_space<vmem>>, %arg7: memref<4x32xf32, #tpu.memory_space<vmem>>, %arg8: memref<1x32xf32, #tpu.memory_space<vmem>>, %arg9: memref<1x32xf32, #tpu.memory_space<vmem>>, %arg10: memref<1x32x96xbf16, #tpu.memory_space<vmem>>, %arg11: memref<1x1x96xf32, #tpu.memory_space<vmem>>, %arg12: memref<1x32x32xbf16, #tpu.memory_space<vmem>>, %arg13: memref<1x1x32xf32, #tpu.memory_space<vmem>>, %arg14: memref<1x1x32xf32, #tpu.memory_space<vmem>>, %arg15: memref<1x1x32xf32, #tpu.memory_space<vmem>>, %arg16: memref<1x32x32xbf16, #tpu.memory_space<vmem>>, %arg17: memref<1x1x32xf32, #tpu.memory_space<vmem>>, %arg18: memref<1x32x64xbf16, #tpu.memory_space<vmem>>, %arg19: memref<1x1x64xf32, #tpu.memory_space<vmem>>, %arg20: memref<1x32x32xbf16, #tpu.memory_space<vmem>>, %arg21: memref<1x1x32xf32, #tpu.memory_space<vmem>>, %arg22: memref<1x1x32xf32, #tpu.memory_space<vmem>>, %arg23: memref<1x1x32xf32, #tpu.memory_space<vmem>>, %arg24: memref<1x32x64xbf16, #tpu.memory_space<vmem>>, %arg25: memref<1x1x64xf32, #tpu.memory_space<vmem>>, %arg26: memref<1x64x32xbf16, #tpu.memory_space<vmem>>, %arg27: memref<1x1x32xf32, #tpu.memory_space<vmem>>, %arg28: memref<1x1x32xf32, #tpu.memory_space<vmem>>, %arg29: memref<1x1x32xf32, #tpu.memory_space<vmem>>, %arg30: memref<1x32xf32, #tpu.memory_space<vmem>>, %arg31: memref<1x32xf32, #tpu.memory_space<vmem>>, %arg32: memref<32x4xbf16, #tpu.memory_space<vmem>>, %arg33: memref<1x4xf32, #tpu.memory_space<vmem>>, %arg34: memref<1x4x4xf32, #tpu.memory_space<vmem>>, %arg35: memref<4x32xf32, #tpu.memory_space<vmem>>) attributes {dimension_semantics = [#tpu.dimension_semantics<parallel>, #tpu.dimension_semantics<arbitrary>], iteration_bounds = array<i64: 2, 2>, scalar_prefetch = 0 : i64, scratch_operands = 1 : i64, tpu.core_type = #tpu.core_type<tc>, window_params = [{transform_indices = @transform_0, window_bounds = array<i64: 1, 4, 4>}, {transform_indices = @transform_1, window_bounds = array<i64: 1, 8, 32>}, {pipeline_mode = #tpu.pipeline_mode<synchronous>, transform_indices = @transform_2, window_bounds = array<i64: 4, 4>}, {pipeline_mode = #tpu.pipeline_mode<synchronous>, transform_indices = @transform_3, window_bounds = array<i64: 4, 32>}, {pipeline_mode = #tpu.pipeline_mode<synchronous>, transform_indices = @transform_4, window_bounds = array<i64: 1, 32>}, {pipeline_mode = #tpu.pipeline_mode<synchronous>, transform_indices = @transform_5, window_bounds = array<i64: 4, 32>}, {pipeline_mode = #tpu.pipeline_mode<synchronous>, transform_indices = @transform_6, window_bounds = array<i64: 1, 32>}, {pipeline_mode = #tpu.pipeline_mode<synchronous>, transform_indices = @transform_7, window_bounds = array<i64: 1, 32>}, {transform_indices = @transform_8, window_bounds = array<i64: 1, 32, 96>}, {transform_indices = @transform_9, window_bounds = array<i64: 1, 1, 96>}, {transform_indices = @transform_10, window_bounds = array<i64: 1, 32, 32>}, {transform_indices = @transform_11, window_bounds = array<i64: 1, 1, 32>}, {transform_indices = @transform_12, window_bounds = array<i64: 1, 1, 32>}, {transform_indices = @transform_13, window_bounds = array<i64: 1, 1, 32>}, {transform_indices = @transform_14, window_bounds = array<i64: 1, 32, 32>}, {transform_indices = @transform_15, window_bounds = array<i64: 1, 1, 32>}, {transform_indices = @transform_16, window_bounds = array<i64: 1, 32, 64>}, {transform_indices = @transform_17, window_bounds = array<i64: 1, 1, 64>}, {transform_indices = @transform_18, window_bounds = array<i64: 1, 32, 32>}, {transform_indices = @transform_19, window_bounds = array<i64: 1, 1, 32>}, {transform_indices = @transform_20, window_bounds = array<i64: 1, 1, 32>}, {transform_indices = @transform_21, window_bounds = array<i64: 1, 1, 32>}, {transform_indices = @transform_22, window_bounds = array<i64: 1, 32, 64>}, {transform_indices = @transform_23, window_bounds = array<i64: 1, 1, 64>}, {transform_indices = @transform_24, window_bounds = array<i64: 1, 64, 32>}, {transform_indices = @transform_25, window_bounds = array<i64: 1, 1, 32>}, {transform_indices = @transform_26, window_bounds = array<i64: 1, 1, 32>}, {transform_indices = @transform_27, window_bounds = array<i64: 1, 1, 32>}, {pipeline_mode = #tpu.pipeline_mode<synchronous>, transform_indices = @transform_28, window_bounds = array<i64: 1, 32>}, {pipeline_mode = #tpu.pipeline_mode<synchronous>, transform_indices = @transform_29, window_bounds = array<i64: 1, 32>}, {pipeline_mode = #tpu.pipeline_mode<synchronous>, transform_indices = @transform_30, window_bounds = array<i64: 32, 4>}, {pipeline_mode = #tpu.pipeline_mode<synchronous>, transform_indices = @transform_31, window_bounds = array<i64: 1, 4>}, {transform_indices = @transform_32, window_bounds = array<i64: 1, 4, 4>}]} {
    %c0_i32 = arith.constant 0 : i32
    %0 = arith.cmpi eq, %arg1, %c0_i32 : i32
    %1 = arith.extui %0 : i1 to i32
    %c0_i32_0 = arith.constant 0 : i32
    %2 = arith.cmpi ne, %1, %c0_i32_0 : i32
    scf.if %2 {
      %c0_132 = arith.constant 0 : index
      %c0_133 = arith.constant 0 : index
      %c0_134 = arith.constant 0 : index
      %311 = vector.load %arg2[%c0_132, %c0_133, %c0_134] : memref<1x4x4xf32, #tpu.memory_space<vmem>>, vector<1x4x4xf32>
      %312 = vector.shape_cast %311 : vector<1x4x4xf32> to vector<4x4xf32>
      %c0_135 = arith.constant 0 : index
      %c0_136 = arith.constant 0 : index
      %313 = vector.load %arg5[%c0_135, %c0_136] : memref<4x32xbf16, #tpu.memory_space<vmem>>, vector<4x32xbf16>
      %c0_137 = arith.constant 0 : index
      %c0_138 = arith.constant 0 : index
      %314 = vector.load %arg6[%c0_137, %c0_138] : memref<1x32xf32, #tpu.memory_space<vmem>>, vector<1x32xf32>
      %c0_139 = arith.constant 0 : index
      %c0_140 = arith.constant 0 : index
      %315 = vector.load %arg7[%c0_139, %c0_140] : memref<4x32xf32, #tpu.memory_space<vmem>>, vector<4x32xf32>
      %c0_141 = arith.constant 0 : index
      %c0_142 = arith.constant 0 : index
      %316 = vector.load %arg8[%c0_141, %c0_142] : memref<1x32xf32, #tpu.memory_space<vmem>>, vector<1x32xf32>
      %c0_143 = arith.constant 0 : index
      %c0_144 = arith.constant 0 : index
      %317 = vector.load %arg9[%c0_143, %c0_144] : memref<1x32xf32, #tpu.memory_space<vmem>>, vector<1x32xf32>
      %318 = arith.truncf %312 : vector<4x4xf32> to vector<4x4xbf16>
      %cst_145 = arith.constant dense<0.000000e+00> : vector<4x32xf32>
      %319 = tpu.matmul %318, %313, %cst_145 {dimension_numbers = #tpu.dot_dimension_numbers<[1], [0], [0], [1], [0, 0, 1, 1], [], []>} : vector<4x4xbf16>, vector<4x32xbf16>, vector<4x32xf32> -> vector<4x32xf32>
      %320 = vector.broadcast %314 : vector<1x32xf32> to vector<4x32xf32>
      %321 = arith.addf %319, %320 : vector<4x32xf32>
      %cst_146 = arith.constant 5.65685415 : f32
      %322 = vector.broadcast %cst_146 : f32 to vector<4x32xf32>
      %323 = arith.mulf %321, %322 : vector<4x32xf32>
      %324 = arith.addf %323, %315 : vector<4x32xf32>
      %cst_147 = arith.constant dense<0.000000e+00> : vector<4xf32>
      %325 = vector.multi_reduction <add>, %324, %cst_147 [1] : vector<4x32xf32> to vector<4xf32>
      %326 = vector.shape_cast %325 : vector<4xf32> to vector<4x1xf32>
      %cst_148 = arith.constant 3.200000e+01 : f32
      %327 = vector.broadcast %cst_148 : f32 to vector<4x1xf32>
      %328 = arith.divf %326, %327 : vector<4x1xf32>
      %329 = vector.broadcast %328 : vector<4x1xf32> to vector<4x32xf32>
      %330 = arith.subf %324, %329 : vector<4x32xf32>
      %331 = arith.mulf %330, %330 : vector<4x32xf32>
      %cst_149 = arith.constant dense<0.000000e+00> : vector<4xf32>
      %332 = vector.multi_reduction <add>, %331, %cst_149 [1] : vector<4x32xf32> to vector<4xf32>
      %333 = vector.shape_cast %332 : vector<4xf32> to vector<4x1xf32>
      %cst_150 = arith.constant 3.200000e+01 : f32
      %334 = vector.broadcast %cst_150 : f32 to vector<4x1xf32>
      %335 = arith.divf %333, %334 : vector<4x1xf32>
      %336 = vector.broadcast %328 : vector<4x1xf32> to vector<4x32xf32>
      %337 = arith.subf %324, %336 : vector<4x32xf32>
      %cst_151 = arith.constant 9.99999974E-6 : f32
      %338 = vector.broadcast %cst_151 : f32 to vector<4x1xf32>
      %339 = arith.addf %335, %338 : vector<4x1xf32>
      %340 = math.rsqrt %339 : vector<4x1xf32>
      %341 = vector.broadcast %340 : vector<4x1xf32> to vector<4x32xf32>
      %342 = arith.mulf %337, %341 : vector<4x32xf32>
      %343 = vector.broadcast %316 : vector<1x32xf32> to vector<4x32xf32>
      %344 = arith.mulf %342, %343 : vector<4x32xf32>
      %345 = vector.broadcast %317 : vector<1x32xf32> to vector<4x32xf32>
      %346 = arith.addf %344, %345 : vector<4x32xf32>
      %c0_152 = arith.constant 0 : index
      %c0_153 = arith.constant 0 : index
      %347 = vector.load %arg35[%c0_152, %c0_153] : memref<4x32xf32, #tpu.memory_space<vmem>>, vector<4x32xf32>
      tpu.vector_store %arg35[%c0_152, %c0_153], %346 {strides = array<i32>} : memref<4x32xf32, #tpu.memory_space<vmem>>, vector<4x32xf32>,
    } else {
    }
    %c0 = arith.constant 0 : index
    %c0_1 = arith.constant 0 : index
    %3 = vector.load %arg35[%c0, %c0_1] : memref<4x32xf32, #tpu.memory_space<vmem>>, vector<4x32xf32>
    %c0_2 = arith.constant 0 : index
    %c0_3 = arith.constant 0 : index
    %c0_4 = arith.constant 0 : index
    %4 = vector.load %arg3[%c0_2, %c0_3, %c0_4] : memref<1x8x32xf32, #tpu.memory_space<vmem>>, vector<1x8x32xf32>
    %5 = vector.shape_cast %4 : vector<1x8x32xf32> to vector<8x32xf32>
    %c0_5 = arith.constant 0 : index
    %c0_6 = arith.constant 0 : index
    %c0_7 = arith.constant 0 : index
    %6 = vector.load %arg10[%c0_5, %c0_6, %c0_7] : memref<1x32x96xbf16, #tpu.memory_space<vmem>>, vector<1x32x96xbf16>
    %7 = vector.shape_cast %6 : vector<1x32x96xbf16> to vector<32x96xbf16>
    %c0_8 = arith.constant 0 : index
    %c0_9 = arith.constant 0 : index
    %c0_10 = arith.constant 0 : index
    %8 = vector.load %arg11[%c0_8, %c0_9, %c0_10] : memref<1x1x96xf32, #tpu.memory_space<vmem>>, vector<1x1x96xf32>
    %9 = vector.shape_cast %8 : vector<1x1x96xf32> to vector<1x96xf32>
    %10 = arith.truncf %3 : vector<4x32xf32> to vector<4x32xbf16>
    %cst = arith.constant dense<0.000000e+00> : vector<4x96xf32>
    %11 = tpu.matmul %10, %7, %cst {dimension_numbers = #tpu.dot_dimension_numbers<[1], [0], [0], [1], [0, 0, 1, 1], [], []>} : vector<4x32xbf16>, vector<32x96xbf16>, vector<4x96xf32> -> vector<4x96xf32>
    %12 = vector.broadcast %9 : vector<1x96xf32> to vector<4x96xf32>
    %13 = arith.addf %11, %12 : vector<4x96xf32>
    %14 = vector.extract_strided_slice %13 {offsets = [0, 0], sizes = [4, 32], strides = [1, 1]} : vector<4x96xf32> to vector<4x32xf32>
    %15 = vector.extract_strided_slice %13 {offsets = [0, 32], sizes = [4, 32], strides = [1, 1]} : vector<4x96xf32> to vector<4x32xf32>
    %16 = vector.extract_strided_slice %13 {offsets = [0, 64], sizes = [4, 32], strides = [1, 1]} : vector<4x96xf32> to vector<4x32xf32>
    %c0_11 = arith.constant 0 : index
    %c0_12 = arith.constant 0 : index
    %17 = vector.load %arg4[%c0_11, %c0_12] : memref<4x4xf32, #tpu.memory_space<vmem>>, vector<4x4xf32>
    %18 = arith.truncf %14 : vector<4x32xf32> to vector<4x32xbf16>
    %19 = arith.truncf %15 : vector<4x32xf32> to vector<4x32xbf16>
    %20 = arith.truncf %16 : vector<4x32xf32> to vector<4x32xbf16>
    %21 = vector.extract_strided_slice %18 {offsets = [0, 0], sizes = [4, 8], strides = [1, 1]} : vector<4x32xbf16> to vector<4x8xbf16>
    %22 = vector.extract_strided_slice %19 {offsets = [0, 0], sizes = [4, 8], strides = [1, 1]} : vector<4x32xbf16> to vector<4x8xbf16>
    %cst_13 = arith.constant dense<0.000000e+00> : vector<4x4xf32>
    %23 = tpu.matmul %21, %22, %cst_13 {dimension_numbers = #tpu.dot_dimension_numbers<[1], [1], [0], [0], [0, 0, 1, 0], [], []>} : vector<4x8xbf16>, vector<4x8xbf16>, vector<4x4xf32> -> vector<4x4xf32>
    %cst_14 = arith.constant 0.353553385 : f32
    %24 = vector.broadcast %cst_14 : f32 to vector<4x4xf32>
    %25 = arith.mulf %23, %24 : vector<4x4xf32>
    %26 = arith.addf %25, %17 : vector<4x4xf32>
    %cst_15 = arith.constant dense<0xFF800000> : vector<4xf32>
    %27 = vector.multi_reduction <maximumf>, %26, %cst_15 [1] : vector<4x4xf32> to vector<4xf32>
    %28 = vector.shape_cast %27 : vector<4xf32> to vector<4x1xf32>
    %29 = vector.broadcast %28 : vector<4x1xf32> to vector<4x4xf32>
    %30 = arith.subf %26, %29 : vector<4x4xf32>
    %31 = math.exp %30 : vector<4x4xf32>
    %cst_16 = arith.constant dense<0.000000e+00> : vector<4xf32>
    %32 = vector.multi_reduction <add>, %31, %cst_16 [1] : vector<4x4xf32> to vector<4xf32>
    %33 = vector.shape_cast %32 : vector<4xf32> to vector<4x1xf32>
    %34 = tpu.reciprocal %33 {approx = true} : vector<4x1xf32> -> vector<4x1xf32>
    %35 = vector.broadcast %34 : vector<4x1xf32> to vector<4x4xf32>
    %36 = arith.mulf %31, %35 : vector<4x4xf32>
    %37 = arith.truncf %36 : vector<4x4xf32> to vector<4x4xbf16>
    %38 = vector.extract_strided_slice %20 {offsets = [0, 0], sizes = [4, 8], strides = [1, 1]} : vector<4x32xbf16> to vector<4x8xbf16>
    %cst_17 = arith.constant dense<0.000000e+00> : vector<4x8xf32>
    %39 = tpu.matmul %37, %38, %cst_17 {dimension_numbers = #tpu.dot_dimension_numbers<[1], [0], [0], [1], [0, 0, 1, 1], [], []>} : vector<4x4xbf16>, vector<4x8xbf16>, vector<4x8xf32> -> vector<4x8xf32>
    %40 = vector.extract_strided_slice %18 {offsets = [0, 8], sizes = [4, 8], strides = [1, 1]} : vector<4x32xbf16> to vector<4x8xbf16>
    %41 = vector.extract_strided_slice %19 {offsets = [0, 8], sizes = [4, 8], strides = [1, 1]} : vector<4x32xbf16> to vector<4x8xbf16>
    %cst_18 = arith.constant dense<0.000000e+00> : vector<4x4xf32>
    %42 = tpu.matmul %40, %41, %cst_18 {dimension_numbers = #tpu.dot_dimension_numbers<[1], [1], [0], [0], [0, 0, 1, 0], [], []>} : vector<4x8xbf16>, vector<4x8xbf16>, vector<4x4xf32> -> vector<4x4xf32>
    %cst_19 = arith.constant 0.353553385 : f32
    %43 = vector.broadcast %cst_19 : f32 to vector<4x4xf32>
    %44 = arith.mulf %42, %43 : vector<4x4xf32>
    %45 = arith.addf %44, %17 : vector<4x4xf32>
    %cst_20 = arith.constant dense<0xFF800000> : vector<4xf32>
    %46 = vector.multi_reduction <maximumf>, %45, %cst_20 [1] : vector<4x4xf32> to vector<4xf32>
    %47 = vector.shape_cast %46 : vector<4xf32> to vector<4x1xf32>
    %48 = vector.broadcast %47 : vector<4x1xf32> to vector<4x4xf32>
    %49 = arith.subf %45, %48 : vector<4x4xf32>
    %50 = math.exp %49 : vector<4x4xf32>
    %cst_21 = arith.constant dense<0.000000e+00> : vector<4xf32>
    %51 = vector.multi_reduction <add>, %50, %cst_21 [1] : vector<4x4xf32> to vector<4xf32>
    %52 = vector.shape_cast %51 : vector<4xf32> to vector<4x1xf32>
    %53 = tpu.reciprocal %52 {approx = true} : vector<4x1xf32> -> vector<4x1xf32>
    %54 = vector.broadcast %53 : vector<4x1xf32> to vector<4x4xf32>
    %55 = arith.mulf %50, %54 : vector<4x4xf32>
    %56 = arith.truncf %55 : vector<4x4xf32> to vector<4x4xbf16>
    %57 = vector.extract_strided_slice %20 {offsets = [0, 8], sizes = [4, 8], strides = [1, 1]} : vector<4x32xbf16> to vector<4x8xbf16>
    %cst_22 = arith.constant dense<0.000000e+00> : vector<4x8xf32>
    %58 = tpu.matmul %56, %57, %cst_22 {dimension_numbers = #tpu.dot_dimension_numbers<[1], [0], [0], [1], [0, 0, 1, 1], [], []>} : vector<4x4xbf16>, vector<4x8xbf16>, vector<4x8xf32> -> vector<4x8xf32>
    %59 = vector.extract_strided_slice %18 {offsets = [0, 16], sizes = [4, 8], strides = [1, 1]} : vector<4x32xbf16> to vector<4x8xbf16>
    %60 = vector.extract_strided_slice %19 {offsets = [0, 16], sizes = [4, 8], strides = [1, 1]} : vector<4x32xbf16> to vector<4x8xbf16>
    %cst_23 = arith.constant dense<0.000000e+00> : vector<4x4xf32>
    %61 = tpu.matmul %59, %60, %cst_23 {dimension_numbers = #tpu.dot_dimension_numbers<[1], [1], [0], [0], [0, 0, 1, 0], [], []>} : vector<4x8xbf16>, vector<4x8xbf16>, vector<4x4xf32> -> vector<4x4xf32>
    %cst_24 = arith.constant 0.353553385 : f32
    %62 = vector.broadcast %cst_24 : f32 to vector<4x4xf32>
    %63 = arith.mulf %61, %62 : vector<4x4xf32>
    %64 = arith.addf %63, %17 : vector<4x4xf32>
    %cst_25 = arith.constant dense<0xFF800000> : vector<4xf32>
    %65 = vector.multi_reduction <maximumf>, %64, %cst_25 [1] : vector<4x4xf32> to vector<4xf32>
    %66 = vector.shape_cast %65 : vector<4xf32> to vector<4x1xf32>
    %67 = vector.broadcast %66 : vector<4x1xf32> to vector<4x4xf32>
    %68 = arith.subf %64, %67 : vector<4x4xf32>
    %69 = math.exp %68 : vector<4x4xf32>
    %cst_26 = arith.constant dense<0.000000e+00> : vector<4xf32>
    %70 = vector.multi_reduction <add>, %69, %cst_26 [1] : vector<4x4xf32> to vector<4xf32>
    %71 = vector.shape_cast %70 : vector<4xf32> to vector<4x1xf32>
    %72 = tpu.reciprocal %71 {approx = true} : vector<4x1xf32> -> vector<4x1xf32>
    %73 = vector.broadcast %72 : vector<4x1xf32> to vector<4x4xf32>
    %74 = arith.mulf %69, %73 : vector<4x4xf32>
    %75 = arith.truncf %74 : vector<4x4xf32> to vector<4x4xbf16>
    %76 = vector.extract_strided_slice %20 {offsets = [0, 16], sizes = [4, 8], strides = [1, 1]} : vector<4x32xbf16> to vector<4x8xbf16>
    %cst_27 = arith.constant dense<0.000000e+00> : vector<4x8xf32>
    %77 = tpu.matmul %75, %76, %cst_27 {dimension_numbers = #tpu.dot_dimension_numbers<[1], [0], [0], [1], [0, 0, 1, 1], [], []>} : vector<4x4xbf16>, vector<4x8xbf16>, vector<4x8xf32> -> vector<4x8xf32>
    %78 = vector.extract_strided_slice %18 {offsets = [0, 24], sizes = [4, 8], strides = [1, 1]} : vector<4x32xbf16> to vector<4x8xbf16>
    %79 = vector.extract_strided_slice %19 {offsets = [0, 24], sizes = [4, 8], strides = [1, 1]} : vector<4x32xbf16> to vector<4x8xbf16>
    %cst_28 = arith.constant dense<0.000000e+00> : vector<4x4xf32>
    %80 = tpu.matmul %78, %79, %cst_28 {dimension_numbers = #tpu.dot_dimension_numbers<[1], [1], [0], [0], [0, 0, 1, 0], [], []>} : vector<4x8xbf16>, vector<4x8xbf16>, vector<4x4xf32> -> vector<4x4xf32>
    %cst_29 = arith.constant 0.353553385 : f32
    %81 = vector.broadcast %cst_29 : f32 to vector<4x4xf32>
    %82 = arith.mulf %80, %81 : vector<4x4xf32>
    %83 = arith.addf %82, %17 : vector<4x4xf32>
    %cst_30 = arith.constant dense<0xFF800000> : vector<4xf32>
    %84 = vector.multi_reduction <maximumf>, %83, %cst_30 [1] : vector<4x4xf32> to vector<4xf32>
    %85 = vector.shape_cast %84 : vector<4xf32> to vector<4x1xf32>
    %86 = vector.broadcast %85 : vector<4x1xf32> to vector<4x4xf32>
    %87 = arith.subf %83, %86 : vector<4x4xf32>
    %88 = math.exp %87 : vector<4x4xf32>
    %cst_31 = arith.constant dense<0.000000e+00> : vector<4xf32>
    %89 = vector.multi_reduction <add>, %88, %cst_31 [1] : vector<4x4xf32> to vector<4xf32>
    %90 = vector.shape_cast %89 : vector<4xf32> to vector<4x1xf32>
    %91 = tpu.reciprocal %90 {approx = true} : vector<4x1xf32> -> vector<4x1xf32>
    %92 = vector.broadcast %91 : vector<4x1xf32> to vector<4x4xf32>
    %93 = arith.mulf %88, %92 : vector<4x4xf32>
    %94 = arith.truncf %93 : vector<4x4xf32> to vector<4x4xbf16>
    %95 = vector.extract_strided_slice %20 {offsets = [0, 24], sizes = [4, 8], strides = [1, 1]} : vector<4x32xbf16> to vector<4x8xbf16>
    %cst_32 = arith.constant dense<0.000000e+00> : vector<4x8xf32>
    %96 = tpu.matmul %94, %95, %cst_32 {dimension_numbers = #tpu.dot_dimension_numbers<[1], [0], [0], [1], [0, 0, 1, 1], [], []>} : vector<4x4xbf16>, vector<4x8xbf16>, vector<4x8xf32> -> vector<4x8xf32>
    %97 = tpu.concatenate %39, %58, %77, %96 in 1 : vector<4x8xf32>, vector<4x8xf32>, vector<4x8xf32>, vector<4x8xf32> -> vector<4x32xf32>
    %c0_33 = arith.constant 0 : index
    %c0_34 = arith.constant 0 : index
    %c0_35 = arith.constant 0 : index
    %98 = vector.load %arg12[%c0_33, %c0_34, %c0_35] : memref<1x32x32xbf16, #tpu.memory_space<vmem>>, vector<1x32x32xbf16>
    %99 = vector.shape_cast %98 : vector<1x32x32xbf16> to vector<32x32xbf16>
    %c0_36 = arith.constant 0 : index
    %c0_37 = arith.constant 0 : index
    %c0_38 = arith.constant 0 : index
    %100 = vector.load %arg13[%c0_36, %c0_37, %c0_38] : memref<1x1x32xf32, #tpu.memory_space<vmem>>, vector<1x1x32xf32>
    %101 = vector.shape_cast %100 : vector<1x1x32xf32> to vector<1x32xf32>
    %102 = arith.truncf %97 : vector<4x32xf32> to vector<4x32xbf16>
    %cst_39 = arith.constant dense<0.000000e+00> : vector<4x32xf32>
    %103 = tpu.matmul %102, %99, %cst_39 {dimension_numbers = #tpu.dot_dimension_numbers<[1], [0], [0], [1], [0, 0, 1, 1], [], []>} : vector<4x32xbf16>, vector<32x32xbf16>, vector<4x32xf32> -> vector<4x32xf32>
    %104 = vector.broadcast %101 : vector<1x32xf32> to vector<4x32xf32>
    %105 = arith.addf %103, %104 : vector<4x32xf32>
    %106 = arith.addf %3, %105 : vector<4x32xf32>
    %c0_40 = arith.constant 0 : index
    %c0_41 = arith.constant 0 : index
    %c0_42 = arith.constant 0 : index
    %107 = vector.load %arg14[%c0_40, %c0_41, %c0_42] : memref<1x1x32xf32, #tpu.memory_space<vmem>>, vector<1x1x32xf32>
    %108 = vector.shape_cast %107 : vector<1x1x32xf32> to vector<1x32xf32>
    %c0_43 = arith.constant 0 : index
    %c0_44 = arith.constant 0 : index
    %c0_45 = arith.constant 0 : index
    %109 = vector.load %arg15[%c0_43, %c0_44, %c0_45] : memref<1x1x32xf32, #tpu.memory_space<vmem>>, vector<1x1x32xf32>
    %110 = vector.shape_cast %109 : vector<1x1x32xf32> to vector<1x32xf32>
    %cst_46 = arith.constant dense<0.000000e+00> : vector<4xf32>
    %111 = vector.multi_reduction <add>, %106, %cst_46 [1] : vector<4x32xf32> to vector<4xf32>
    %112 = vector.shape_cast %111 : vector<4xf32> to vector<4x1xf32>
    %cst_47 = arith.constant 3.200000e+01 : f32
    %113 = vector.broadcast %cst_47 : f32 to vector<4x1xf32>
    %114 = arith.divf %112, %113 : vector<4x1xf32>
    %115 = vector.broadcast %114 : vector<4x1xf32> to vector<4x32xf32>
    %116 = arith.subf %106, %115 : vector<4x32xf32>
    %117 = arith.mulf %116, %116 : vector<4x32xf32>
    %cst_48 = arith.constant dense<0.000000e+00> : vector<4xf32>
    %118 = vector.multi_reduction <add>, %117, %cst_48 [1] : vector<4x32xf32> to vector<4xf32>
    %119 = vector.shape_cast %118 : vector<4xf32> to vector<4x1xf32>
    %cst_49 = arith.constant 3.200000e+01 : f32
    %120 = vector.broadcast %cst_49 : f32 to vector<4x1xf32>
    %121 = arith.divf %119, %120 : vector<4x1xf32>
    %122 = vector.broadcast %114 : vector<4x1xf32> to vector<4x32xf32>
    %123 = arith.subf %106, %122 : vector<4x32xf32>
    %cst_50 = arith.constant 9.99999974E-6 : f32
    %124 = vector.broadcast %cst_50 : f32 to vector<4x1xf32>
    %125 = arith.addf %121, %124 : vector<4x1xf32>
    %126 = math.rsqrt %125 : vector<4x1xf32>
    %127 = vector.broadcast %126 : vector<4x1xf32> to vector<4x32xf32>
    %128 = arith.mulf %123, %127 : vector<4x32xf32>
    %129 = vector.broadcast %108 : vector<1x32xf32> to vector<4x32xf32>
    %130 = arith.mulf %128, %129 : vector<4x32xf32>
    %131 = vector.broadcast %110 : vector<1x32xf32> to vector<4x32xf32>
    %132 = arith.addf %130, %131 : vector<4x32xf32>
    %c0_51 = arith.constant 0 : index
    %c0_52 = arith.constant 0 : index
    %c0_53 = arith.constant 0 : index
    %133 = vector.load %arg16[%c0_51, %c0_52, %c0_53] : memref<1x32x32xbf16, #tpu.memory_space<vmem>>, vector<1x32x32xbf16>
    %134 = vector.shape_cast %133 : vector<1x32x32xbf16> to vector<32x32xbf16>
    %c0_54 = arith.constant 0 : index
    %c0_55 = arith.constant 0 : index
    %c0_56 = arith.constant 0 : index
    %135 = vector.load %arg17[%c0_54, %c0_55, %c0_56] : memref<1x1x32xf32, #tpu.memory_space<vmem>>, vector<1x1x32xf32>
    %136 = vector.shape_cast %135 : vector<1x1x32xf32> to vector<1x32xf32>
    %137 = arith.truncf %132 : vector<4x32xf32> to vector<4x32xbf16>
    %cst_57 = arith.constant dense<0.000000e+00> : vector<4x32xf32>
    %138 = tpu.matmul %137, %134, %cst_57 {dimension_numbers = #tpu.dot_dimension_numbers<[1], [0], [0], [1], [0, 0, 1, 1], [], []>} : vector<4x32xbf16>, vector<32x32xbf16>, vector<4x32xf32> -> vector<4x32xf32>
    %139 = vector.broadcast %136 : vector<1x32xf32> to vector<4x32xf32>
    %140 = arith.addf %138, %139 : vector<4x32xf32>
    %c0_58 = arith.constant 0 : index
    %c0_59 = arith.constant 0 : index
    %c0_60 = arith.constant 0 : index
    %141 = vector.load %arg18[%c0_58, %c0_59, %c0_60] : memref<1x32x64xbf16, #tpu.memory_space<vmem>>, vector<1x32x64xbf16>
    %142 = vector.shape_cast %141 : vector<1x32x64xbf16> to vector<32x64xbf16>
    %c0_61 = arith.constant 0 : index
    %c0_62 = arith.constant 0 : index
    %c0_63 = arith.constant 0 : index
    %143 = vector.load %arg19[%c0_61, %c0_62, %c0_63] : memref<1x1x64xf32, #tpu.memory_space<vmem>>, vector<1x1x64xf32>
    %144 = vector.shape_cast %143 : vector<1x1x64xf32> to vector<1x64xf32>
    %145 = arith.truncf %5 : vector<8x32xf32> to vector<8x32xbf16>
    %cst_64 = arith.constant dense<0.000000e+00> : vector<8x64xf32>
    %146 = tpu.matmul %145, %142, %cst_64 {dimension_numbers = #tpu.dot_dimension_numbers<[1], [0], [0], [1], [0, 0, 1, 1], [], []>} : vector<8x32xbf16>, vector<32x64xbf16>, vector<8x64xf32> -> vector<8x64xf32>
    %147 = vector.broadcast %144 : vector<1x64xf32> to vector<8x64xf32>
    %148 = arith.addf %146, %147 : vector<8x64xf32>
    %149 = vector.extract_strided_slice %148 {offsets = [0, 0], sizes = [8, 32], strides = [1, 1]} : vector<8x64xf32> to vector<8x32xf32>
    %150 = vector.extract_strided_slice %148 {offsets = [0, 32], sizes = [8, 32], strides = [1, 1]} : vector<8x64xf32> to vector<8x32xf32>
    %151 = arith.truncf %140 : vector<4x32xf32> to vector<4x32xbf16>
    %152 = arith.truncf %149 : vector<8x32xf32> to vector<8x32xbf16>
    %153 = arith.truncf %150 : vector<8x32xf32> to vector<8x32xbf16>
    %154 = vector.extract_strided_slice %151 {offsets = [0, 0], sizes = [4, 8], strides = [1, 1]} : vector<4x32xbf16> to vector<4x8xbf16>
    %155 = vector.extract_strided_slice %152 {offsets = [0, 0], sizes = [8, 8], strides = [1, 1]} : vector<8x32xbf16> to vector<8x8xbf16>
    %cst_65 = arith.constant dense<0.000000e+00> : vector<4x8xf32>
    %156 = tpu.matmul %154, %155, %cst_65 {dimension_numbers = #tpu.dot_dimension_numbers<[1], [1], [0], [0], [0, 0, 1, 0], [], []>} : vector<4x8xbf16>, vector<8x8xbf16>, vector<4x8xf32> -> vector<4x8xf32>
    %cst_66 = arith.constant 0.353553385 : f32
    %157 = vector.broadcast %cst_66 : f32 to vector<4x8xf32>
    %158 = arith.mulf %156, %157 : vector<4x8xf32>
    %cst_67 = arith.constant dense<0xFF800000> : vector<4xf32>
    %159 = vector.multi_reduction <maximumf>, %158, %cst_67 [1] : vector<4x8xf32> to vector<4xf32>
    %160 = vector.shape_cast %159 : vector<4xf32> to vector<4x1xf32>
    %161 = vector.broadcast %160 : vector<4x1xf32> to vector<4x8xf32>
    %162 = arith.subf %158, %161 : vector<4x8xf32>
    %163 = math.exp %162 : vector<4x8xf32>
    %cst_68 = arith.constant dense<0.000000e+00> : vector<4xf32>
    %164 = vector.multi_reduction <add>, %163, %cst_68 [1] : vector<4x8xf32> to vector<4xf32>
    %165 = vector.shape_cast %164 : vector<4xf32> to vector<4x1xf32>
    %166 = tpu.reciprocal %165 {approx = true} : vector<4x1xf32> -> vector<4x1xf32>
    %167 = vector.broadcast %166 : vector<4x1xf32> to vector<4x8xf32>
    %168 = arith.mulf %163, %167 : vector<4x8xf32>
    %169 = arith.truncf %168 : vector<4x8xf32> to vector<4x8xbf16>
    %170 = vector.extract_strided_slice %153 {offsets = [0, 0], sizes = [8, 8], strides = [1, 1]} : vector<8x32xbf16> to vector<8x8xbf16>
    %cst_69 = arith.constant dense<0.000000e+00> : vector<4x8xf32>
    %171 = tpu.matmul %169, %170, %cst_69 {dimension_numbers = #tpu.dot_dimension_numbers<[1], [0], [0], [1], [0, 0, 1, 1], [], []>} : vector<4x8xbf16>, vector<8x8xbf16>, vector<4x8xf32> -> vector<4x8xf32>
    %172 = vector.extract_strided_slice %151 {offsets = [0, 8], sizes = [4, 8], strides = [1, 1]} : vector<4x32xbf16> to vector<4x8xbf16>
    %173 = vector.extract_strided_slice %152 {offsets = [0, 8], sizes = [8, 8], strides = [1, 1]} : vector<8x32xbf16> to vector<8x8xbf16>
    %cst_70 = arith.constant dense<0.000000e+00> : vector<4x8xf32>
    %174 = tpu.matmul %172, %173, %cst_70 {dimension_numbers = #tpu.dot_dimension_numbers<[1], [1], [0], [0], [0, 0, 1, 0], [], []>} : vector<4x8xbf16>, vector<8x8xbf16>, vector<4x8xf32> -> vector<4x8xf32>
    %cst_71 = arith.constant 0.353553385 : f32
    %175 = vector.broadcast %cst_71 : f32 to vector<4x8xf32>
    %176 = arith.mulf %174, %175 : vector<4x8xf32>
    %cst_72 = arith.constant dense<0xFF800000> : vector<4xf32>
    %177 = vector.multi_reduction <maximumf>, %176, %cst_72 [1] : vector<4x8xf32> to vector<4xf32>
    %178 = vector.shape_cast %177 : vector<4xf32> to vector<4x1xf32>
    %179 = vector.broadcast %178 : vector<4x1xf32> to vector<4x8xf32>
    %180 = arith.subf %176, %179 : vector<4x8xf32>
    %181 = math.exp %180 : vector<4x8xf32>
    %cst_73 = arith.constant dense<0.000000e+00> : vector<4xf32>
    %182 = vector.multi_reduction <add>, %181, %cst_73 [1] : vector<4x8xf32> to vector<4xf32>
    %183 = vector.shape_cast %182 : vector<4xf32> to vector<4x1xf32>
    %184 = tpu.reciprocal %183 {approx = true} : vector<4x1xf32> -> vector<4x1xf32>
    %185 = vector.broadcast %184 : vector<4x1xf32> to vector<4x8xf32>
    %186 = arith.mulf %181, %185 : vector<4x8xf32>
    %187 = arith.truncf %186 : vector<4x8xf32> to vector<4x8xbf16>
    %188 = vector.extract_strided_slice %153 {offsets = [0, 8], sizes = [8, 8], strides = [1, 1]} : vector<8x32xbf16> to vector<8x8xbf16>
    %cst_74 = arith.constant dense<0.000000e+00> : vector<4x8xf32>
    %189 = tpu.matmul %187, %188, %cst_74 {dimension_numbers = #tpu.dot_dimension_numbers<[1], [0], [0], [1], [0, 0, 1, 1], [], []>} : vector<4x8xbf16>, vector<8x8xbf16>, vector<4x8xf32> -> vector<4x8xf32>
    %190 = vector.extract_strided_slice %151 {offsets = [0, 16], sizes = [4, 8], strides = [1, 1]} : vector<4x32xbf16> to vector<4x8xbf16>
    %191 = vector.extract_strided_slice %152 {offsets = [0, 16], sizes = [8, 8], strides = [1, 1]} : vector<8x32xbf16> to vector<8x8xbf16>
    %cst_75 = arith.constant dense<0.000000e+00> : vector<4x8xf32>
    %192 = tpu.matmul %190, %191, %cst_75 {dimension_numbers = #tpu.dot_dimension_numbers<[1], [1], [0], [0], [0, 0, 1, 0], [], []>} : vector<4x8xbf16>, vector<8x8xbf16>, vector<4x8xf32> -> vector<4x8xf32>
    %cst_76 = arith.constant 0.353553385 : f32
    %193 = vector.broadcast %cst_76 : f32 to vector<4x8xf32>
    %194 = arith.mulf %192, %193 : vector<4x8xf32>
    %cst_77 = arith.constant dense<0xFF800000> : vector<4xf32>
    %195 = vector.multi_reduction <maximumf>, %194, %cst_77 [1] : vector<4x8xf32> to vector<4xf32>
    %196 = vector.shape_cast %195 : vector<4xf32> to vector<4x1xf32>
    %197 = vector.broadcast %196 : vector<4x1xf32> to vector<4x8xf32>
    %198 = arith.subf %194, %197 : vector<4x8xf32>
    %199 = math.exp %198 : vector<4x8xf32>
    %cst_78 = arith.constant dense<0.000000e+00> : vector<4xf32>
    %200 = vector.multi_reduction <add>, %199, %cst_78 [1] : vector<4x8xf32> to vector<4xf32>
    %201 = vector.shape_cast %200 : vector<4xf32> to vector<4x1xf32>
    %202 = tpu.reciprocal %201 {approx = true} : vector<4x1xf32> -> vector<4x1xf32>
    %203 = vector.broadcast %202 : vector<4x1xf32> to vector<4x8xf32>
    %204 = arith.mulf %199, %203 : vector<4x8xf32>
    %205 = arith.truncf %204 : vector<4x8xf32> to vector<4x8xbf16>
    %206 = vector.extract_strided_slice %153 {offsets = [0, 16], sizes = [8, 8], strides = [1, 1]} : vector<8x32xbf16> to vector<8x8xbf16>
    %cst_79 = arith.constant dense<0.000000e+00> : vector<4x8xf32>
    %207 = tpu.matmul %205, %206, %cst_79 {dimension_numbers = #tpu.dot_dimension_numbers<[1], [0], [0], [1], [0, 0, 1, 1], [], []>} : vector<4x8xbf16>, vector<8x8xbf16>, vector<4x8xf32> -> vector<4x8xf32>
    %208 = vector.extract_strided_slice %151 {offsets = [0, 24], sizes = [4, 8], strides = [1, 1]} : vector<4x32xbf16> to vector<4x8xbf16>
    %209 = vector.extract_strided_slice %152 {offsets = [0, 24], sizes = [8, 8], strides = [1, 1]} : vector<8x32xbf16> to vector<8x8xbf16>
    %cst_80 = arith.constant dense<0.000000e+00> : vector<4x8xf32>
    %210 = tpu.matmul %208, %209, %cst_80 {dimension_numbers = #tpu.dot_dimension_numbers<[1], [1], [0], [0], [0, 0, 1, 0], [], []>} : vector<4x8xbf16>, vector<8x8xbf16>, vector<4x8xf32> -> vector<4x8xf32>
    %cst_81 = arith.constant 0.353553385 : f32
    %211 = vector.broadcast %cst_81 : f32 to vector<4x8xf32>
    %212 = arith.mulf %210, %211 : vector<4x8xf32>
    %cst_82 = arith.constant dense<0xFF800000> : vector<4xf32>
    %213 = vector.multi_reduction <maximumf>, %212, %cst_82 [1] : vector<4x8xf32> to vector<4xf32>
    %214 = vector.shape_cast %213 : vector<4xf32> to vector<4x1xf32>
    %215 = vector.broadcast %214 : vector<4x1xf32> to vector<4x8xf32>
    %216 = arith.subf %212, %215 : vector<4x8xf32>
    %217 = math.exp %216 : vector<4x8xf32>
    %cst_83 = arith.constant dense<0.000000e+00> : vector<4xf32>
    %218 = vector.multi_reduction <add>, %217, %cst_83 [1] : vector<4x8xf32> to vector<4xf32>
    %219 = vector.shape_cast %218 : vector<4xf32> to vector<4x1xf32>
    %220 = tpu.reciprocal %219 {approx = true} : vector<4x1xf32> -> vector<4x1xf32>
    %221 = vector.broadcast %220 : vector<4x1xf32> to vector<4x8xf32>
    %222 = arith.mulf %217, %221 : vector<4x8xf32>
    %223 = arith.truncf %222 : vector<4x8xf32> to vector<4x8xbf16>
    %224 = vector.extract_strided_slice %153 {offsets = [0, 24], sizes = [8, 8], strides = [1, 1]} : vector<8x32xbf16> to vector<8x8xbf16>
    %cst_84 = arith.constant dense<0.000000e+00> : vector<4x8xf32>
    %225 = tpu.matmul %223, %224, %cst_84 {dimension_numbers = #tpu.dot_dimension_numbers<[1], [0], [0], [1], [0, 0, 1, 1], [], []>} : vector<4x8xbf16>, vector<8x8xbf16>, vector<4x8xf32> -> vector<4x8xf32>
    %226 = tpu.concatenate %171, %189, %207, %225 in 1 : vector<4x8xf32>, vector<4x8xf32>, vector<4x8xf32>, vector<4x8xf32> -> vector<4x32xf32>
    %c0_85 = arith.constant 0 : index
    %c0_86 = arith.constant 0 : index
    %c0_87 = arith.constant 0 : index
    %227 = vector.load %arg20[%c0_85, %c0_86, %c0_87] : memref<1x32x32xbf16, #tpu.memory_space<vmem>>, vector<1x32x32xbf16>
    %228 = vector.shape_cast %227 : vector<1x32x32xbf16> to vector<32x32xbf16>
    %c0_88 = arith.constant 0 : index
    %c0_89 = arith.constant 0 : index
    %c0_90 = arith.constant 0 : index
    %229 = vector.load %arg21[%c0_88, %c0_89, %c0_90] : memref<1x1x32xf32, #tpu.memory_space<vmem>>, vector<1x1x32xf32>
    %230 = vector.shape_cast %229 : vector<1x1x32xf32> to vector<1x32xf32>
    %231 = arith.truncf %226 : vector<4x32xf32> to vector<4x32xbf16>
    %cst_91 = arith.constant dense<0.000000e+00> : vector<4x32xf32>
    %232 = tpu.matmul %231, %228, %cst_91 {dimension_numbers = #tpu.dot_dimension_numbers<[1], [0], [0], [1], [0, 0, 1, 1], [], []>} : vector<4x32xbf16>, vector<32x32xbf16>, vector<4x32xf32> -> vector<4x32xf32>
    %233 = vector.broadcast %230 : vector<1x32xf32> to vector<4x32xf32>
    %234 = arith.addf %232, %233 : vector<4x32xf32>
    %235 = arith.addf %132, %234 : vector<4x32xf32>
    %c0_92 = arith.constant 0 : index
    %c0_93 = arith.constant 0 : index
    %c0_94 = arith.constant 0 : index
    %236 = vector.load %arg22[%c0_92, %c0_93, %c0_94] : memref<1x1x32xf32, #tpu.memory_space<vmem>>, vector<1x1x32xf32>
    %237 = vector.shape_cast %236 : vector<1x1x32xf32> to vector<1x32xf32>
    %c0_95 = arith.constant 0 : index
    %c0_96 = arith.constant 0 : index
    %c0_97 = arith.constant 0 : index
    %238 = vector.load %arg23[%c0_95, %c0_96, %c0_97] : memref<1x1x32xf32, #tpu.memory_space<vmem>>, vector<1x1x32xf32>
    %239 = vector.shape_cast %238 : vector<1x1x32xf32> to vector<1x32xf32>
    %cst_98 = arith.constant dense<0.000000e+00> : vector<4xf32>
    %240 = vector.multi_reduction <add>, %235, %cst_98 [1] : vector<4x32xf32> to vector<4xf32>
    %241 = vector.shape_cast %240 : vector<4xf32> to vector<4x1xf32>
    %cst_99 = arith.constant 3.200000e+01 : f32
    %242 = vector.broadcast %cst_99 : f32 to vector<4x1xf32>
    %243 = arith.divf %241, %242 : vector<4x1xf32>
    %244 = vector.broadcast %243 : vector<4x1xf32> to vector<4x32xf32>
    %245 = arith.subf %235, %244 : vector<4x32xf32>
    %246 = arith.mulf %245, %245 : vector<4x32xf32>
    %cst_100 = arith.constant dense<0.000000e+00> : vector<4xf32>
    %247 = vector.multi_reduction <add>, %246, %cst_100 [1] : vector<4x32xf32> to vector<4xf32>
    %248 = vector.shape_cast %247 : vector<4xf32> to vector<4x1xf32>
    %cst_101 = arith.constant 3.200000e+01 : f32
    %249 = vector.broadcast %cst_101 : f32 to vector<4x1xf32>
    %250 = arith.divf %248, %249 : vector<4x1xf32>
    %251 = vector.broadcast %243 : vector<4x1xf32> to vector<4x32xf32>
    %252 = arith.subf %235, %251 : vector<4x32xf32>
    %cst_102 = arith.constant 9.99999974E-6 : f32
    %253 = vector.broadcast %cst_102 : f32 to vector<4x1xf32>
    %254 = arith.addf %250, %253 : vector<4x1xf32>
    %255 = math.rsqrt %254 : vector<4x1xf32>
    %256 = vector.broadcast %255 : vector<4x1xf32> to vector<4x32xf32>
    %257 = arith.mulf %252, %256 : vector<4x32xf32>
    %258 = vector.broadcast %237 : vector<1x32xf32> to vector<4x32xf32>
    %259 = arith.mulf %257, %258 : vector<4x32xf32>
    %260 = vector.broadcast %239 : vector<1x32xf32> to vector<4x32xf32>
    %261 = arith.addf %259, %260 : vector<4x32xf32>
    %c0_103 = arith.constant 0 : index
    %c0_104 = arith.constant 0 : index
    %c0_105 = arith.constant 0 : index
    %262 = vector.load %arg24[%c0_103, %c0_104, %c0_105] : memref<1x32x64xbf16, #tpu.memory_space<vmem>>, vector<1x32x64xbf16>
    %263 = vector.shape_cast %262 : vector<1x32x64xbf16> to vector<32x64xbf16>
    %c0_106 = arith.constant 0 : index
    %c0_107 = arith.constant 0 : index
    %c0_108 = arith.constant 0 : index
    %264 = vector.load %arg25[%c0_106, %c0_107, %c0_108] : memref<1x1x64xf32, #tpu.memory_space<vmem>>, vector<1x1x64xf32>
    %265 = vector.shape_cast %264 : vector<1x1x64xf32> to vector<1x64xf32>
    %266 = arith.truncf %261 : vector<4x32xf32> to vector<4x32xbf16>
    %cst_109 = arith.constant dense<0.000000e+00> : vector<4x64xf32>
    %267 = tpu.matmul %266, %263, %cst_109 {dimension_numbers = #tpu.dot_dimension_numbers<[1], [0], [0], [1], [0, 0, 1, 1], [], []>} : vector<4x32xbf16>, vector<32x64xbf16>, vector<4x64xf32> -> vector<4x64xf32>
    %268 = vector.broadcast %265 : vector<1x64xf32> to vector<4x64xf32>
    %269 = arith.addf %267, %268 : vector<4x64xf32>
    %cst_110 = arith.constant 0.000000e+00 : f32
    %270 = vector.broadcast %cst_110 : f32 to vector<4x64xf32>
    %271 = arith.maximumf %269, %270 : vector<4x64xf32>
    %c0_111 = arith.constant 0 : index
    %c0_112 = arith.constant 0 : index
    %c0_113 = arith.constant 0 : index
    %272 = vector.load %arg26[%c0_111, %c0_112, %c0_113] : memref<1x64x32xbf16, #tpu.memory_space<vmem>>, vector<1x64x32xbf16>
    %273 = vector.shape_cast %272 : vector<1x64x32xbf16> to vector<64x32xbf16>
    %c0_114 = arith.constant 0 : index
    %c0_115 = arith.constant 0 : index
    %c0_116 = arith.constant 0 : index
    %274 = vector.load %arg27[%c0_114, %c0_115, %c0_116] : memref<1x1x32xf32, #tpu.memory_space<vmem>>, vector<1x1x32xf32>
    %275 = vector.shape_cast %274 : vector<1x1x32xf32> to vector<1x32xf32>
    %276 = arith.truncf %271 : vector<4x64xf32> to vector<4x64xbf16>
    %cst_117 = arith.constant dense<0.000000e+00> : vector<4x32xf32>
    %277 = tpu.matmul %276, %273, %cst_117 {dimension_numbers = #tpu.dot_dimension_numbers<[1], [0], [0], [1], [0, 0, 1, 1], [], []>} : vector<4x64xbf16>, vector<64x32xbf16>, vector<4x32xf32> -> vector<4x32xf32>
    %278 = vector.broadcast %275 : vector<1x32xf32> to vector<4x32xf32>
    %279 = arith.addf %277, %278 : vector<4x32xf32>
    %280 = arith.addf %261, %279 : vector<4x32xf32>
    %c0_118 = arith.constant 0 : index
    %c0_119 = arith.constant 0 : index
    %c0_120 = arith.constant 0 : index
    %281 = vector.load %arg28[%c0_118, %c0_119, %c0_120] : memref<1x1x32xf32, #tpu.memory_space<vmem>>, vector<1x1x32xf32>
    %282 = vector.shape_cast %281 : vector<1x1x32xf32> to vector<1x32xf32>
    %c0_121 = arith.constant 0 : index
    %c0_122 = arith.constant 0 : index
    %c0_123 = arith.constant 0 : index
    %283 = vector.load %arg29[%c0_121, %c0_122, %c0_123] : memref<1x1x32xf32, #tpu.memory_space<vmem>>, vector<1x1x32xf32>
    %284 = vector.shape_cast %283 : vector<1x1x32xf32> to vector<1x32xf32>
    %cst_124 = arith.constant dense<0.000000e+00> : vector<4xf32>
    %285 = vector.multi_reduction <add>, %280, %cst_124 [1] : vector<4x32xf32> to vector<4xf32>
    %286 = vector.shape_cast %285 : vector<4xf32> to vector<4x1xf32>
    %cst_125 = arith.constant 3.200000e+01 : f32
    %287 = vector.broadcast %cst_125 : f32 to vector<4x1xf32>
    %288 = arith.divf %286, %287 : vector<4x1xf32>
    %289 = vector.broadcast %288 : vector<4x1xf32> to vector<4x32xf32>
    %290 = arith.subf %280, %289 : vector<4x32xf32>
    %291 = arith.mulf %290, %290 : vector<4x32xf32>
    %cst_126 = arith.constant dense<0.000000e+00> : vector<4xf32>
    %292 = vector.multi_reduction <add>, %291, %cst_126 [1] : vector<4x32xf32> to vector<4xf32>
    %293 = vector.shape_cast %292 : vector<4xf32> to vector<4x1xf32>
    %cst_127 = arith.constant 3.200000e+01 : f32
    %294 = vector.broadcast %cst_127 : f32 to vector<4x1xf32>
    %295 = arith.divf %293, %294 : vector<4x1xf32>
    %296 = vector.broadcast %288 : vector<4x1xf32> to vector<4x32xf32>
    %297 = arith.subf %280, %296 : vector<4x32xf32>
    %cst_128 = arith.constant 9.99999974E-6 : f32
    %298 = vector.broadcast %cst_128 : f32 to vector<4x1xf32>
    %299 = arith.addf %295, %298 : vector<4x1xf32>
    %300 = math.rsqrt %299 : vector<4x1xf32>
    %301 = vector.broadcast %300 : vector<4x1xf32> to vector<4x32xf32>
    %302 = arith.mulf %297, %301 : vector<4x32xf32>
    %303 = vector.broadcast %282 : vector<1x32xf32> to vector<4x32xf32>
    %304 = arith.mulf %302, %303 : vector<4x32xf32>
    %305 = vector.broadcast %284 : vector<1x32xf32> to vector<4x32xf32>
    %306 = arith.addf %304, %305 : vector<4x32xf32>
    %c0_129 = arith.constant 0 : index
    %c0_130 = arith.constant 0 : index
    %307 = vector.load %arg35[%c0_129, %c0_130] : memref<4x32xf32, #tpu.memory_space<vmem>>, vector<4x32xf32>
    tpu.vector_store %arg35[%c0_129, %c0_130], %306 {strides = array<i32>} : memref<4x32xf32, #tpu.memory_space<vmem>>, vector<4x32xf32>,
    %c1_i32 = arith.constant 1 : i32
    %308 = arith.cmpi eq, %arg1, %c1_i32 : i32
    %309 = arith.extui %308 : i1 to i32
    %c0_i32_131 = arith.constant 0 : i32
    %310 = arith.cmpi ne, %309, %c0_i32_131 : i32
    scf.if %310 {
      %c0_132 = arith.constant 0 : index
      %c0_133 = arith.constant 0 : index
      %311 = vector.load %arg30[%c0_132, %c0_133] : memref<1x32xf32, #tpu.memory_space<vmem>>, vector<1x32xf32>
      %c0_134 = arith.constant 0 : index
      %c0_135 = arith.constant 0 : index
      %312 = vector.load %arg31[%c0_134, %c0_135] : memref<1x32xf32, #tpu.memory_space<vmem>>, vector<1x32xf32>
      %cst_136 = arith.constant dense<0.000000e+00> : vector<4xf32>
      %313 = vector.multi_reduction <add>, %306, %cst_136 [1] : vector<4x32xf32> to vector<4xf32>
      %314 = vector.shape_cast %313 : vector<4xf32> to vector<4x1xf32>
      %cst_137 = arith.constant 3.200000e+01 : f32
      %315 = vector.broadcast %cst_137 : f32 to vector<4x1xf32>
      %316 = arith.divf %314, %315 : vector<4x1xf32>
      %317 = vector.broadcast %316 : vector<4x1xf32> to vector<4x32xf32>
      %318 = arith.subf %306, %317 : vector<4x32xf32>
      %319 = arith.mulf %318, %318 : vector<4x32xf32>
      %cst_138 = arith.constant dense<0.000000e+00> : vector<4xf32>
      %320 = vector.multi_reduction <add>, %319, %cst_138 [1] : vector<4x32xf32> to vector<4xf32>
      %321 = vector.shape_cast %320 : vector<4xf32> to vector<4x1xf32>
      %cst_139 = arith.constant 3.200000e+01 : f32
      %322 = vector.broadcast %cst_139 : f32 to vector<4x1xf32>
      %323 = arith.divf %321, %322 : vector<4x1xf32>
      %324 = vector.broadcast %316 : vector<4x1xf32> to vector<4x32xf32>
      %325 = arith.subf %306, %324 : vector<4x32xf32>
      %cst_140 = arith.constant 9.99999974E-6 : f32
      %326 = vector.broadcast %cst_140 : f32 to vector<4x1xf32>
      %327 = arith.addf %323, %326 : vector<4x1xf32>
      %328 = math.rsqrt %327 : vector<4x1xf32>
      %329 = vector.broadcast %328 : vector<4x1xf32> to vector<4x32xf32>
      %330 = arith.mulf %325, %329 : vector<4x32xf32>
      %331 = vector.broadcast %311 : vector<1x32xf32> to vector<4x32xf32>
      %332 = arith.mulf %330, %331 : vector<4x32xf32>
      %333 = vector.broadcast %312 : vector<1x32xf32> to vector<4x32xf32>
      %334 = arith.addf %332, %333 : vector<4x32xf32>
      %c0_141 = arith.constant 0 : index
      %c0_142 = arith.constant 0 : index
      %335 = vector.load %arg32[%c0_141, %c0_142] : memref<32x4xbf16, #tpu.memory_space<vmem>>, vector<32x4xbf16>
      %c0_143 = arith.constant 0 : index
      %c0_144 = arith.constant 0 : index
      %336 = vector.load %arg33[%c0_143, %c0_144] : memref<1x4xf32, #tpu.memory_space<vmem>>, vector<1x4xf32>
      %337 = arith.truncf %334 : vector<4x32xf32> to vector<4x32xbf16>
      %cst_145 = arith.constant dense<0.000000e+00> : vector<4x4xf32>
      %338 = tpu.matmul %337, %335, %cst_145 {dimension_numbers = #tpu.dot_dimension_numbers<[1], [0], [0], [1], [0, 0, 1, 1], [], []>} : vector<4x32xbf16>, vector<32x4xbf16>, vector<4x4xf32> -> vector<4x4xf32>
      %339 = vector.broadcast %336 : vector<1x4xf32> to vector<4x4xf32>
      %340 = arith.addf %338, %339 : vector<4x4xf32>
      %c0_146 = arith.constant 0 : index
      %c0_147 = arith.constant 0 : index
      %c0_148 = arith.constant 0 : index
      %341 = vector.load %arg34[%c0_146, %c0_147, %c0_148] : memref<1x4x4xf32, #tpu.memory_space<vmem>>, vector<1x4x4xf32>
      %342 = vector.shape_cast %341 : vector<1x4x4xf32> to vector<4x4xf32>
      %343 = vector.shape_cast %340 : vector<4x4xf32> to vector<1x4x4xf32>
      tpu.vector_store %arg34[%c0_146, %c0_147, %c0_148], %343 {strides = array<i32>} : memref<1x4x4xf32, #tpu.memory_space<vmem>>, vector<1x4x4xf32>,
    } else {
    }
    return
  }
  func.func @transform_0(%arg0: i32, %arg1: i32) -> (i32, i32, i32) {
    %c0_i32 = arith.constant 0 : i32
    %c0_i32_0 = arith.constant 0 : i32
    %c0_i32_1 = arith.constant 0 : i32
    return %arg0, %c0_i32, %c0_i32_0 : i32, i32, i32
  }
  func.func @transform_1(%arg0: i32, %arg1: i32) -> (i32, i32, i32) {
    %c0_i32 = arith.constant 0 : i32
    %c0_i32_0 = arith.constant 0 : i32
    %c0_i32_1 = arith.constant 0 : i32
    return %arg0, %c0_i32, %c0_i32_0 : i32, i32, i32
  }
  func.func @transform_2(%arg0: i32, %arg1: i32) -> (i32, i32) {
    %c0_i32 = arith.constant 0 : i32
    %c0_i32_0 = arith.constant 0 : i32
    %c0_i32_1 = arith.constant 0 : i32
    return %c0_i32, %c0_i32_0 : i32, i32
  }
  func.func @transform_3(%arg0: i32, %arg1: i32) -> (i32, i32) {
    %c0_i32 = arith.constant 0 : i32
    %c0_i32_0 = arith.constant 0 : i32
    %c0_i32_1 = arith.constant 0 : i32
    return %c0_i32, %c0_i32_0 : i32, i32
  }
  func.func @transform_4(%arg0: i32, %arg1: i32) -> (i32, i32) {
    %c0_i32 = arith.constant 0 : i32
    %c0_i32_0 = arith.constant 0 : i32
    %c0_i32_1 = arith.constant 0 : i32
    return %c0_i32, %c0_i32_0 : i32, i32
  }
  func.func @transform_5(%arg0: i32, %arg1: i32) -> (i32, i32) {
    %c0_i32 = arith.constant 0 : i32
    %c0_i32_0 = arith.constant 0 : i32
    %c0_i32_1 = arith.constant 0 : i32
    return %c0_i32, %c0_i32_0 : i32, i32
  }
  func.func @transform_6(%arg0: i32, %arg1: i32) -> (i32, i32) {
    %c0_i32 = arith.constant 0 : i32
    %c0_i32_0 = arith.constant 0 : i32
    %c0_i32_1 = arith.constant 0 : i32
    return %c0_i32, %c0_i32_0 : i32, i32
  }
  func.func @transform_7(%arg0: i32, %arg1: i32) -> (i32, i32) {
    %c0_i32 = arith.constant 0 : i32
    %c0_i32_0 = arith.constant 0 : i32
    %c0_i32_1 = arith.constant 0 : i32
    return %c0_i32, %c0_i32_0 : i32, i32
  }
  func.func @transform_8(%arg0: i32, %arg1: i32) -> (i32, i32, i32) {
    %c0_i32 = arith.constant 0 : i32
    %c0_i32_0 = arith.constant 0 : i32
    %c0_i32_1 = arith.constant 0 : i32
    return %arg1, %c0_i32, %c0_i32_0 : i32, i32, i32
  }
  func.func @transform_9(%arg0: i32, %arg1: i32) -> (i32, i32, i32) {
    %c0_i32 = arith.constant 0 : i32
    %c0_i32_0 = arith.constant 0 : i32
    %c0_i32_1 = arith.constant 0 : i32
    return %arg1, %c0_i32, %c0_i32_0 : i32, i32, i32
  }
  func.func @transform_10(%arg0: i32, %arg1: i32) -> (i32, i32, i32) {
    %c0_i32 = arith.constant 0 : i32
    %c0_i32_0 = arith.constant 0 : i32
    %c0_i32_1 = arith.constant 0 : i32
    return %arg1, %c0_i32, %c0_i32_0 : i32, i32, i32
  }
  func.func @transform_11(%arg0: i32, %arg1: i32) -> (i32, i32, i32) {
    %c0_i32 = arith.constant 0 : i32
    %c0_i32_0 = arith.constant 0 : i32
    %c0_i32_1 = arith.constant 0 : i32
    return %arg1, %c0_i32, %c0_i32_0 : i32, i32, i32
  }
  func.func @transform_12(%arg0: i32, %arg1: i32) -> (i32, i32, i32) {
    %c0_i32 = arith.constant 0 : i32
    %c0_i32_0 = arith.constant 0 : i32
    %c0_i32_1 = arith.constant 0 : i32
    return %arg1, %c0_i32, %c0_i32_0 : i32, i32, i32
  }
  func.func @transform_13(%arg0: i32, %arg1: i32) -> (i32, i32, i32) {
    %c0_i32 = arith.constant 0 : i32
    %c0_i32_0 = arith.constant 0 : i32
    %c0_i32_1 = arith.constant 0 : i32
    return %arg1, %c0_i32, %c0_i32_0 : i32, i32, i32
  }
  func.func @transform_14(%arg0: i32, %arg1: i32) -> (i32, i32, i32) {
    %c0_i32 = arith.constant 0 : i32
    %c0_i32_0 = arith.constant 0 : i32
    %c0_i32_1 = arith.constant 0 : i32
    return %arg1, %c0_i32, %c0_i32_0 : i32, i32, i32
  }
  func.func @transform_15(%arg0: i32, %arg1: i32) -> (i32, i32, i32) {
    %c0_i32 = arith.constant 0 : i32
    %c0_i32_0 = arith.constant 0 : i32
    %c0_i32_1 = arith.constant 0 : i32
    return %arg1, %c0_i32, %c0_i32_0 : i32, i32, i32
  }
  func.func @transform_16(%arg0: i32, %arg1: i32) -> (i32, i32, i32) {
    %c0_i32 = arith.constant 0 : i32
    %c0_i32_0 = arith.constant 0 : i32
    %c0_i32_1 = arith.constant 0 : i32
    return %arg1, %c0_i32, %c0_i32_0 : i32, i32, i32
  }
  func.func @transform_17(%arg0: i32, %arg1: i32) -> (i32, i32, i32) {
    %c0_i32 = arith.constant 0 : i32
    %c0_i32_0 = arith.constant 0 : i32
    %c0_i32_1 = arith.constant 0 : i32
    return %arg1, %c0_i32, %c0_i32_0 : i32, i32, i32
  }
  func.func @transform_18(%arg0: i32, %arg1: i32) -> (i32, i32, i32) {
    %c0_i32 = arith.constant 0 : i32
    %c0_i32_0 = arith.constant 0 : i32
    %c0_i32_1 = arith.constant 0 : i32
    return %arg1, %c0_i32, %c0_i32_0 : i32, i32, i32
  }
  func.func @transform_19(%arg0: i32, %arg1: i32) -> (i32, i32, i32) {
    %c0_i32 = arith.constant 0 : i32
    %c0_i32_0 = arith.constant 0 : i32
    %c0_i32_1 = arith.constant 0 : i32
    return %arg1, %c0_i32, %c0_i32_0 : i32, i32, i32
  }
  func.func @transform_20(%arg0: i32, %arg1: i32) -> (i32, i32, i32) {
    %c0_i32 = arith.constant 0 : i32
    %c0_i32_0 = arith.constant 0 : i32
    %c0_i32_1 = arith.constant 0 : i32
    return %arg1, %c0_i32, %c0_i32_0 : i32, i32, i32
  }
  func.func @transform_21(%arg0: i32, %arg1: i32) -> (i32, i32, i32) {
    %c0_i32 = arith.constant 0 : i32
    %c0_i32_0 = arith.constant 0 : i32
    %c0_i32_1 = arith.constant 0 : i32
    return %arg1, %c0_i32, %c0_i32_0 : i32, i32, i32
  }
  func.func @transform_22(%arg0: i32, %arg1: i32) -> (i32, i32, i32) {
    %c0_i32 = arith.constant 0 : i32
    %c0_i32_0 = arith.constant 0 : i32
    %c0_i32_1 = arith.constant 0 : i32
    return %arg1, %c0_i32, %c0_i32_0 : i32, i32, i32
  }
  func.func @transform_23(%arg0: i32, %arg1: i32) -> (i32, i32, i32) {
    %c0_i32 = arith.constant 0 : i32
    %c0_i32_0 = arith.constant 0 : i32
    %c0_i32_1 = arith.constant 0 : i32
    return %arg1, %c0_i32, %c0_i32_0 : i32, i32, i32
  }
  func.func @transform_24(%arg0: i32, %arg1: i32) -> (i32, i32, i32) {
    %c0_i32 = arith.constant 0 : i32
    %c0_i32_0 = arith.constant 0 : i32
    %c0_i32_1 = arith.constant 0 : i32
    return %arg1, %c0_i32, %c0_i32_0 : i32, i32, i32
  }
  func.func @transform_25(%arg0: i32, %arg1: i32) -> (i32, i32, i32) {
    %c0_i32 = arith.constant 0 : i32
    %c0_i32_0 = arith.constant 0 : i32
    %c0_i32_1 = arith.constant 0 : i32
    return %arg1, %c0_i32, %c0_i32_0 : i32, i32, i32
  }
  func.func @transform_26(%arg0: i32, %arg1: i32) -> (i32, i32, i32) {
    %c0_i32 = arith.constant 0 : i32
    %c0_i32_0 = arith.constant 0 : i32
    %c0_i32_1 = arith.constant 0 : i32
    return %arg1, %c0_i32, %c0_i32_0 : i32, i32, i32
  }
  func.func @transform_27(%arg0: i32, %arg1: i32) -> (i32, i32, i32) {
    %c0_i32 = arith.constant 0 : i32
    %c0_i32_0 = arith.constant 0 : i32
    %c0_i32_1 = arith.constant 0 : i32
    return %arg1, %c0_i32, %c0_i32_0 : i32, i32, i32
  }
  func.func @transform_28(%arg0: i32, %arg1: i32) -> (i32, i32) {
    %c0_i32 = arith.constant 0 : i32
    %c0_i32_0 = arith.constant 0 : i32
    %c0_i32_1 = arith.constant 0 : i32
    return %c0_i32, %c0_i32_0 : i32, i32
  }
  func.func @transform_29(%arg0: i32, %arg1: i32) -> (i32, i32) {
    %c0_i32 = arith.constant 0 : i32
    %c0_i32_0 = arith.constant 0 : i32
    %c0_i32_1 = arith.constant 0 : i32
    return %c0_i32, %c0_i32_0 : i32, i32
  }
  func.func @transform_30(%arg0: i32, %arg1: i32) -> (i32, i32) {
    %c0_i32 = arith.constant 0 : i32
    %c0_i32_0 = arith.constant 0 : i32
    %c0_i32_1 = arith.constant 0 : i32
    return %c0_i32, %c0_i32_0 : i32, i32
  }
  func.func @transform_31(%arg0: i32, %arg1: i32) -> (i32, i32) {
    %c0_i32 = arith.constant 0 : i32
    %c0_i32_0 = arith.constant 0 : i32
    %c0_i32_1 = arith.constant 0 : i32
    return %c0_i32, %c0_i32_0 : i32, i32
  }
  func.func @transform_32(%arg0: i32, %arg1: i32) -> (i32, i32, i32) {
    %c0_i32 = arith.constant 0 : i32
    %c0_i32_0 = arith.constant 0 : i32
    %c0_i32_1 = arith.constant 0 : i32
    return %arg0, %c0_i32, %c0_i32_0 : i32, i32, i32
  }
}

</mosaic_0001>

<bundles_post_ra>
// kernel: transformer_model_forward.2
= control target key start
LH: loop header
LB: loop body
LE: loop exit
PB: predicated region body
PF: predicated region fallthrough
CT: control target
= control target key end

     0   :  { %s2396_s22 = smov 0   ;;  %s2398_s23 = smov 0   ;;  %s2681_s0 = inlined_call_operand.vmem [shape: f32[2,8,4], index: 0, kind: input, shape index: {}]   ;;  %s2682_s1 = inlined_call_operand.vmem [shape: bf16[4,32], index: 1, kind: input, shape index: {}]   ;;  %s2683_s2 = inlined_call_operand.vmem [shape: f32[1,32], index: 2, kind: input, shape index: {}]   ;;  %s2684_s3 = inlined_call_operand.vmem [shape: f32[8,32], index: 3, kind: input, shape index: {}]   ;;  %s2685_s4 = inlined_call_operand.vmem [shape: f32[1,32], index: 4, kind: input, shape index: {}]   ;;  %s2686_s5 = inlined_call_operand.vmem [shape: f32[1,32], index: 5, kind: input, shape index: {}]   ;;  %s2687_s6 = inlined_call_operand.vmem [shape: bf16[2,32,96], index: 6, kind: input, shape index: {}]   ;;  %s2688_s7 = inlined_call_operand.vmem [shape: f32[2,1,96], index: 7, kind: input, shape index: {}]   ;;  %s2689_s8 = inlined_call_operand.vmem [shape: bf16[2,32,32], index: 8, kind: input, shape index: {}]   ;;  %s2690_s9 = inlined_call_operand.vmem [shape: f32[2,1,32], index: 9, kind: input, shape index: {}]   ;;  %s2691_s10 = inlined_call_operand.vmem [shape: f32[2,1,32], index: 10, kind: input, shape index: {}]   ;;  %s2692_s11 = inlined_call_operand.vmem [shape: f32[2,1,32], index: 11, kind: input, shape index: {}]   ;;  %s2693_s12 = inlined_call_operand.vmem [shape: bf16[2,32,64], index: 12, kind: input, shape index: {}]   ;;  %s2694_s13 = inlined_call_operand.vmem [shape: f32[2,1,64], index: 13, kind: input, shape index: {}]   ;;  %s2695_s14 = inlined_call_operand.vmem [shape: bf16[2,64,32], index: 14, kind: input, shape index: {}]   ;;  %s2696_s15 = inlined_call_operand.vmem [shape: f32[2,1,32], index: 15, kind: input, shape index: {}]   ;;  %s2697_s16 = inlined_call_operand.vmem [shape: f32[2,1,32], index: 16, kind: input, shape index: {}]   ;;  %s2698_s17 = inlined_call_operand.vmem [shape: f32[2,1,32], index: 17, kind: input, shape index: {}]   ;;  %s2699_s18 = inlined_call_operand.vmem [shape: f32[1,32], index: 18, kind: input, shape index: {}]   ;;  %s2700_s19 = inlined_call_operand.vmem [shape: f32[1,32], index: 19, kind: input, shape index: {}]   ;;  %s2701_s20 = inlined_call_operand.vmem [shape: f32[2,8,32], index: 20, kind: output, shape index: {}]  }
   0x1   :  { %2707 = sst [smem:[#allocation10_spill]] %s2681_s0  ;;  %s2400_s24 = smov 0  }
   0x2   :  { %2708 = sst [smem:[#allocation11_spill]] %s2682_s1  ;;  %s2394_s1 = smov 0  }
   0x3   :  { %2709 = sst [smem:[#allocation12_spill]] %s2683_s2  ;;  %s2402_s2 = smov 0  }
   0x4   :  { %2710 = sst [smem:[#allocation13_spill]] %s2684_s3 }
   0x5   :  { %2711 = sst [smem:[#allocation14_spill]] %s2685_s4 }
   0x6   :  { %2712 = sst [smem:[#allocation15_spill]] %s2686_s5 }
   0x7   :  { %2713 = sst [smem:[#allocation16_spill]] %s2687_s6 }
   0x8   :  { %2714 = sst [smem:[#allocation17_spill]] %s2689_s8 }
   0x9   :  { %2715 = sst [smem:[#allocation18_spill]] %s2693_s12 }
   0xa   :  { %2716 = sst [smem:[#allocation19_spill]] %s2699_s18 }
   0xb   :  { %2717 = sst [smem:[#allocation20_spill]] %s2700_s19 }
   0xc   :  { %2718 = sst [smem:[#allocation21_spill]] %s2701_s20 }
   0xd LB: > { %2719 = sst [smem:[#allocation3_spill]] %s2253_s1  ;;  %s39_s25 = sadd.s32 1, %s2261_s23  ;;  %s2269_s2 = sphi %s2402_s2, %s30_s2   ;;  %s2265_s24 = sphi %s2400_s24, %s2750_s24   ;;  %s2261_s23 = sphi %s2398_s23, %s2749_s23   ;;  %s2257_s22 = sphi %s2396_s22, %s2748_s22   ;;  %s2253_s1 = sphi %s2394_s1, %s2747_s1  }
   0xe   : > { %2720 = sst [smem:[#allocation4_spill]] %s2261_s23  ;;  %s42_s3 = sadd.s32 1, %s2265_s24 }
   0xf   : > { %2721 = sst [smem:[#allocation5_spill]] %s2265_s24  ;;  %p40_p0 = scmp.ge.s32.totalorder %s39_s25, 2 }
  0x10   : > { %2722 = sst [smem:[#allocation6_spill]] %s2269_s2  ;;  %p1962_p1 = scmp.ge.s32.totalorder %s2269_s2, 1 }
  0x11   : > { %p677_p2 = scmp.lt.s32.totalorder %s2269_s2, 5  ;;  %s2752_s25 = smov (%p40_p0, %s39_s25), 0 }
  0x12   : > { %2723 = sst [smem:[#allocation7_spill]] %s2752_s25  ;;  %s2754_s3 = smov (!%p40_p0, %s42_s3), %s2265_s24 }
  0x13   : > { %p678_p3 = pnand %p1962_p1, %p677_p2  ;;  %p44_p4 = scmp.ge.s32.totalorder %s2754_s3, 2 }
  0x15   : > { %s2756_s3 = smov (%p44_p4, %s2754_s3), 0  ;;  %681 = sbr.rel (%p678_p3) target bundleno = 3451 (0xd7b), region = 100 }
  0x16   : > { %2724 = sst [smem:[#allocation8_spill]] %s2756_s3 }
  0x1c   : > { %p777_p5 = scmp.lt.s32.totalorder %s2257_s22, 1  ;;  %p781_p6 = scmp.lt.s32.totalorder %s2253_s1, 1 }
  0x1d   : > { %s2725_s29 = sld [smem:[#allocation10_spill]]  ;;  %s2726_s6 = sld [smem:[#allocation16_spill]] }
  0x1e   : > { %s2758_s22 = smov (!%p777_p5, %s2257_s22), 1  ;;  %s2728_s8 = sld [smem:[#allocation17_spill]] }
  0x1f   : > { %s2428_s26 = scalar_select %p781_p6, %s2253_s1, 1 }
  0x20   : > { %s1963_s27 = sshll.u32 %s2758_s22, 3  ;;  %s2729_s12 = sld [smem:[#allocation18_spill]] }
  0x21   : > { %s2013_s0 = sshll.u32 %s2428_s26, 4  ;;  %s818_s28 = scalar_lea.vmem %s2696_s15, %s2428_s26 }
  0x22   : > { %s2730_s2 = sld [smem:[#allocation21_spill]]  ;;  %s2731_s1 = sld [smem:[#allocation3_spill]] }
  0x23   : > { %s780_s30 = scalar_lea.vmem %s2725_s29, %s1963_s27  ;;  %s2437_s25 = scalar_lea.vmem %s2726_s6, %s2013_s0 }
  0x24   : > { %2727 = sst [smem:[#allocation9_spill]] %s2437_s25  ;;  %s2446_s5 = scalar_lea.vmem %s2728_s8, %s2013_s0 }
  0x25   : > { %s2016_s8 = sshll.u32 %s2428_s26, 5  ;;  %s821_s25 = scalar_lea.vmem %s2697_s16, %s2428_s26 }
  0x26   : > { %s2463_s24 = scalar_lea.vmem %s2729_s12, %s2013_s0  ;;  %s2477_s20 = scalar_lea.vmem %s2695_s14, %s2016_s8 }
  0x27   : > { %s824_s6 = scalar_lea.vmem %s2698_s17, %s2428_s26 }
  0x28   : > { %s2490_s12 = scalar_lea.vmem %s2730_s2, %s1963_s27  ;;  %p1973_p7 = scmp.ne.s32.totalorder %s2731_s1, 0 }
  0x29   : > { %s2732_s8 = sld [smem:[#allocation11_spill]] (!%p1973_p7)  ;;  %vm851_vm0 = vcmask (!%p1973_p7), 1041408   ;;  %v834_v1 = vld [vmem:[%s780_s30] sm:$0xff] (!%p1973_p7)  ;;  %v2271_v2 = vmov (!%p1973_p7), 0.0   ;;  %vm2272_vm1 = vmmov (!%p1973_p7), 0   ;;  %vm847_vm2 = vcmask (!%p1973_p7), 31744  }
  0x2a   : > { %833 = sbr.rel (%p1973_p7) target bundleno = 584 (0x248), region = 104  ;;  %2049 = vmatprep.subr.bf16.mxu0 (!%p1973_p7), %v2271_v2  ;;  %2051 = vmatprep.mubr.msk.bf16.mxu0 (!%p1973_p7), %vm2272_vm1, %v2271_v2  ;;  %v840_v4 = vpack.c.bf16 (!%p1973_p7), %v834_v1, %v834_v1  ;;  %s2733_s29 = sld [smem:[#allocation12_spill]] (!%p1973_p7)  ;;  %vm897_vm3 = vcmask (!%p1973_p7), 261120  }
  0x2b   : > { %s2734_s30 = sld [smem:[#allocation13_spill]] (!%p1973_p7)  ;;  %s2735_s18 = sld [smem:[#allocation14_spill]] (!%p1973_p7) }
  0x2c   : > { %s2736_s22 = sld [smem:[#allocation15_spill]] (!%p1973_p7) }
  0x2f   : > { %v835_v0 = vld [vmem:[%s2732_s8] sm:$0x3] (!%p1973_p7) }
  0x30   : > { %v853_v3 = vsel (!%p1973_p7), %vm851_vm0, %v835_v0, 0  ;;  %v1974_v5 = vld [vmem:[%s2733_s29] ss:$0 sm:$0xff] (!%p1973_p7) }
  0x31   : > { %2050 = vmatpush3.bf16.msra.mxu0 %v853_v3  ;;  %v837_v10 = vld [vmem:[%s2734_s30] sm:$0xff] }
  0x32   : > { %v1976_v24 = vld [vmem:[%s2735_s18] ss:$0 sm:$0xff] }
  0x33   : > { %v1977_v26 = vld [vmem:[%s2736_s22] ss:$0 sm:$0xff] }
  0x34   : > { %2052 = vmatmul.mubr.msk.bf16.vlgmr.msra.gmra.mrb[0].mxu0 %vm847_vm2, %v840_v4 }
 0x107   : > { %v889_v6 = vpop.f32.mrb[0].mxu0 }
 0x108   : > { %v890_v7 = vadd.f32 %v1974_v5, %v889_v6  ;;  %v2053_v8 = vpop.f32.mrb[1].mxu0 }
 0x109   : > { %v892_v9 = vpop.f32.mrb[2].mxu0 }
 0x10a   : > { %v895_v11 = vmul.f32 5.656854, %v890_v7  ;;  %v2054_v12 = vpop.f32.mrb[3].mxu0 }
 0x10c   : > { %v896_v13 = vadd.f32 %v895_v11, %v837_v10 }
 0x10e   : > { %v898_v14 = vsel %vm897_vm3, %v896_v13, 0.0 }
 0x10f   : > { %899 = vadd.xlane.f32.xlu0 %v898_v14 }
 0x19c   : > { %v900_v15 = vpop.xlane.xlu0 %899 }
 0x19d   : > { %v902_v16 = vmul.f32 0.03125, %v900_v15 }
 0x19f   : > { %v903_v17 = vsub.f32 %v896_v13, %v902_v16 }
 0x1a1   : > { %v904_v18 = vmul.f32 %v903_v17, %v903_v17 }
 0x1a3   : > { %v905_v19 = vsel %vm897_vm3, %v904_v18, 0.0 }
 0x1a4   : > { %906 = vadd.xlane.f32.xlu0 %v905_v19 }
 0x231   : > { %v907_v20 = vpop.xlane.xlu0 %906 }
 0x232   : > { %v908_v21 = vmul.f32 0.03125, %v907_v20 }
 0x234   : > { %v909_v22 = vadd.f32 1e-05, %v908_v21 }
 0x236   : > { %2197 = vrsqrt.f32 %v909_v22 }
 0x240   : > { %v2198_v23 = vpop.eup %2197 }
 0x241   : > { %v911_v25 = vmul.f32 %v2198_v23, %v903_v17 }
 0x243   : > { %v918_v27 = vmul.f32 %v1976_v24, %v911_v25 }
 0x245   : > { %v925_v28 = vadd.f32 %v1977_v26, %v918_v27 }
 0x247   : > { %926 = vst.msk [vmem:[#allocation2] sm:$0xff] %vm897_vm3, %v925_v28 }
 0x248 PF: > { %s2737_s4 = sld [smem:[#allocation9_spill]]  ;;  %v2273_v30 = vmov 0.0   ;;  %vm2274_vm4 = vmmov 0   ;;  %vm952_vm5 = vcmask 261120   ;;  %s2738_s27 = scalar_lea.vmem %s2688_s7, %s2428_s26  ;;  %vm1000_vm6 = vcmask 64512  }
 0x249   : > { %2055 = vmatprep.subr.bf16.mxu0 %v2273_v30  ;;  %2063 = vmatprep.subr.bf16.mxu1 %v2273_v30  ;;  %v1978_v34 = vld [vmem:[%s2738_s27] ss:$0 sm:$0xff]  ;;  %s2275_s29 = smov 120   ;;  %s2276_s3 = smov 96   ;;  %vm1065_vm7 = vcmask 1043456   ;;  %vm1455_vm8 = vcmask 130048  }
 0x24a   : > { %2059 = vmatprep.mubr.msk.bf16.mxu0 %vm2274_vm4, %v2273_v30  ;;  %2065 = vmatprep.mubr.msk.bf16.mxu1 %vm2274_vm4, %v2273_v30  ;;  %s2277_s21 = smov 80   ;;  %s2278_s30 = smov 88   ;;  %vm1457_vm9 = vcmask 195584   ;;  %vm1665_vm10 = vcmask 523264  }
 0x24b   : > { %s2279_s0 = smov 72   ;;  %s2280_s23 = smov 112  }
 0x24c   : > { %s2281_s18 = smov 104   ;;  %s2282_s19 = smov 56  }
 0x24d   : > { %s2283_s1 = smov 64   ;;  %s2284_s22 = smov 40  }
 0x24e   : > { %v2199_v29 = vld [vmem:[%s2737_s4] sm:$0xff]   ;;  %v2200_v31 = vld [vmem:[%s2737_s4 + $0x8] sm:$0xff]   ;;  %s2285_s4 = smov 48   ;;  %s2286_s8 = smov 8  }
 0x24f   : > { %2056 = vmatpush3.bf16.msra.mxu0 %v2199_v29  ;;  %v2517_v32 = vld [vmem:[#allocation2] sm:$0xff]  ;;  %s2287_s2 = smov 16   ;;  %s2288_s27 = smov 24  }
 0x250   : > { %2057 = vmatprep.subr.bf16.mxu0 %v2273_v30  ;;  %v933_v33 = vpack.c.bf16 %v2517_v32, %v2517_v32 }
 0x253   : > { %2058 = vmatpush3.bf16.msra.mxu0 %v2200_v31 }
 0x254   : > { %2069 = vmatprep.subr.bf16.mxu0 %v2273_v30 }
 0x256   : > { %2060 = vmatmul.mubr.msk.bf16.vlgmr.msra.gmra.mrb[0].mxu0 %vm952_vm5, %v933_v33 }
 0x257   : > { %2071 = vmatprep.mubr.msk.bf16.mxu0 %vm2274_vm4, %v2273_v30 }
 0x329   : > { %v990_v35 = vpop.f32.mrb[0].mxu0 }
 0x32a   : > { %v991_v36 = vadd.f32 %v1978_v34, %v990_v35  ;;  %v2061_v37 = vpop.f32.mrb[1].mxu0 }
 0x32b   : > { %v993_v38 = vpop.f32.mrb[2].mxu0 }
 0x32c   : > { %v2533_v39 = vpack.c.bf16 %v991_v36, %v991_v36  ;;  %v2062_v40 = vpop.f32.mrb[3].mxu0 }
 0x32e   : > { %1109 = vrot.lane.b32.xlu1 %v2533_v39, %s2275_s29  ;;  %998 = vrot.lane.b32.xlu0 %v2533_v39, %s2276_s3  ;;  %s2739_s3 = scalar_lea.vmem %s2690_s9, %s2428_s26 }
 0x332   : > { %1222 = vrot.lane.b32.xlu1 %v2533_v39, %s2277_s21  ;;  %1111 = vrot.lane.b32.xlu0 %v2533_v39, %s2278_s30 }
 0x336   : > { %1333 = vrot.lane.b32.xlu1 %v2533_v39, %s2279_s0  ;;  %1220 = vrot.lane.b32.xlu0 %v2533_v39, %s2280_s23 }
 0x33a   : > { %1331 = vrot.lane.b32.xlu0 %v2533_v39, %s2281_s18  ;;  %s2741_s18 = scalar_lea.vmem %s2692_s11, %s2428_s26 }
 0x3a0   : > { %v999_v41 = vpop.permute.xlu0 %998  ;;  %v1110_v44 = vpop.permute.xlu1 %1109 }
 0x3a1   : > { %v1005_v42 = vsel %vm1000_vm6, %v999_v41, 0 }
 0x3a2   : > { %2064 = vmatpush3.bf16.xpose.msra.mxu1 %v1005_v42 }
 0x3a3   : > { %2075 = vmatprep.subr.bf16.mxu1 %v2273_v30 }
 0x3a4   : > { %v1112_v43 = vpop.permute.xlu0 %1111  ;;  %v1223_v46 = vpop.permute.xlu1 %1222 }
 0x3a5   : > { %v1117_v45 = vsel %vm1000_vm6, %v1112_v43, 0  ;;  %v1228_v47 = vsel %vm1000_vm6, %v1223_v46, 0 }
 0x3a8   : > { %v1334_v48 = vpop.permute.xlu1 %1333  ;;  %v1221_v49 = vpop.permute.xlu0 %1220 }
 0x3a9   : > { %2066 = vmatmul.mubr.msk.bf16.vlgmr.msra.gmra.mrb[0].mxu1 %vm1000_vm6, %v2533_v39  ;;  %v1339_v50 = vsel %vm1000_vm6, %v1334_v48, 0 }
 0x3aa   : > { %2076 = vmatpush3.bf16.xpose.msra.mxu1 %v1117_v45  ;;  %2077 = vmatprep.mubr.msk.bf16.mxu1 %vm2274_vm4, %v2273_v30 }
 0x3ab   : > { %2087 = vmatprep.subr.bf16.mxu1 %v2273_v30 }
 0x3ac   : > { %v1332_v51 = vpop.permute.xlu0 %1331 }
 0x3b1   : > { %2078 = vmatmul.mubr.msk.bf16.vlgmr.msra.gmra.mrb[4].mxu1 %vm1000_vm6, %v1110_v44 }
 0x3b2   : > { %2088 = vmatpush3.bf16.xpose.msra.mxu1 %v1228_v47  ;;  %2089 = vmatprep.mubr.msk.bf16.mxu1 %vm2274_vm4, %v2273_v30 }
 0x3b3   : > { %2099 = vmatprep.subr.bf16.mxu1 %v2273_v30 }
 0x3b9   : > { %2090 = vmatmul.mubr.msk.bf16.vlgmr.msra.gmra.mrb[8].mxu1 %vm1000_vm6, %v1221_v49 }
 0x3ba   : > { %2100 = vmatpush3.bf16.xpose.msra.mxu1 %v1339_v50  ;;  %2101 = vmatprep.mubr.msk.bf16.mxu1 %vm2274_vm4, %v2273_v30 }
 0x3bb   : > { %2111 = vmatprep.subr.bf16.mxu1 %v2273_v30 }
 0x3c1   : > { %2102 = vmatmul.mubr.msk.bf16.vlgmr.msra.gmra.mrb[12].mxu1 %vm1000_vm6, %v1332_v51 }
 0x3c2   : > { %2115 = vmatprep.mubr.msk.bf16.mxu1 %vm2274_vm4, %v2273_v30 }
 0x47c   : > { %v1041_v52 = vpop.f32.mrb[0].mxu1 }
 0x47d   : > { %v1047_v53 = vmul.f32 0.35355338, %v1041_v52  ;;  %v2067_v54 = vpop.f32.mrb[1].mxu1 }
 0x47e   : > { %v1044_v55 = vpop.f32.mrb[2].mxu1 }
 0x47f   : > { %v2068_v56 = vpop.f32.mrb[3].mxu1  ;;  %v1048_v57 = vsel %vm1000_vm6, %v1047_v53, -inf }
 0x480   : > { %1049 = vmax.xlane.f32.xlu1 %v1048_v57 }
 0x484   : > { %v1153_v58 = vpop.f32.mrb[4].mxu1 }
 0x485   : > { %v1159_v59 = vmul.f32 0.35355338, %v1153_v58  ;;  %v2079_v60 = vpop.f32.mrb[5].mxu1 }
 0x486   : > { %v1156_v61 = vpop.f32.mrb[6].mxu1 }
 0x487   : > { %v2080_v62 = vpop.f32.mrb[7].mxu1  ;;  %v1160_v63 = vsel %vm1000_vm6, %v1159_v59, -inf }
 0x488   : > { %1161 = vmax.xlane.f32.xlu0 %v1160_v63 }
 0x48c   : > { %v1264_v0 = vpop.f32.mrb[8].mxu1 }
 0x48d   : > { %v1270_v1 = vmul.f32 0.35355338, %v1264_v0  ;;  %v2091_v2 = vpop.f32.mrb[9].mxu1 }
 0x48e   : > { %v1267_v3 = vpop.f32.mrb[10].mxu1  ;;  %v2201_v2 = vld [vmem:[%s2446_s5] sm:$0xff]  }
 0x48f   : > { %v2092_v4 = vpop.f32.mrb[11].mxu1  ;;  %v1271_v5 = vsel %vm1000_vm6, %v1270_v1, -inf  ;;  %2112 = vmatpush3.bf16.msra.mxu1 %v2201_v2  ;;  %v2202_v3 = vld [vmem:[%s2446_s5 + $0x8] sm:$0xff]   ;;  %s2743_s5 = sld [smem:[#allocation3_spill]] }
 0x490   : > { %1272 = vmax.xlane.f32.xlu0 %v1271_v5  ;;  %2113 = vmatprep.subr.bf16.mxu1 %v2273_v30 }
 0x493   : > { %2114 = vmatpush3.bf16.msra.mxu1 %v2202_v3 }
 0x494   : > { %v1375_v6 = vpop.f32.mrb[12].mxu1  ;;  %2127 = vmatprep.subr.bf16.mxu1 %v2273_v30 }
 0x495   : > { %v1381_v7 = vmul.f32 0.35355338, %v1375_v6  ;;  %v2103_v8 = vpop.f32.mrb[13].mxu1  ;;  %p2008_p8 = scmp.ne.s32.totalorder %s2743_s5, 1 }
 0x496   : > { %v1378_v9 = vpop.f32.mrb[14].mxu1  ;;  %s2745_s21 = sld [smem:[#allocation20_spill]] (!%p2008_p8) }
 0x497   : > { %v2104_v10 = vpop.f32.mrb[15].mxu1  ;;  %v1382_v11 = vsel %vm1000_vm6, %v1381_v7, -inf }
 0x498   : > { %1383 = vmax.xlane.f32.xlu1 %v1382_v11 }
 0x50d   : > { %v1050_v12 = vpop.xlane.xlu1 %1049 }
 0x50e   : > { %v1051_v13 = vsub.f32 %v1047_v53, %v1050_v12 }
 0x510   : > { %v1052_v14 = vmul.f32 1.442695, %v1051_v13 }
 0x512   : > { %2209 = vpow2.f32 %v1052_v14 }
 0x515   : > { %v1162_v15 = vpop.xlane.xlu0 %1161 }
 0x516   : > { %v1163_v16 = vsub.f32 %v1159_v59, %v1162_v15 }
 0x518   : > { %v1164_v17 = vmul.f32 1.442695, %v1163_v16 }
 0x51a   : > { %2211 = vpow2.f32 %v1164_v17 }
 0x51c   : > { %v2210_v18 = vpop.eup %2209 }
 0x51d   : > { %v1273_v19 = vpop.xlane.xlu0 %1272  ;;  %v1054_v20 = vsel %vm1000_vm6, %v2210_v18, 0.0 }
 0x51e   : > { %v1274_v21 = vsub.f32 %v1270_v1, %v1273_v19  ;;  %1055 = vadd.xlane.f32.xlu0 %v1054_v20  ;;  %v1990_v19 = vld [vmem:[%s2739_s3] ss:$0 sm:$0xff] }
 0x520   : > { %v1275_v22 = vmul.f32 1.442695, %v1274_v21 }
 0x522   : > { %2213 = vpow2.f32 %v1275_v22 }
 0x524   : > { %v2212_v23 = vpop.eup %2211 }
 0x525   : > { %v1166_v24 = vsel %vm1000_vm6, %v2212_v23, 0.0  ;;  %v1384_v27 = vpop.xlane.xlu1 %1383 }
 0x526   : > { %1167 = vadd.xlane.f32.xlu1 %v1166_v24  ;;  %v1385_v28 = vsub.f32 %v1381_v7, %v1384_v27 }
 0x528   : > { %v1386_v29 = vmul.f32 1.442695, %v1385_v28 }
 0x52a   : > { %2215 = vpow2.f32 %v1386_v29 }
 0x52c   : > { %v2214_v25 = vpop.eup %2213 }
 0x52d   : > { %v1277_v26 = vsel %vm1000_vm6, %v2214_v25, 0.0 }
 0x52e   : > { %1278 = vadd.xlane.f32.xlu0 %v1277_v26 }
 0x534   : > { %v2216_v31 = vpop.eup %2215 }
 0x535   : > { %v1388_v33 = vsel %vm1000_vm6, %v2216_v31, 0.0 }
 0x537   : > { %1172 = vrot.lane.b32.xlu1 %v2533_v39, %s2282_s19 }
 0x544   : > { %1060 = vrot.lane.b32.xlu0 %v2533_v39, %s2283_s1 }
 0x548   : > { %1394 = vrot.lane.b32.xlu0 %v2533_v39, %s2284_s22  ;;  %s2742_s22 = scalar_lea.vmem %s2694_s13, %s2428_s26 }
 0x55b   : > { %1389 = vadd.xlane.f32.xlu1 %v1388_v33 }
 0x56c   : > { %1283 = vrot.lane.b32.xlu1 %v2533_v39, %s2285_s4 }
 0x5ab   : > { %v1056_v34 = vpop.xlane.xlu0 %1055 }
 0x5ac   : > { %2217 = vrcp.f32 %v1056_v34  ;;  %v2203_v34 = vld [vmem:[%s2463_s24] sm:$0xff]  }
 0x5b3   : > { %v1168_v35 = vpop.xlane.xlu1 %1167 }
 0x5b4   : > { %2219 = vrcp.f32 %v1168_v35  ;;  %v2204_v35 = vld [vmem:[%s2463_s24 + $0x8] sm:$0xff]   ;;  %s2740_s24 = scalar_lea.vmem %s2691_s10, %s2428_s26 }
 0x5b6   : > { %v2218_v36 = vpop.eup %2217 }
 0x5b7   : > { %v1058_v38 = vmul.f32 %v2218_v36, %v2210_v18  ;;  %v1173_v42 = vpop.permute.xlu1 %1172  ;;  %v2206_v36 = vld [vmem:[%s2477_s20 + $0x8] sm:$0xff]  }
 0x5b8   : > { %v1178_v45 = vsel %vm1065_vm7, %v1173_v42, 0  ;;  %v1994_v42 = vld [vmem:[%s2740_s24] ss:$0 sm:$0xff] }
 0x5b9   : > { %v1059_v43 = vpack.c.bf16 %v1058_v38, %v1058_v38 }
 0x5bb   : > { %v1279_v37 = vpop.xlane.xlu0 %1278 }
 0x5bc   : > { %2221 = vrcp.f32 %v1279_v37 }
 0x5be   : > { %v2220_v44 = vpop.eup %2219 }
 0x5bf   : > { %v1061_v40 = vpop.permute.xlu0 %1060  ;;  %v1170_v39 = vmul.f32 %v2220_v44, %v2212_v23  ;;  %v1995_v44 = vld [vmem:[%s2741_s18] ss:$0 sm:$0xff] }
 0x5c0   : > { %v1067_v41 = vsel %vm1065_vm7, %v1061_v40, 0 }
 0x5c1   : > { %2070 = vmatpush3.bf16.msra.mxu0 %v1067_v41  ;;  %v1171_v46 = vpack.c.bf16 %v1170_v39, %v1170_v39 }
 0x5c2   : > { %2081 = vmatprep.subr.bf16.mxu0 %v2273_v30 }
 0x5c3   : > { %v1395_v52 = vpop.permute.xlu0 %1394 }
 0x5c4   : > { %2072 = vmatmul.mubr.msk.bf16.vlgmr.msra.gmra.mrb[4].mxu0 %vm1000_vm6, %v1059_v43  ;;  %v1400_v54 = vsel %vm1065_vm7, %v1395_v52, 0 }
 0x5c5   : > { %2082 = vmatpush3.bf16.msra.mxu0 %v1178_v45  ;;  %2083 = vmatprep.mubr.msk.bf16.mxu0 %vm2274_vm4, %v2273_v30 }
 0x5c6   : > { %2093 = vmatprep.subr.bf16.mxu0 %v2273_v30  ;;  %v2222_v47 = vpop.eup %2221 }
 0x5c7   : > { %v1281_v49 = vmul.f32 %v2222_v47, %v2214_v25  ;;  %v2207_v47 = vld [vmem:[%s2477_s20 + $0x10] sm:$0xff]  }
 0x5c9   : > { %v1282_v53 = vpack.c.bf16 %v1281_v49, %v1281_v49  ;;  %v1996_v49 = vld [vmem:[%s2742_s22] ss:$0 sm:$0xff] }
 0x5cc   : > { %2084 = vmatmul.mubr.msk.bf16.vlgmr.msra.gmra.mrb[8].mxu0 %vm1000_vm6, %v1171_v46 }
 0x5cd   : > { %2095 = vmatprep.mubr.msk.bf16.mxu0 %vm2274_vm4, %v2273_v30 }
 0x5e8   : > { %v1390_v48 = vpop.xlane.xlu1 %1389 }
 0x5e9   : > { %2223 = vrcp.f32 %v1390_v48  ;;  %v2208_v48 = vld [vmem:[%s2477_s20 + $0x18] sm:$0xff]  }
 0x5ec   : > { %v1284_v50 = vpop.permute.xlu1 %1283 }
 0x5ed   : > { %v1289_v51 = vsel %vm1065_vm7, %v1284_v50, 0 }
 0x5ee   : > { %2094 = vmatpush3.bf16.msra.mxu0 %v1289_v51 }
 0x5ef   : > { %2105 = vmatprep.subr.bf16.mxu0 %v2273_v30 }
 0x5f1   : > { %2096 = vmatmul.mubr.msk.bf16.vlgmr.msra.gmra.mrb[12].mxu0 %vm1000_vm6, %v1282_v53 }
 0x5f2   : > { %2106 = vmatpush3.bf16.msra.mxu0 %v1400_v54  ;;  %2107 = vmatprep.mubr.msk.bf16.mxu0 %vm2274_vm4, %v2273_v30 }
 0x5f3   : > { %v2224_v55 = vpop.eup %2223  ;;  %2119 = vmatprep.subr.bf16.mxu0 %v2273_v30 }
 0x5f4   : > { %v1392_v56 = vmul.f32 %v2224_v55, %v2216_v31 }
 0x5f6   : > { %v1393_v57 = vpack.c.bf16 %v1392_v56, %v1392_v56 }
 0x5f9   : > { %2108 = vmatmul.mubr.msk.bf16.vlgmr.msra.gmra.mrb[16].mxu0 %vm1000_vm6, %v1393_v57 }
 0x5fa   : > { %2123 = vmatprep.mubr.msk.bf16.mxu0 %vm2274_vm4, %v2273_v30  ;;  %2120 = vmatpush3.bf16.msra.mxu0 %v2203_v34 }
 0x5fb   : > { %2121 = vmatprep.subr.bf16.mxu0 %v2273_v30 }
 0x5fe   : > { %2122 = vmatpush3.bf16.msra.mxu0 %v2204_v35 }
 0x697   : > { %v1103_v58 = vpop.f32.mrb[4].mxu0 }
 0x698   : > { %v2073_v59 = vpop.f32.mrb[5].mxu0 }
 0x699   : > { %v1106_v60 = vpop.f32.mrb[6].mxu0 }
 0x69a   : > { %v2074_v61 = vpop.f32.mrb[7].mxu0 }
 0x69f   : > { %v1214_v62 = vpop.f32.mrb[8].mxu0 }
 0x6a0   : > { %1443 = vrot.lane.b32.xlu1 %v1214_v62, %s2286_s8  ;;  %v2085_v63 = vpop.f32.mrb[9].mxu0 }
 0x6a1   : > { %v1217_v0 = vpop.f32.mrb[10].mxu0 }
 0x6a2   : > { %v2086_v1 = vpop.f32.mrb[11].mxu0 }
 0x6c4   : > { %v1325_v4 = vpop.f32.mrb[12].mxu0 }
 0x6c5   : > { %1447 = vrot.lane.b32.xlu0 %v1325_v4, %s2287_s2  ;;  %v2097_v5 = vpop.f32.mrb[13].mxu0 }
 0x6c6   : > { %v1328_v6 = vpop.f32.mrb[14].mxu0 }
 0x6c7   : > { %v2098_v7 = vpop.f32.mrb[15].mxu0 }
 0x6cc   : > { %v1436_v8 = vpop.f32.mrb[16].mxu0 }
 0x6cd   : > { %1451 = vrot.lane.b32.xlu1 %v1436_v8, %s2288_s27  ;;  %v2109_v9 = vpop.f32.mrb[17].mxu0 }
 0x6ce   : > { %v1439_v10 = vpop.f32.mrb[18].mxu0  ;;  %v2006_v9 = vld [vmem:[%s821_s25] ss:$0 sm:$0xff]  ;;  %s2744_s25 = sld [smem:[#allocation19_spill]] (!%p2008_p8) }
 0x6cf   : > { %v2110_v11 = vpop.f32.mrb[19].mxu0 }
 0x6d0   : > { %v2007_v11 = vld [vmem:[%s824_s6] ss:$0 sm:$0xff] }
 0x712   : > { %v1444_v12 = vpop.permute.xlu1 %1443 }
 0x713   : > { %v1454_v14 = vsel %vm1000_vm6, %v1103_v58, %v1444_v12 }
 0x737   : > { %v1448_v13 = vpop.permute.xlu0 %1447 }
 0x738   : > { %v1456_v15 = vsel %vm1455_vm8, %v1454_v14, %v1448_v13 }
 0x73f   : > { %v1452_v16 = vpop.permute.xlu1 %1451 }
 0x740   : > { %v1458_v17 = vsel %vm1457_vm9, %v1456_v15, %v1452_v16 }
 0x741   : > { %v1464_v18 = vpack.c.bf16 %v1458_v17, %v1458_v17 }
 0x743   : > { %2116 = vmatmul.mubr.msk.bf16.vlgmr.msra.gmra.mrb[16].mxu1 %vm952_vm5, %v1464_v18 }
 0x744   : > { %2135 = vmatprep.mubr.msk.bf16.mxu1 %vm2274_vm4, %v2273_v30 }
 0x816   : > { %v1520_v20 = vpop.f32.mrb[16].mxu1 }
 0x817   : > { %v1521_v21 = vadd.f32 %v1990_v19, %v1520_v20  ;;  %v2117_v22 = vpop.f32.mrb[17].mxu1 }
 0x818   : > { %v1523_v23 = vpop.f32.mrb[18].mxu1 }
 0x819   : > { %v2118_v24 = vpop.f32.mrb[19].mxu1  ;;  %v1526_v25 = vadd.f32 %v1521_v21, %v2517_v32  ;;  %v2205_v32 = vld [vmem:[%s2477_s20] sm:$0xff]  }
 0x81a   : > { %2128 = vmatpush3.bf16.msra.mxu1 %v2205_v32  ;;  %v2009_v24 = vld [vmem:[%s2744_s25] ss:$0 sm:$0xff] (!%p2008_p8) }
 0x81b   : > { %v1529_v26 = vsel %vm952_vm5, %v1526_v25, 0.0  ;;  %2129 = vmatprep.subr.bf16.mxu1 %v2273_v30 }
 0x81c   : > { %1530 = vadd.xlane.f32.xlu0 %v1529_v26  ;;  %v2010_v26 = vld [vmem:[%s2745_s21] ss:$0 sm:$0xff] (!%p2008_p8) }
 0x81e   : > { %2130 = vmatpush3.bf16.msra.mxu1 %v2206_v36 }
 0x81f   : > { %2131 = vmatprep.subr.bf16.mxu1 %v2273_v30 }
 0x822   : > { %2132 = vmatpush3.bf16.msra.mxu1 %v2207_v47 }
 0x823   : > { %2133 = vmatprep.subr.bf16.mxu1 %v2273_v30  ;;  %v2000_v30 = vld [vmem:[%s818_s28] ss:$0 sm:$0xff] }
 0x826   : > { %2134 = vmatpush3.bf16.msra.mxu1 %v2208_v48 }
 0x8a9   : > { %v1531_v27 = vpop.xlane.xlu0 %1530 }
 0x8aa   : > { %v1533_v28 = vmul.f32 0.03125, %v1531_v27 }
 0x8ac   : > { %v1534_v29 = vsub.f32 %v1526_v25, %v1533_v28 }
 0x8ae   : > { %v1535_v31 = vmul.f32 %v1534_v29, %v1534_v29 }
 0x8b0   : > { %v1536_v33 = vsel %vm952_vm5, %v1535_v31, 0.0 }
 0x8b1   : > { %1537 = vadd.xlane.f32.xlu1 %v1536_v33 }
 0x93e   : > { %v1538_v37 = vpop.xlane.xlu1 %1537 }
 0x93f   : > { %v1539_v38 = vmul.f32 0.03125, %v1538_v37 }
 0x941   : > { %v1540_v40 = vadd.f32 1e-05, %v1539_v38 }
 0x943   : > { %2225 = vrsqrt.f32 %v1540_v40 }
 0x94d   : > { %v2226_v41 = vpop.eup %2225 }
 0x94e   : > { %v1542_v43 = vmul.f32 %v2226_v41, %v1534_v29 }
 0x950   : > { %v1549_v45 = vmul.f32 %v1994_v42, %v1542_v43 }
 0x952   : > { %v1556_v39 = vadd.f32 %v1995_v44, %v1549_v45 }
 0x954   : > { %v1562_v46 = vpack.c.bf16 %v1556_v39, %v1556_v39 }
 0x956   : > { %2124 = vmatmul.mubr.msk.bf16.vlgmr.msra.gmra.mrb[20].mxu0 %vm952_vm5, %v1562_v46 }
 0xa29   : > { %v1618_v50 = vpop.f32.mrb[20].mxu0 }
 0xa2a   : > { %v1619_v51 = vadd.f32 %v1996_v49, %v1618_v50  ;;  %v2125_v52 = vpop.f32.mrb[21].mxu0 }
 0xa2b   : > { %v1621_v53 = vpop.f32.mrb[22].mxu0 }
 0xa2c   : > { %v1624_v54 = vmax.f32 %v1619_v51, 0.0  ;;  %v2126_v55 = vpop.f32.mrb[23].mxu0 }
 0xa2e   : > { %v1634_v56 = vpack.c.bf16 %v1624_v54, %v1624_v54 }
 0xa30   : > { %2136 = vmatmul.mubr.msk.bf16.vlgmr.msra.gmra.mrb[20].mxu1 %vm1665_vm10, %v1634_v56 }
 0xb03   : > { %v1703_v57 = vpop.f32.mrb[20].mxu1 }
 0xb04   : > { %v1704_v58 = vadd.f32 %v2000_v30, %v1703_v57  ;;  %v2137_v59 = vpop.f32.mrb[21].mxu1 }
 0xb05   : > { %v1706_v60 = vpop.f32.mrb[22].mxu1 }
 0xb06   : > { %v2138_v61 = vpop.f32.mrb[23].mxu1  ;;  %v1709_v62 = vadd.f32 %v1704_v58, %v1556_v39 }
 0xb08   : > { %v1712_v63 = vsel %vm952_vm5, %v1709_v62, 0.0 }
 0xb09   : > { %1713 = vadd.xlane.f32.xlu0 %v1712_v63 }
 0xb96   : > { %v1714_v0 = vpop.xlane.xlu0 %1713 }
 0xb97   : > { %v1715_v1 = vmul.f32 0.03125, %v1714_v0 }
 0xb99   : > { %v1716_v2 = vsub.f32 %v1709_v62, %v1715_v1 }
 0xb9b   : > { %v1717_v3 = vmul.f32 %v1716_v2, %v1716_v2 }
 0xb9d   : > { %v1718_v4 = vsel %vm952_vm5, %v1717_v3, 0.0 }
 0xb9e   : > { %1719 = vadd.xlane.f32.xlu0 %v1718_v4 }
 0xc2b   : > { %v1720_v5 = vpop.xlane.xlu0 %1719 }
 0xc2c   : > { %v1721_v6 = vmul.f32 0.03125, %v1720_v5 }
 0xc2e   : > { %v1722_v7 = vadd.f32 1e-05, %v1721_v6 }
 0xc30   : > { %2227 = vrsqrt.f32 %v1722_v7 }
 0xc3a   : > { %v2228_v8 = vpop.eup %2227 }
 0xc3b   : > { %v1724_v10 = vmul.f32 %v2228_v8, %v1716_v2  ;;  %1743 = sbr.rel (%p2008_p8) target bundleno = 3451 (0xd7b), region = 108 }
 0xc3d   : > { %v1731_v12 = vmul.f32 %v2006_v9, %v1724_v10 }
 0xc3f   : > { %v1738_v13 = vadd.f32 %v2007_v11, %v1731_v12 }
 0xc41   : > { %1739 = vst.msk [vmem:[#allocation2] sm:$0xff] %vm952_vm5, %v1738_v13  ;;  %v1746_v14 = vsel (!%p2008_p8), %vm952_vm5, %v1738_v13, 0.0 }
 0xc42   : > { %1747 = vadd.xlane.f32.xlu0 %v1746_v14 }
 0xccf   : > { %v1748_v15 = vpop.xlane.xlu0 %1747 }
 0xcd0   : > { %v1749_v16 = vmul.f32 0.03125, %v1748_v15 }
 0xcd2   : > { %v1750_v17 = vsub.f32 %v1738_v13, %v1749_v16 }
 0xcd4   : > { %v1751_v18 = vmul.f32 %v1750_v17, %v1750_v17 }
 0xcd6   : > { %v1752_v19 = vsel %vm952_vm5, %v1751_v18, 0.0 }
 0xcd7   : > { %1753 = vadd.xlane.f32.xlu0 %v1752_v19 }
 0xd64   : > { %v1754_v20 = vpop.xlane.xlu0 %1753 }
 0xd65   : > { %v1755_v21 = vmul.f32 0.03125, %v1754_v20 }
 0xd67   : > { %v1756_v22 = vadd.f32 1e-05, %v1755_v21 }
 0xd69   : > { %2229 = vrsqrt.f32 %v1756_v22 }
 0xd73   : > { %v2230_v23 = vpop.eup %2229 }
 0xd74   : > { %v1758_v25 = vmul.f32 %v2230_v23, %v1750_v17 }
 0xd76   : > { %v1765_v27 = vmul.f32 %v2009_v24, %v1758_v25 }
 0xd78   : > { %v1772_v28 = vadd.f32 %v2010_v26, %v1765_v27 }
 0xd7a   : > { %1773 = vst.msk [vmem:[%s2490_s12] sm:$0xff] %vm952_vm5, %v1772_v28 }
 0xd7b PF: > { %s2746_s30 = sld [smem:[#allocation6_spill]]  ;;  %s2747_s1 = sld [smem:[#allocation4_spill]] }
 0xd7c   : > { %s2748_s22 = sld [smem:[#allocation5_spill]]  ;;  %s2749_s23 = sld [smem:[#allocation7_spill]] }
 0xd7d   : > { %s2750_s24 = sld [smem:[#allocation8_spill]] }
 0xd81   : > { %s30_s2 = sadd.s32 1, %s2746_s30  }
 0xd82   : > { %p27_p9 = scmp.ge.s32.totalorder %s30_s2, 6  }
 0xd84   :  { %29 = sbr.rel (!%p27_p9) target bundleno = 13 (0xd), region = 174 }

// kernel: transformer_model_forward.3
= control target key start
LH: loop header
LB: loop body
LE: loop exit
PB: predicated region body
PF: predicated region fallthrough
CT: control target
= control target key end

     0   :  { %s4179_s6 = smov 1   ;;  %s4180_s10 = smov 2   ;;  %s4938_s0 = inlined_call_operand.smem [shape: u32[33], index: -1, kind: input, shape index: {}] }
   0x1   :  { %s4243_s5 = sld [smem:[%s4938_s0]]   ;;  %s4181_s14 = smov 3  }
   0x2   :  { %s4248_s9 = sld [smem:[%s4938_s0 + %s4179_s6]]   ;;  %s4182_s18 = smov 4  }
   0x3   :  { %s4253_s13 = sld [smem:[%s4938_s0 + %s4180_s10]]   ;;  %s4183_s22 = smov 5  }
   0x4   :  { %s4258_s17 = sld [smem:[%s4938_s0 + %s4181_s14]]   ;;  %s4184_s26 = smov 6  }
   0x5   :  { %s4263_s21 = sld [smem:[%s4938_s0 + %s4182_s18]]   ;;  %s4185_s30 = smov 7  }
   0x6   :  { %s4268_s25 = sld [smem:[%s4938_s0 + %s4183_s22]]   ;;  %s4186_s4 = smov 8  }
   0x7   :  { %4965 = sst [smem:[#allocation13_spill]] %s4243_s5  ;;  %s4187_s10 = smov 9  }
   0x8   :  { %4966 = sst [smem:[#allocation14_spill]] %s4248_s9  ;;  %s4188_s15 = smov 10  }
   0x9   :  { %4967 = sst [smem:[#allocation15_spill]] %s4253_s13  ;;  %s4189_s20 = smov 11  }
   0xa   :  { %4968 = sst [smem:[#allocation16_spill]] %s4258_s17  ;;  %s4191_s1 = smov 13  }
   0xb   :  { %4969 = sst [smem:[#allocation17_spill]] %s4263_s21  ;;  %s4192_s7 = smov 14  }
   0xc   :  { %4970 = sst [smem:[#allocation18_spill]] %s4268_s25  ;;  %s4194_s22 = smov 16  }
   0xd   :  { %s4273_s29 = sld [smem:[%s4938_s0 + %s4184_s26]]   ;;  %s4190_s26 = smov 12  }
   0xe   :  { %s4278_s3 = sld [smem:[%s4938_s0 + %s4185_s30]]   ;;  %s4195_s28 = smov 17  }
   0xf   :  { %s4283_s8 = sld [smem:[%s4938_s0 + %s4186_s4]]  }
  0x10   :  { %s4288_s14 = sld [smem:[%s4938_s0 + %s4187_s10]]  }
  0x11   :  { %s4293_s19 = sld [smem:[%s4938_s0 + %s4188_s15]]   ;;  %s4193_s15 = smov 15  }
  0x12   :  { %s4298_s24 = sld [smem:[%s4938_s0 + %s4189_s20]]  }
  0x13   :  { %4971 = sst [smem:[#allocation19_spill]] %s4273_s29 }
  0x14   :  { %4972 = sst [smem:[#allocation20_spill]] %s4278_s3 }
  0x15   :  { %4973 = sst [smem:[#allocation21_spill]] %s4283_s8 }
  0x16   :  { %4974 = sst [smem:[#allocation22_spill]] %s4288_s14 }
  0x17   :  { %4975 = sst [smem:[#allocation23_spill]] %s4293_s19 }
  0x18   :  { %4976 = sst [smem:[#allocation24_spill]] %s4298_s24 }
  0x19   :  { %s4303_s30 = sld [smem:[%s4938_s0 + %s4190_s26]]  }
  0x1a   :  { %s4308_s6 = sld [smem:[%s4938_s0 + %s4191_s1]]  }
  0x1b   :  { %s4313_s12 = sld [smem:[%s4938_s0 + %s4192_s7]]   ;;  %s4196_s7 = smov 18  }
  0x1c   :  { %s4318_s20 = sld [smem:[%s4938_s0 + %s4193_s15]]   ;;  %s4197_s15 = smov 19  }
  0x1d   :  { %s4323_s27 = sld [smem:[%s4938_s0 + %s4194_s22]]   ;;  %s4198_s22 = smov 20  }
  0x1e   :  { %s4328_s4 = sld [smem:[%s4938_s0 + %s4195_s28]]   ;;  %s4199_s28 = smov 21  }
  0x1f   :  { %4977 = sst [smem:[#allocation25_spill]] %s4303_s30 }
  0x20   :  { %4978 = sst [smem:[#allocation26_spill]] %s4308_s6 }
  0x21   :  { %4979 = sst [smem:[#allocation27_spill]] %s4313_s12 }
  0x22   :  { %4980 = sst [smem:[#allocation28_spill]] %s4318_s20 }
  0x23   :  { %s4333_s13 = sld [smem:[%s4938_s0 + %s4196_s7]]   ;;  %s4200_s7 = smov 22  }
  0x24   :  { %s4338_s3 = sld [smem:[%s4938_s0 + %s4197_s15]]   ;;  %s4201_s15 = smov 23  }
  0x25   :  { %s4343_s29 = sld [smem:[%s4938_s0 + %s4198_s22]]   ;;  %s4202_s22 = smov 24  }
  0x26   :  { %s4348_s25 = sld [smem:[%s4938_s0 + %s4199_s28]]   ;;  %s4203_s28 = smov 25  }
  0x27   :  { %s4353_s21 = sld [smem:[%s4938_s0 + %s4200_s7]]   ;;  %s4204_s7 = smov 26  }
  0x28   :  { %s4358_s17 = sld [smem:[%s4938_s0 + %s4201_s15]]   ;;  %s4205_s15 = smov 27  }
  0x29   :  { %4981 = sst [smem:[#allocation29_spill]] %s4333_s13 }
  0x2a   :  { %4982 = sst [smem:[#allocation30_spill]] %s4338_s3 }
  0x2b   :  { %4983 = sst [smem:[#allocation31_spill]] %s4343_s29 }
  0x2c   :  { %4984 = sst [smem:[#allocation32_spill]] %s4348_s25 }
  0x2d   :  { %4985 = sst [smem:[#allocation33_spill]] %s4353_s21 }
  0x2e   :  { %4986 = sst [smem:[#allocation34_spill]] %s4358_s17 }
  0x2f   :  { %s4363_s29 = sld [smem:[%s4938_s0 + %s4202_s22]]   ;;  %s4206_s22 = smov 28  }
  0x30   :  { %s4368_s25 = sld [smem:[%s4938_s0 + %s4203_s28]]   ;;  %s4207_s28 = smov 29  }
  0x31   :  { %s4373_s21 = sld [smem:[%s4938_s0 + %s4204_s7]]   ;;  %s4208_s7 = smov 30  }
  0x32   :  { %s4378_s17 = sld [smem:[%s4938_s0 + %s4205_s15]]   ;;  %s4209_s15 = smov 31  }
  0x35   :  { %4987 = sst [smem:[#allocation35_spill]] %s4363_s29 }
  0x36   :  { %4988 = sst [smem:[#allocation36_spill]] %s4368_s25 }
  0x37   :  { %4989 = sst [smem:[#allocation37_spill]] %s4373_s21 }
  0x38   :  { %4990 = sst [smem:[#allocation38_spill]] %s4378_s17 }
  0x39   :  { %s4383_s29 = sld [smem:[%s4938_s0 + %s4206_s22]]   ;;  %s4210_s22 = smov 32  }
  0x3a   :  { %s4388_s25 = sld [smem:[%s4938_s0 + %s4207_s28]]  }
  0x3b   :  { %s4393_s21 = sld [smem:[%s4938_s0 + %s4208_s7]]  }
  0x3c   :  { %s4398_s17 = sld [smem:[%s4938_s0 + %s4209_s15]]  }
  0x3d   :  { %s4403_s3 = sld [smem:[%s4938_s0 + %s4210_s22]]  }
  0x3f   :  { %4991 = sst [smem:[#allocation39_spill]] %s4383_s29 }
  0x40   :  { %4992 = sst [smem:[#allocation40_spill]] %s4388_s25 }
  0x41   :  { %4993 = sst [smem:[#allocation41_spill]] %s4393_s21 }
  0x42   :  { %4994 = sst [smem:[#allocation42_spill]] %s4398_s17 }
  0x43   :  { %4995 = sst [smem:[#allocation43_spill]] %s4403_s3 }
  0x44   :  { %70 = vsyncpa [#allocation4], 0 }
  0x45   :  { %71 = vsyncpa [#allocation7], 0 }
  0x46   :  { %72 = vsyncpa [#allocation5], 0 }
  0x47   :  { %74 = vsyncpa [#allocation5 + $0x1], 0  ;;  %s4405_s28 = smov 0   ;;  %s4407_s1 = smov 0  }
  0x48   :  { %s4409_s2 = smov 0   ;;  %s4411_s7 = smov 0  }
  0x49   :  { %s4413_s10 = smov 0   ;;  %s4415_s11 = smov 0  }
  0x4a   :  { %s4417_s15 = smov 0   ;;  %s4419_s0 = smov 0  }
  0x4b LB: > { %s4996_s29 = sld [smem:[#allocation39_spill]]  ;;  %s4997_s25 = sld [smem:[#allocation40_spill]]  ;;  %s4157_s2 = sphi %s4409_s2, %s5089_s2   ;;  %s4153_s1 = sphi %s4407_s1, %s5088_s1   ;;  %s4149_s28 = sphi %s4405_s28, %s5087_s28   ;;  %s4177_s0 = sphi %s4419_s0, %s80_s0   ;;  %s4173_s15 = sphi %s4417_s15, %s5093_s15   ;;  %s4169_s11 = sphi %s4415_s11, %s5092_s11   ;;  %s4165_s10 = sphi %s4413_s10, %s5091_s10   ;;  %s4161_s7 = sphi %s4411_s7, %s5090_s7  }
  0x4c   : > { %s4998_s17 = sld [smem:[#allocation42_spill]]  ;;  %4999 = sst [smem:[#allocation44_spill]] %s4149_s28 }
  0x4d   : > { %5000 = sst [smem:[#allocation45_spill]] %s4153_s1  ;;  %s3444_s16 = sadd.s32 4294967295, %s4177_s0  }
  0x4e   : > { %5001 = sst [smem:[#allocation46_spill]] %s4157_s2  ;;  %s3445_s18 = sadd.s32 4294967294, %s4177_s0  }
  0x4f   : > { %5002 = sst [smem:[#allocation47_spill]] %s4161_s7  ;;  %s89_s22 = sadd.s32 1, %s4169_s11 }
  0x50   : > { %5003 = sst [smem:[#allocation48_spill]] %s4165_s10  ;;  %s92_s23 = sadd.s32 1, %s4173_s15 }
  0x51   : > { %5004 = sst [smem:[#allocation49_spill]] %s4169_s11  ;;  %p90_p0 = scmp.ge.s32.totalorder %s89_s22, 2 }
  0x52   : > { %5005 = sst [smem:[#allocation50_spill]] %s4173_s15  ;;  %s881_s26 = sadd.s32 1, %s4157_s2 }
  0x53   : > { %5006 = sst [smem:[#allocation51_spill]] %s4177_s0  ;;  %p891_p1 = scmp.ne.s32.totalorder %s4157_s2, %s4153_s1 }
  0x54   : > { %p892_p2 = scmp.eq.s32.totalorder %s3444_s16, 3  ;;  %s5095_s22 = smov (%p90_p0, %s89_s22), 0 }
  0x55   : > { %5007 = sst [smem:[#allocation52_spill]] %s5095_s22  ;;  %s5097_s23 = smov (!%p90_p0, %s92_s23), %s4173_s15 }
  0x56   : > { %p4455_p3 = por %p892_p2, %p891_p1  ;;  %p897_p4 = scmp.ne.s32.totalorder %s4153_s1, %s4149_s28 }
  0x57   : > { %p94_p5 = scmp.ge.s32.totalorder %s5097_s23, 2  ;;  %p898_p6 = scmp.eq.s32.totalorder %s3445_s18, 3 }
  0x58   : > { %s5008_s3 = scalar_select %p4455_p3, 1, 0 }
  0x59   : > { %p3446_p7 = scmp.ge.s32.totalorder %s4177_s0, 1  ;;  %p905_p8 = scmp.lt.s32.totalorder %s4177_s0, 5 }
  0x5a   : > { %5009 = sst [smem:[#allocation53_spill]] %s5008_s3  ;;  %s5099_s23 = smov (%p94_p5, %s5097_s23), 0 }
  0x5b   : > { %5010 = sst [smem:[#allocation54_spill]] %s5099_s23  ;;  %p4465_p9 = por %p898_p6, %p897_p4 }
  0x5c   : > { %p4469_p10 = pnand %p3446_p7, %p905_p8  ;;  %s878_s28 = ssub.s32 %s4173_s15, %s5099_s23 }
  0x5d   : > { %s5011_s11 = scalar_select %p4465_p9, 1, 0 }
  0x5e   : > { %s5013_s22 = scalar_select %p4469_p10, 1, 0 }
  0x5f   : > { %5012 = sst [smem:[#allocation55_spill]] %s5011_s11  ;;  %p879_p11 = scmp.eq.s32.totalorder %s878_s28, 0 }
  0x60   : > { %p3791_p12 = pneg %p4469_p10  ;;  %p4477_p13 = scmp.eq.s32.totalorder %s3444_s16, 0 }
  0x61   : > { %s4482_s0 = scalar_select %p879_p11, %s4157_s2, %s881_s26  }
  0x62   : > { %s5014_s18 = scalar_select %p4477_p13, 1, 0 }
  0x63   : > { %5015 = sst [smem:[#allocation56_spill]] %s4482_s0  ;;  %p4486_p0 = pnand %p4477_p13, %p3791_p12 }
  0x64   : > { %s4211_s3 = smov [#allocation6]   ;;  %s3991_s23 = scalar_lea.hbm %s4997_s25, 16 }
  0x65   : > { %s947_s21 = sshll.u32 %s4211_s3, 4  ;;  %p3992_p1 = scmp.ne.s32.totalorder %s4997_s25, %s3991_s23  ;;  %s948_s21 = int_to_ptr.vmem [resolvable:$true] %s947_s21 }
  0x66   : > { %p4494_p2 = pneg %p4486_p0  ;;  %p3998_p6 = scmp.lt.u32.totalorder %s3991_s23, %s4997_s25 }
  0x68   : > { %p3994_p4 = pnand %p4494_p2, %p3992_p1 }
  0x6a   : > { %p3995_p5 = pneg %p3994_p4 }
  0x6c   : > { %p4000_p7 = pnand %p3998_p6, %p3995_p5 }
  0x6e   : > { %4003 = shalt.err (!%p4000_p7)
}
  0x6f   : > { %s4004_s16 = scalar_lea.vmem %s948_s21, 16  ;;  %s4011_s3 = scalar_lea.vmem %s948_s21, 32 }
  0x70   : > { %p4005_p8 = scmp.ne.s32.totalorder %s948_s21, %s4004_s16  ;;  %p4012_p9 = scmp.lt.s32.totalorder %s948_s21, %s948_s21 }
  0x71   : > { %p4013_p3 = scmp.lt.s32.totalorder %s4011_s3, %s4004_s16 }
  0x72   : > { %p4007_p11 = pnand %p4005_p8, %p4494_p2 }
  0x73   : > { %p4014_p13 = por %p4013_p3, %p4012_p9 }
  0x74   : > { %p4008_p12 = pneg %p4007_p11 }
  0x76   : > { %p4015_p10 = pnand %p4014_p13, %p4008_p12 }
  0x78   : > { %4018 = shalt.err (!%p4015_p10)
}
  0x79   : > { %3797 = dma.hbm_to_vmem [thread:$0]  (!%p4486_p0), %s4997_s25, 16, %s948_s21, [#allocation7]  }
  0x7a   : > { %s4212_s23 = smov [#allocation3]   ;;  %s4213_s15 = smov [#allocation8]  }
  0x7b   : > { %s936_s26 = sshll.u32 %s4212_s23, 4  ;;  %s961_s0 = sshll.u32 %s4213_s15, 4  ;;  %s937_s26 = int_to_ptr.vmem [resolvable:$true] %s936_s26  ;;  %s4506_s0 = int_to_ptr.vmem [resolvable:$true] %s961_s0 }
  0x7c   : > { %s4019_s2 = scalar_lea.hbm %s4996_s29, 16 }
  0x7d   : > { %p4020_p1 = scmp.ne.s32.totalorder %s4996_s29, %s4019_s2  ;;  %p4026_p10 = scmp.lt.u32.totalorder %s4019_s2, %s4996_s29 }
  0x7f   : > { %p4022_p3 = pnand %p4020_p1, %p4494_p2 }
  0x81   : > { %p4023_p9 = pneg %p4022_p3 }
  0x83   : > { %p4028_p13 = pnand %p4026_p10, %p4023_p9 }
  0x85   : > { %4031 = shalt.err (!%p4028_p13)
}
  0x86   : > { %s4032_s16 = scalar_lea.vmem %s937_s26, 16  ;;  %s4039_s21 = scalar_lea.vmem %s937_s26, 32 }
  0x87   : > { %p4033_p4 = scmp.ne.s32.totalorder %s937_s26, %s4032_s16  ;;  %p4040_p7 = scmp.lt.s32.totalorder %s937_s26, %s937_s26 }
  0x88   : > { %p4041_p8 = scmp.lt.s32.totalorder %s4039_s21, %s4032_s16 }
  0x89   : > { %p4035_p5 = pnand %p4033_p4, %p4494_p2 }
  0x8a   : > { %p4042_p11 = por %p4041_p8, %p4040_p7 }
  0x8b   : > { %p4036_p6 = pneg %p4035_p5 }
  0x8d   : > { %p4043_p12 = pnand %p4042_p11, %p4036_p6 }
  0x8f   : > { %4046 = shalt.err (!%p4043_p12)
}
  0x90   : > { %3794 = dma.hbm_to_vmem [thread:$0]  (!%p4486_p0), %s4996_s29, 16, %s937_s26, [#allocation4]  }
  0x91   : > { %s4047_s2 = scalar_lea.hbm %s4998_s17, 16 }
  0x92   : > { %p4048_p1 = scmp.ne.s32.totalorder %s4998_s17, %s4047_s2  ;;  %p4054_p10 = scmp.lt.u32.totalorder %s4047_s2, %s4998_s17 }
  0x94   : > { %p4050_p3 = pnand %p4048_p1, %p4494_p2 }
  0x96   : > { %p4051_p9 = pneg %p4050_p3 }
  0x98   : > { %p4056_p13 = pnand %p4054_p10, %p4051_p9 }
  0x9a   : > { %4059 = shalt.err (!%p4056_p13)
}
  0x9b   : > { %s4060_s15 = scalar_lea.vmem %s4506_s0, 16  ;;  %s4067_s3 = scalar_lea.vmem %s4506_s0, 32 }
  0x9c   : > { %p4061_p4 = scmp.ne.s32.totalorder %s4506_s0, %s4060_s15  ;;  %p4068_p7 = scmp.lt.s32.totalorder %s4506_s0, %s4506_s0 }
  0x9d   : > { %p4069_p8 = scmp.lt.s32.totalorder %s4067_s3, %s4060_s15 }
  0x9e   : > { %p4063_p5 = pnand %p4061_p4, %p4494_p2 }
  0x9f   : > { %p4070_p11 = por %p4069_p8, %p4068_p7 }
  0xa0   : > { %p4064_p6 = pneg %p4063_p5 }
  0xa2   : > { %p4071_p12 = pnand %p4070_p11, %p4064_p6 }
  0xa4   : > { %4074 = shalt.err (!%p4071_p12)
}
  0xa5   : > { %3800 = dma.hbm_to_vmem [thread:$0]  (!%p4486_p0), %s4998_s17, 16, %s4506_s0, [#allocation7]  }
  0xa6   : > { %p5018_p1 = scmp.ne.s32.totalorder %s5013_s22, 0 }
  0xa8   : > { %1122 = sbr.rel (%p5018_p1) target bundleno = 5615 (0x15ef), region = 148 }
  0xaf   : > { %p5019_p3 = scmp.ne.s32.totalorder %s5014_s18, 0 }
  0xb1   : > { %4136 = dma.done.wait (%p5019_p3), [#allocation4], 16  }
  0xb2   : > { %4138 = vsyncadd (%p5019_p3), [#allocation4], 4294967280 }
  0xb3   : > { %4140 = dma.done.wait (%p5019_p3), [#allocation7], 32  }
  0xb4   : > { %4142 = vsyncadd (%p5019_p3), [#allocation7], 4294967264  ;;  %s5020_s5 = sld [smem:[#allocation13_spill]]  ;;  %s5021_s9 = sld [smem:[#allocation14_spill]] }
  0xb5   : > { %s5023_s8 = sld [smem:[#allocation21_spill]]  ;;  %s5024_s19 = sld [smem:[#allocation23_spill]] }
  0xb6   : > { %s4955_s11 = sand.u32 1, %s4153_s1   ;;  %p1289_p0 = scmp.lt.s32.totalorder %s4165_s10, 1 }
  0xb7   : > { %s5028_s12 = sld [smem:[#allocation27_spill]]  ;;  %s4548_s0 = sshll.u32 %s4955_s11, 2 }
  0xb8   : > { %p1297_p2 = scmp.lt.s32.totalorder %s4161_s7, 1  ;;  %s5030_s13 = sld [smem:[#allocation29_spill]] }
  0xb9   : > { %s1290_s22 = scalar_select %p1289_p0, %s4165_s10, 1 }
  0xba   : > { %s4553_s18 = scalar_select %p1297_p2, %s4161_s7, 1 }
  0xbb   : > { %s3456_s28 = sshll.u32 %s1290_s22, 2  ;;  %s5031_s23 = sld [smem:[#allocation30_spill]] }
  0xbc   : > { %s3457_s26 = sshll.u32 %s1290_s22, 3  ;;  %s5032_s16 = sld [smem:[#allocation31_spill]] }
  0xbd   : > { %s4556_s21 = scalar_lea.vmem %s5020_s5, %s3456_s28  ;;  %s5034_s2 = sld [smem:[#allocation32_spill]] }
  0xbe   : > { %5033 = sst [smem:[#allocation57_spill]] %s4556_s21  ;;  %s4559_s15 = scalar_lea.vmem %s5021_s9, %s3457_s26 }
  0xbf   : > { %5035 = sst [smem:[#allocation58_spill]] %s4559_s15  ;;  %s5036_s3 = sld [smem:[#allocation33_spill]] }
  0xc0   : > { %s3540_s11 = sshll.u32 %s4553_s18, 4  ;;  %s5037_s17 = sld [smem:[#allocation34_spill]] }
  0xc1   : > { %s4565_s29 = scalar_lea.vmem %s5023_s8, %s3540_s11  ;;  %s5039_s1 = sld [smem:[#allocation35_spill]] }
  0xc2   : > { %5038 = sst [smem:[#allocation59_spill]] %s4565_s29  ;;  %s4568_s10 = scalar_lea.vmem %s5024_s19, %s3540_s11 }
  0xc3   : > { %5040 = sst [smem:[#allocation60_spill]] %s4568_s10  ;;  %s5042_s28 = sld [smem:[#allocation37_spill]] }
  0xc4   : > { %s5041_s22 = sld [smem:[#allocation36_spill]]  ;;  %s5043_s26 = sld [smem:[#allocation38_spill]] }
  0xc5   : > { %s4577_s15 = scalar_lea.vmem %s5028_s12, %s3540_s11  ;;  %s4582_s25 = scalar_lea.vmem %s4323_s27, %s3540_s11 }
  0xc6   : > { %5044 = sst [smem:[#allocation61_spill]] %s4577_s15  ;;  %s4587_s14 = scalar_lea.vmem %s5030_s13, %s3540_s11 }
  0xc7   : > { %s1342_s19 = scalar_lea.vmem %s5031_s23, %s4553_s18  ;;  %s1345_s10 = scalar_lea.vmem %s5032_s16, %s4553_s18 }
  0xc8   : > { %s1348_s29 = scalar_lea.vmem %s5034_s2, %s4553_s18  ;;  %s4596_s7 = scalar_lea.vmem %s5036_s3, %s3540_s11 }
  0xc9   : > { %s1356_s24 = scalar_lea.vmem %s5037_s17, %s4553_s18  ;;  %s3546_s5 = sshll.u32 %s4553_s18, 5 }
  0xca   : > { %s4602_s30 = scalar_lea.vmem %s5039_s1, %s3546_s5  ;;  %s1364_s6 = scalar_lea.vmem %s5041_s22, %s4553_s18 }
  0xcb   : > { %s1367_s9 = scalar_lea.vmem %s5042_s28, %s4553_s18  ;;  %s1370_s12 = scalar_lea.vmem %s5043_s26, %s4553_s18 }
  0xcc   : > { %s1288_s15 = scalar_lea.vmem [#allocation9], %s4548_s0  ;;  %s5045_s20 = sld [smem:[#allocation47_spill]] }
  0xd2   : > { %p3472_p9 = scmp.ne.s32.totalorder %s5045_s20, 0 }
  0xd3   : > { %s5046_s21 = sld [smem:[#allocation16_spill]] (!%p3472_p9)  ;;  %s5047_s8 = sld [smem:[#allocation57_spill]] (!%p3472_p9)  ;;  %vm1393_vm0 = vcmask (!%p3472_p9), 1041408   ;;  %v4214_v1 = vmov (!%p3472_p9), 0.0   ;;  %vm4215_vm1 = vmmov (!%p3472_p9), 0   ;;  %vm1389_vm2 = vcmask (!%p3472_p9), 31744  }
  0xd4   : > { %1375 = sbr.rel (%p3472_p9) target bundleno = 754 (0x2f2), region = 164  ;;  %s5048_s13 = sld [smem:[#allocation17_spill]] (!%p3472_p9)  ;;  %3607 = vmatprep.subr.bf16.mxu0 (!%p3472_p9), %v4214_v1  ;;  %3609 = vmatprep.mubr.msk.bf16.mxu0 (!%p3472_p9), %vm4215_vm1, %v4214_v1  ;;  %vm1439_vm3 = vcmask (!%p3472_p9), 257024  }
  0xd5   : > { %s5049_s23 = sld [smem:[#allocation18_spill]] (!%p3472_p9)  ;;  %s5050_s5 = sld [smem:[#allocation19_spill]] (!%p3472_p9) }
  0xd6   : > { %s5051_s17 = sld [smem:[#allocation20_spill]] (!%p3472_p9) }
  0xd9   : > { %v1377_v0 = vld [vmem:[%s5046_s21] sm:$0x3] (!%p3472_p9) }
  0xda   : > { %v1395_v2 = vsel (!%p3472_p9), %vm1393_vm0, %v1377_v0, 0  ;;  %v1376_v3 = vld [vmem:[%s5047_s8] sm:$0xf] (!%p3472_p9) }
  0xdb   : > { %3608 = vmatpush3.bf16.msra.mxu0 %v1395_v2  ;;  %v1382_v4 = vpack.c.bf16 %v1376_v3, %v1376_v3  ;;  %v3473_v5 = vld [vmem:[%s5048_s13] ss:$0 sm:$0xff] }
  0xdc   : > { %v1379_v10 = vld [vmem:[%s5049_s23] sm:$0xf] }
  0xdd   : > { %v3475_v24 = vld [vmem:[%s5050_s5] ss:$0 sm:$0xff] }
  0xde   : > { %3610 = vmatmul.mubr.msk.bf16.vlgmr.msra.gmra.mrb[0].mxu0 %vm1389_vm2, %v1382_v4  ;;  %v3476_v26 = vld [vmem:[%s5051_s17] ss:$0 sm:$0xff] }
 0x1b1   : > { %v1431_v6 = vpop.f32.mrb[0].mxu0 }
 0x1b2   : > { %v1432_v7 = vadd.f32 %v3473_v5, %v1431_v6  ;;  %v3611_v8 = vpop.f32.mrb[1].mxu0 }
 0x1b3   : > { %v1434_v9 = vpop.f32.mrb[2].mxu0 }
 0x1b4   : > { %v1437_v11 = vmul.f32 5.656854, %v1432_v7  ;;  %v3612_v12 = vpop.f32.mrb[3].mxu0 }
 0x1b6   : > { %v1438_v13 = vadd.f32 %v1437_v11, %v1379_v10 }
 0x1b8   : > { %v1440_v14 = vsel %vm1439_vm3, %v1438_v13, 0.0 }
 0x1b9   : > { %1441 = vadd.xlane.f32.xlu0 %v1440_v14 }
 0x246   : > { %v1442_v15 = vpop.xlane.xlu0 %1441 }
 0x247   : > { %v1444_v16 = vmul.f32 0.03125, %v1442_v15 }
 0x249   : > { %v1445_v17 = vsub.f32 %v1438_v13, %v1444_v16 }
 0x24b   : > { %v1446_v18 = vmul.f32 %v1445_v17, %v1445_v17 }
 0x24d   : > { %v1447_v19 = vsel %vm1439_vm3, %v1446_v18, 0.0 }
 0x24e   : > { %1448 = vadd.xlane.f32.xlu0 %v1447_v19 }
 0x2db   : > { %v1449_v20 = vpop.xlane.xlu0 %1448 }
 0x2dc   : > { %v1450_v21 = vmul.f32 0.03125, %v1449_v20 }
 0x2de   : > { %v1451_v22 = vadd.f32 1e-05, %v1450_v21 }
 0x2e0   : > { %3931 = vrsqrt.f32 %v1451_v22 }
 0x2ea   : > { %v3932_v23 = vpop.eup %3931 }
 0x2eb   : > { %v1453_v25 = vmul.f32 %v3932_v23, %v1445_v17 }
 0x2ed   : > { %v1460_v27 = vmul.f32 %v3475_v24, %v1453_v25 }
 0x2ef   : > { %v1467_v28 = vadd.f32 %v3476_v26, %v1460_v27 }
 0x2f1   : > { %1468 = vst.msk [vmem:[#allocation2] sm:$0xf] %vm1439_vm3, %v1467_v28 }
 0x2f2 PF: > { %s5052_s13 = sld [smem:[#allocation59_spill]]  ;;  %v4216_v30 = vmov 0.0   ;;  %s5053_s8 = sld [smem:[#allocation22_spill]]  ;;  %vm4217_vm4 = vmmov 0   ;;  %vm1495_vm5 = vcmask 261120   ;;  %vm1544_vm6 = vcmask 64512  }
 0x2f3   : > { %3613 = vmatprep.subr.bf16.mxu1 %v4216_v30  ;;  %3627 = vmatprep.subr.bf16.mxu0 %v4216_v30  ;;  %s4218_s1 = smov 120   ;;  %s4219_s11 = smov 96   ;;  %vm1593_vm7 = vcmask 27648   ;;  %vm1612_vm8 = vcmask 1041408   ;;  %vm1608_vm9 = vcmask 31744   ;;  %vm2005_vm10 = vcmask 130048  }
 0x2f4   : > { %3617 = vmatprep.mubr.msk.bf16.mxu1 %vm4217_vm4, %v4216_v30  ;;  %3629 = vmatprep.mubr.msk.bf16.mxu0 %vm4217_vm4, %v4216_v30  ;;  %s4220_s16 = smov 80   ;;  %s4221_s21 = smov 88   ;;  %vm2007_vm11 = vcmask 195584   ;;  %vm2079_vm12 = vcmask 257024   ;;  %vm2291_vm13 = vcmask 60416   ;;  %vm2310_vm14 = vcmask 1043456  }
 0x2f5   : > { %s4222_s2 = smov 72   ;;  %s4223_s3 = smov 112   ;;  %vm2908_vm15 = vcmask 523264  }
 0x2f6   : > { %s4224_s22 = smov 104   ;;  %s5055_s28 = sld [smem:[#allocation15_spill]] }
 0x2f7   : > { %s4225_s26 = smov 56   ;;  %s4226_s23 = smov 64  }
 0x2f8   : > { %v3933_v29 = vld [vmem:[%s5052_s13] sm:$0xff]   ;;  %v3934_v31 = vld [vmem:[%s5052_s13 + $0x8] sm:$0xff]   ;;  %s5054_s20 = scalar_lea.vmem %s5053_s8, %s4553_s18  ;;  %s4227_s5 = smov 40  }
 0x2f9   : > { %3614 = vmatpush3.bf16.msra.mxu1 %v3933_v29  ;;  %v4627_v32 = vld [vmem:[#allocation2] sm:$0xf]  ;;  %s4228_s17 = smov 48   ;;  %s5056_s13 = sld [smem:[#allocation60_spill]] }
 0x2fa   : > { %3615 = vmatprep.subr.bf16.mxu1 %v4216_v30  ;;  %v1476_v33 = vpack.c.bf16 %v4627_v32, %v4627_v32  ;;  %v3477_v34 = vld [vmem:[%s5054_s20] ss:$0 sm:$0xff]  ;;  %s4229_s8 = smov 8   ;;  %s4230_s20 = smov 16  }
 0x2fc   : > { %v1539_v53 = vld [vmem:[%s5055_s28] sm:$0xf]  ;;  %s4231_s28 = smov 24  }
 0x2fd   : > { %3616 = vmatpush3.bf16.msra.mxu1 %v3934_v31 }
 0x2fe   : > { %3621 = vmatprep.subr.bf16.mxu1 %v4216_v30 }
 0x300   : > { %3618 = vmatmul.mubr.msk.bf16.vlgmr.msra.gmra.mrb[0].mxu1 %vm1495_vm5, %v1476_v33 }
 0x301   : > { %3623 = vmatprep.mubr.msk.bf16.mxu1 %vm4217_vm4, %v4216_v30 }
 0x3d3   : > { %v1533_v35 = vpop.f32.mrb[0].mxu1 }
 0x3d4   : > { %v1534_v36 = vadd.f32 %v3477_v34, %v1533_v35  ;;  %v3619_v37 = vpop.f32.mrb[1].mxu1 }
 0x3d5   : > { %v1536_v38 = vpop.f32.mrb[2].mxu1 }
 0x3d6   : > { %v4641_v39 = vpack.c.bf16 %v1534_v36, %v1534_v36  ;;  %v3620_v40 = vpop.f32.mrb[3].mxu1 }
 0x3d8   : > { %1656 = vrot.lane.b32.xlu1 %v4641_v39, %s4218_s1  ;;  %1542 = vrot.lane.b32.xlu0 %v4641_v39, %s4219_s11 }
 0x3dc   : > { %1770 = vrot.lane.b32.xlu1 %v4641_v39, %s4220_s16  ;;  %1658 = vrot.lane.b32.xlu0 %v4641_v39, %s4221_s21 }
 0x3e0   : > { %1882 = vrot.lane.b32.xlu1 %v4641_v39, %s4222_s2  ;;  %1768 = vrot.lane.b32.xlu0 %v4641_v39, %s4223_s3 }
 0x3e4   : > { %1880 = vrot.lane.b32.xlu0 %v4641_v39, %s4224_s22 }
 0x44a   : > { %v1543_v41 = vpop.permute.xlu0 %1542  ;;  %v1657_v44 = vpop.permute.xlu1 %1656 }
 0x44b   : > { %v1549_v42 = vsel %vm1544_vm6, %v1543_v41, 0 }
 0x44c   : > { %3622 = vmatpush3.bf16.xpose.msra.mxu1 %v1549_v42 }
 0x44d   : > { %3633 = vmatprep.subr.bf16.mxu1 %v4216_v30 }
 0x44e   : > { %v1659_v43 = vpop.permute.xlu0 %1658  ;;  %v1771_v46 = vpop.permute.xlu1 %1770 }
 0x44f   : > { %v1664_v45 = vsel %vm1544_vm6, %v1659_v43, 0  ;;  %v1776_v47 = vsel %vm1544_vm6, %v1771_v46, 0 }
 0x452   : > { %v1883_v48 = vpop.permute.xlu1 %1882  ;;  %v1769_v49 = vpop.permute.xlu0 %1768 }
 0x453   : > { %3624 = vmatmul.mubr.msk.bf16.vlgmr.msra.gmra.mrb[4].mxu1 %vm1544_vm6, %v4641_v39  ;;  %v1888_v50 = vsel %vm1544_vm6, %v1883_v48, 0 }
 0x454   : > { %3634 = vmatpush3.bf16.xpose.msra.mxu1 %v1664_v45  ;;  %3635 = vmatprep.mubr.msk.bf16.mxu1 %vm4217_vm4, %v4216_v30 }
 0x455   : > { %3645 = vmatprep.subr.bf16.mxu1 %v4216_v30 }
 0x456   : > { %v1881_v51 = vpop.permute.xlu0 %1880 }
 0x45b   : > { %3636 = vmatmul.mubr.msk.bf16.vlgmr.msra.gmra.mrb[8].mxu1 %vm1544_vm6, %v1657_v44 }
 0x45c   : > { %3646 = vmatpush3.bf16.xpose.msra.mxu1 %v1776_v47  ;;  %3647 = vmatprep.mubr.msk.bf16.mxu1 %vm4217_vm4, %v4216_v30 }
 0x45d   : > { %3657 = vmatprep.subr.bf16.mxu1 %v4216_v30 }
 0x463   : > { %3648 = vmatmul.mubr.msk.bf16.vlgmr.msra.gmra.mrb[12].mxu1 %vm1544_vm6, %v1769_v49 }
 0x464   : > { %3658 = vmatpush3.bf16.xpose.msra.mxu1 %v1888_v50  ;;  %3659 = vmatprep.mubr.msk.bf16.mxu1 %vm4217_vm4, %v4216_v30 }
 0x465   : > { %3669 = vmatprep.subr.bf16.mxu1 %v4216_v30 }
 0x46b   : > { %3660 = vmatmul.mubr.msk.bf16.vlgmr.msra.gmra.mrb[16].mxu1 %vm1544_vm6, %v1881_v51 }
 0x46c   : > { %3673 = vmatprep.mubr.msk.bf16.mxu1 %vm4217_vm4, %v4216_v30 }
 0x526   : > { %v1585_v52 = vpop.f32.mrb[4].mxu1 }
 0x527   : > { %v1591_v54 = vmul.f32 0.35355338, %v1585_v52  ;;  %v3625_v55 = vpop.f32.mrb[5].mxu1 }
 0x528   : > { %v1588_v56 = vpop.f32.mrb[6].mxu1 }
 0x529   : > { %v3626_v57 = vpop.f32.mrb[7].mxu1  ;;  %v1592_v58 = vadd.f32 %v1591_v54, %v1539_v53 }
 0x52b   : > { %v1594_v59 = vsel %vm1593_vm7, %v1592_v58, -inf }
 0x52c   : > { %1595 = vmax.xlane.f32.xlu1 %v1594_v59 }
 0x52e   : > { %v1700_v60 = vpop.f32.mrb[8].mxu1 }
 0x52f   : > { %v1706_v61 = vmul.f32 0.35355338, %v1700_v60  ;;  %v3637_v62 = vpop.f32.mrb[9].mxu1 }
 0x530   : > { %v1703_v63 = vpop.f32.mrb[10].mxu1 }
 0x531   : > { %v3638_v0 = vpop.f32.mrb[11].mxu1  ;;  %v1707_v1 = vadd.f32 %v1706_v61, %v1539_v53 }
 0x533   : > { %v1708_v2 = vsel %vm1593_vm7, %v1707_v1, -inf }
 0x534   : > { %1709 = vmax.xlane.f32.xlu0 %v1708_v2 }
 0x536   : > { %v1812_v3 = vpop.f32.mrb[12].mxu1 }
 0x537   : > { %v1818_v4 = vmul.f32 0.35355338, %v1812_v3  ;;  %v3649_v5 = vpop.f32.mrb[13].mxu1 }
 0x538   : > { %v1815_v6 = vpop.f32.mrb[14].mxu1 }
 0x539   : > { %v3650_v7 = vpop.f32.mrb[15].mxu1  ;;  %v1819_v8 = vadd.f32 %v1818_v4, %v1539_v53 }
 0x53a   : > { %v3935_v7 = vld [vmem:[%s5056_s13] sm:$0xff]  }
 0x53b   : > { %v1820_v9 = vsel %vm1593_vm7, %v1819_v8, -inf  ;;  %3670 = vmatpush3.bf16.msra.mxu1 %v3935_v7 }
 0x53c   : > { %1821 = vmax.xlane.f32.xlu0 %v1820_v9  ;;  %3671 = vmatprep.subr.bf16.mxu1 %v4216_v30 }
 0x53e   : > { %v1924_v10 = vpop.f32.mrb[16].mxu1 }
 0x53f   : > { %v1930_v11 = vmul.f32 0.35355338, %v1924_v10  ;;  %v3661_v12 = vpop.f32.mrb[17].mxu1 }
 0x540   : > { %v1927_v13 = vpop.f32.mrb[18].mxu1 }
 0x541   : > { %v3662_v14 = vpop.f32.mrb[19].mxu1  ;;  %v1931_v15 = vadd.f32 %v1930_v11, %v1539_v53 }
 0x543   : > { %v1932_v16 = vsel %vm1593_vm7, %v1931_v15, -inf }
 0x544   : > { %1933 = vmax.xlane.f32.xlu1 %v1932_v16 }
 0x5b9   : > { %v1596_v17 = vpop.xlane.xlu1 %1595 }
 0x5ba   : > { %v1597_v18 = vsub.f32 %v1592_v58, %v1596_v17 }
 0x5bc   : > { %v1598_v19 = vmul.f32 1.442695, %v1597_v18 }
 0x5be   : > { %3949 = vpow2.f32 %v1598_v19 }
 0x5c1   : > { %v1710_v20 = vpop.xlane.xlu0 %1709 }
 0x5c2   : > { %v1711_v21 = vsub.f32 %v1707_v1, %v1710_v20 }
 0x5c4   : > { %v1712_v22 = vmul.f32 1.442695, %v1711_v21 }
 0x5c6   : > { %3951 = vpow2.f32 %v1712_v22 }
 0x5c8   : > { %v3950_v23 = vpop.eup %3949 }
 0x5c9   : > { %v1822_v24 = vpop.xlane.xlu0 %1821  ;;  %v1600_v25 = vsel %vm1593_vm7, %v3950_v23, 0.0 }
 0x5ca   : > { %v1823_v26 = vsub.f32 %v1819_v8, %v1822_v24  ;;  %1601 = vadd.xlane.f32.xlu0 %v1600_v25  ;;  %v3936_v8 = vld [vmem:[%s5056_s13 + $0x8] sm:$0xff]   ;;  %s5061_s13 = sld [smem:[#allocation25_spill]] }
 0x5cb   : > { %3672 = vmatpush3.bf16.msra.mxu1 %v3936_v8 }
 0x5cc   : > { %v1824_v27 = vmul.f32 1.442695, %v1823_v26  ;;  %3685 = vmatprep.subr.bf16.mxu1 %v4216_v30 }
 0x5ce   : > { %3953 = vpow2.f32 %v1824_v27 }
 0x5d0   : > { %v3952_v28 = vpop.eup %3951 }
 0x5d1   : > { %v1714_v29 = vsel %vm1593_vm7, %v3952_v28, 0.0  ;;  %v1934_v34 = vpop.xlane.xlu1 %1933 }
 0x5d2   : > { %1715 = vadd.xlane.f32.xlu1 %v1714_v29  ;;  %v1935_v35 = vsub.f32 %v1931_v15, %v1934_v34 }
 0x5d4   : > { %v1936_v36 = vmul.f32 1.442695, %v1935_v35 }
 0x5d6   : > { %3955 = vpow2.f32 %v1936_v36 }
 0x5d8   : > { %v3954_v31 = vpop.eup %3953 }
 0x5d9   : > { %v1826_v33 = vsel %vm1593_vm7, %v3954_v31, 0.0 }
 0x5da   : > { %1827 = vadd.xlane.f32.xlu0 %v1826_v33 }
 0x5e0   : > { %v3956_v37 = vpop.eup %3955 }
 0x5e1   : > { %v1938_v38 = vsel %vm1593_vm7, %v3956_v37, 0.0 }
 0x5e3   : > { %1720 = vrot.lane.b32.xlu1 %v4641_v39, %s4225_s26  ;;  %s5057_s26 = sld [smem:[#allocation24_spill]] }
 0x5f0   : > { %1606 = vrot.lane.b32.xlu0 %v4641_v39, %s4226_s23  ;;  %s5058_s23 = scalar_lea.vmem %s5057_s26, %s4553_s18  ;;  %s5062_s26 = sld [smem:[#allocation26_spill]] }
 0x5f1   : > { %v3489_v24 = vld [vmem:[%s5058_s23] ss:$0 sm:$0xff] }
 0x5f4   : > { %1944 = vrot.lane.b32.xlu0 %v4641_v39, %s4227_s5  ;;  %s5059_s5 = sld [smem:[#allocation58_spill]] }
 0x5f6   : > { %s5064_s23 = scalar_lea.vmem %s5062_s26, %s4553_s18 }
 0x607   : > { %1939 = vadd.xlane.f32.xlu1 %v1938_v38 }
 0x618   : > { %1832 = vrot.lane.b32.xlu1 %v4641_v39, %s4228_s17  ;;  %s5060_s17 = sld [smem:[#allocation61_spill]] }
 0x657   : > { %v1602_v40 = vpop.xlane.xlu0 %1601 }
 0x658   : > { %3957 = vrcp.f32 %v1602_v40  ;;  %v3937_v40 = vld [vmem:[%s4582_s25] sm:$0xff]  }
 0x65f   : > { %v1716_v41 = vpop.xlane.xlu1 %1715 }
 0x660   : > { %3959 = vrcp.f32 %v1716_v41  ;;  %v3938_v41 = vld [vmem:[%s4582_s25 + $0x8] sm:$0xff]   ;;  %s5063_s25 = scalar_lea.vmem %s5061_s13, %s4553_s18 }
 0x662   : > { %v3958_v42 = vpop.eup %3957 }
 0x663   : > { %v1604_v44 = vmul.f32 %v3958_v42, %v3950_v23  ;;  %v1721_v47 = vpop.permute.xlu1 %1720  ;;  %v1470_v42 = vld [vmem:[%s5059_s5] sm:$0xff]  ;;  %s5065_s5 = sld [smem:[#allocation28_spill]] }
 0x664   : > { %v1726_v39 = vsel %vm1612_vm8, %v1721_v47, 0 }
 0x665   : > { %v1605_v48 = vpack.c.bf16 %v1604_v44, %v1604_v44  ;;  %v3940_v44 = vld [vmem:[%s5060_s17 + $0x8] sm:$0xff]  }
 0x667   : > { %v1828_v43 = vpop.xlane.xlu0 %1827 }
 0x668   : > { %3961 = vrcp.f32 %v1828_v43  ;;  %v3939_v43 = vld [vmem:[%s5060_s17] sm:$0xff]   ;;  %s5066_s17 = scalar_lea.vmem %s4328_s4, %s4553_s18 }
 0x669   : > { %s5067_s13 = scalar_lea.vmem %s5065_s5, %s4553_s18 }
 0x66a   : > { %v3960_v49 = vpop.eup %3959 }
 0x66b   : > { %v1607_v45 = vpop.permute.xlu0 %1606  ;;  %v1718_v50 = vmul.f32 %v3960_v49, %v3952_v28  ;;  %v3493_v49 = vld [vmem:[%s5063_s25] ss:$0 sm:$0xff] }
 0x66c   : > { %v1614_v46 = vsel %vm1612_vm8, %v1607_v45, 0 }
 0x66d   : > { %3628 = vmatpush3.bf16.msra.mxu0 %v1614_v46  ;;  %v1719_v51 = vpack.c.bf16 %v1718_v50, %v1718_v50  ;;  %v3494_v50 = vld [vmem:[%s5064_s23] ss:$0 sm:$0xff] }
 0x66e   : > { %3639 = vmatprep.subr.bf16.mxu0 %v4216_v30 }
 0x66f   : > { %v1945_v57 = vpop.permute.xlu0 %1944 }
 0x670   : > { %3630 = vmatmul.mubr.msk.bf16.vlgmr.msra.gmra.mrb[0].mxu0 %vm1608_vm9, %v1605_v48  ;;  %v1950_v59 = vsel %vm1612_vm8, %v1945_v57, 0 }
 0x671   : > { %3640 = vmatpush3.bf16.msra.mxu0 %v1726_v39  ;;  %3641 = vmatprep.mubr.msk.bf16.mxu0 %vm4217_vm4, %v4216_v30 }
 0x672   : > { %3651 = vmatprep.subr.bf16.mxu0 %v4216_v30  ;;  %v3962_v52 = vpop.eup %3961 }
 0x673   : > { %v1830_v54 = vmul.f32 %v3962_v52, %v3954_v31 }
 0x675   : > { %v1831_v58 = vpack.c.bf16 %v1830_v54, %v1830_v54  ;;  %v3499_v54 = vld [vmem:[%s5066_s17] ss:$0 sm:$0xff] }
 0x678   : > { %3642 = vmatmul.mubr.msk.bf16.vlgmr.msra.gmra.mrb[4].mxu0 %vm1608_vm9, %v1719_v51 }
 0x679   : > { %3653 = vmatprep.mubr.msk.bf16.mxu0 %vm4217_vm4, %v4216_v30 }
 0x694   : > { %v1940_v53 = vpop.xlane.xlu1 %1939 }
 0x695   : > { %3963 = vrcp.f32 %v1940_v53 }
 0x698   : > { %v1833_v55 = vpop.permute.xlu1 %1832 }
 0x699   : > { %v1838_v56 = vsel %vm1612_vm8, %v1833_v55, 0 }
 0x69a   : > { %3652 = vmatpush3.bf16.msra.mxu0 %v1838_v56 }
 0x69b   : > { %3663 = vmatprep.subr.bf16.mxu0 %v4216_v30 }
 0x69d   : > { %3654 = vmatmul.mubr.msk.bf16.vlgmr.msra.gmra.mrb[8].mxu0 %vm1608_vm9, %v1831_v58 }
 0x69e   : > { %3664 = vmatpush3.bf16.msra.mxu0 %v1950_v59  ;;  %3665 = vmatprep.mubr.msk.bf16.mxu0 %vm4217_vm4, %v4216_v30 }
 0x69f   : > { %v3964_v60 = vpop.eup %3963  ;;  %3677 = vmatprep.subr.bf16.mxu0 %v4216_v30 }
 0x6a0   : > { %v1942_v61 = vmul.f32 %v3964_v60, %v3956_v37 }
 0x6a2   : > { %v1943_v62 = vpack.c.bf16 %v1942_v61, %v1942_v61 }
 0x6a5   : > { %3666 = vmatmul.mubr.msk.bf16.vlgmr.msra.gmra.mrb[12].mxu0 %vm1608_vm9, %v1943_v62  ;;  %v3495_v62 = vld [vmem:[%s5067_s13] ss:$0 sm:$0xff] }
 0x6a6   : > { %3681 = vmatprep.mubr.msk.bf16.mxu0 %vm4217_vm4, %v4216_v30  ;;  %3678 = vmatpush3.bf16.msra.mxu0 %v3939_v43 }
 0x6a7   : > { %3679 = vmatprep.subr.bf16.mxu0 %v4216_v30 }
 0x6aa   : > { %3680 = vmatpush3.bf16.msra.mxu0 %v3940_v44 }
 0x6ab   : > { %3693 = vmatprep.subr.bf16.mxu0 %v4216_v30 }
 0x743   : > { %v1650_v63 = vpop.f32.mrb[0].mxu0 }
 0x744   : > { %v3631_v0 = vpop.f32.mrb[1].mxu0 }
 0x745   : > { %v1653_v1 = vpop.f32.mrb[2].mxu0 }
 0x746   : > { %v3632_v2 = vpop.f32.mrb[3].mxu0 }
 0x74b   : > { %v1762_v3 = vpop.f32.mrb[4].mxu0 }
 0x74c   : > { %1993 = vrot.lane.b32.xlu1 %v1762_v3, %s4229_s8  ;;  %v3643_v4 = vpop.f32.mrb[5].mxu0 }
 0x74d   : > { %v1765_v5 = vpop.f32.mrb[6].mxu0 }
 0x74e   : > { %v3644_v6 = vpop.f32.mrb[7].mxu0 }
 0x770   : > { %v1874_v9 = vpop.f32.mrb[8].mxu0 }
 0x771   : > { %1997 = vrot.lane.b32.xlu0 %v1874_v9, %s4230_s20  ;;  %v3655_v10 = vpop.f32.mrb[9].mxu0 }
 0x772   : > { %v1877_v11 = vpop.f32.mrb[10].mxu0 }
 0x773   : > { %v3656_v12 = vpop.f32.mrb[11].mxu0 }
 0x778   : > { %v1986_v13 = vpop.f32.mrb[12].mxu0 }
 0x779   : > { %2001 = vrot.lane.b32.xlu1 %v1986_v13, %s4231_s28  ;;  %v3667_v14 = vpop.f32.mrb[13].mxu0 }
 0x77a   : > { %v1989_v15 = vpop.f32.mrb[14].mxu0 }
 0x77b   : > { %v3668_v16 = vpop.f32.mrb[15].mxu0 }
 0x7be   : > { %v1994_v17 = vpop.permute.xlu1 %1993 }
 0x7bf   : > { %v2004_v19 = vsel %vm1544_vm6, %v1650_v63, %v1994_v17 }
 0x7e3   : > { %v1998_v18 = vpop.permute.xlu0 %1997 }
 0x7e4   : > { %v2006_v20 = vsel %vm2005_vm10, %v2004_v19, %v1998_v18 }
 0x7eb   : > { %v2002_v21 = vpop.permute.xlu1 %2001 }
 0x7ec   : > { %v2008_v22 = vsel %vm2007_vm11, %v2006_v20, %v2002_v21 }
 0x7ed   : > { %v2014_v23 = vpack.c.bf16 %v2008_v22, %v2008_v22 }
 0x7ef   : > { %3674 = vmatmul.mubr.msk.bf16.vlgmr.msra.gmra.mrb[20].mxu1 %vm1495_vm5, %v2014_v23 }
 0x7f0   : > { %3689 = vmatprep.mubr.msk.bf16.mxu1 %vm4217_vm4, %v4216_v30  ;;  %3686 = vmatpush3.bf16.msra.mxu1 %v3937_v40 }
 0x7f1   : > { %3687 = vmatprep.subr.bf16.mxu1 %v4216_v30 }
 0x7f4   : > { %3688 = vmatpush3.bf16.msra.mxu1 %v3938_v41 }
 0x7f5   : > { %3699 = vmatprep.subr.bf16.mxu1 %v4216_v30 }
 0x8c2   : > { %v2070_v25 = vpop.f32.mrb[20].mxu1 }
 0x8c3   : > { %v2071_v26 = vadd.f32 %v3489_v24, %v2070_v25  ;;  %v3675_v27 = vpop.f32.mrb[21].mxu1 }
 0x8c4   : > { %v2073_v28 = vpop.f32.mrb[22].mxu1 }
 0x8c5   : > { %v3676_v29 = vpop.f32.mrb[23].mxu1  ;;  %v2076_v31 = vadd.f32 %v2071_v26, %v4627_v32  ;;  %v2180_v32 = vpack.c.bf16 %v1470_v42, %v1470_v42 }
 0x8c7   : > { %v2080_v33 = vsel %vm2079_vm12, %v2076_v31, 0.0  ;;  %3690 = vmatmul.mubr.msk.bf16.vlgmr.msra.gmra.mrb[24].mxu1 %vm1495_vm5, %v2180_v32 }
 0x8c8   : > { %2081 = vadd.xlane.f32.xlu0 %v2080_v33  ;;  %3701 = vmatprep.mubr.msk.bf16.mxu1 %vm4217_vm4, %v4216_v30 }
 0x955   : > { %v2082_v34 = vpop.xlane.xlu0 %2081 }
 0x956   : > { %v2084_v35 = vmul.f32 0.03125, %v2082_v34 }
 0x958   : > { %v2085_v36 = vsub.f32 %v2076_v31, %v2084_v35 }
 0x95a   : > { %v2086_v37 = vmul.f32 %v2085_v36, %v2085_v36 }
 0x95c   : > { %v2087_v38 = vsel %vm2079_vm12, %v2086_v37, 0.0 }
 0x95d   : > { %2088 = vadd.xlane.f32.xlu1 %v2087_v38 }
 0x99a   : > { %v2236_v55 = vpop.f32.mrb[24].mxu1 }
 0x99b   : > { %v2237_v56 = vadd.f32 %v3499_v54, %v2236_v55  ;;  %v3691_v57 = vpop.f32.mrb[25].mxu1 }
 0x99c   : > { %v2239_v58 = vpop.f32.mrb[26].mxu1 }
 0x99d   : > { %v4758_v59 = vpack.c.bf16 %v2237_v56, %v2237_v56  ;;  %v3692_v60 = vpop.f32.mrb[27].mxu1 }
 0x99f   : > { %2357 = vrot.lane.b32.xlu0 %v4758_v59, %s4218_s1  ;;  %v2248_v61 = vsel %vm1544_vm6, %v4758_v59, 0 }
 0x9a3   : > { %2468 = vrot.lane.b32.xlu0 %v4758_v59, %s4223_s3 }
 0x9a7   : > { %2579 = vrot.lane.b32.xlu0 %v4758_v59, %s4224_s22 }
 0x9ea   : > { %v2089_v45 = vpop.xlane.xlu1 %2088 }
 0x9eb   : > { %v2090_v46 = vmul.f32 0.03125, %v2089_v45 }
 0x9ed   : > { %v2091_v47 = vadd.f32 1e-05, %v2090_v46 }
 0x9ef   : > { %3965 = vrsqrt.f32 %v2091_v47 }
 0x9f9   : > { %v3966_v48 = vpop.eup %3965 }
 0x9fa   : > { %v2093_v39 = vmul.f32 %v3966_v48, %v2085_v36 }
 0x9fc   : > { %v2100_v51 = vmul.f32 %v3493_v49, %v2093_v39 }
 0x9fe   : > { %v4748_v52 = vadd.f32 %v3494_v50, %v2100_v51 }
 0xa00   : > { %v2113_v53 = vpack.c.bf16 %v4748_v52, %v4748_v52 }
 0xa02   : > { %3682 = vmatmul.mubr.msk.bf16.vlgmr.msra.gmra.mrb[16].mxu0 %vm1495_vm5, %v2113_v53 }
 0xa03   : > { %3695 = vmatprep.mubr.msk.bf16.mxu0 %vm4217_vm4, %v4216_v30  ;;  %3694 = vmatpush3.bf16.xpose.msra.mxu0 %v2248_v61 }
 0xa04   : > { %3705 = vmatprep.subr.bf16.mxu0 %v4216_v30 }
 0xa11   : > { %v2358_v3 = vpop.permute.xlu0 %2357 }
 0xa12   : > { %v2363_v6 = vsel %vm1544_vm6, %v2358_v3, 0 }
 0xa15   : > { %v2469_v7 = vpop.permute.xlu0 %2468 }
 0xa16   : > { %v2474_v9 = vsel %vm1544_vm6, %v2469_v7, 0 }
 0xa19   : > { %v2580_v10 = vpop.permute.xlu0 %2579 }
 0xa1a   : > { %v2585_v12 = vsel %vm1544_vm6, %v2580_v10, 0 }
 0xad5   : > { %v2169_v63 = vpop.f32.mrb[16].mxu0 }
 0xad6   : > { %v2170_v0 = vadd.f32 %v3495_v62, %v2169_v63  ;;  %v3683_v1 = vpop.f32.mrb[17].mxu0 }
 0xad7   : > { %v2172_v2 = vpop.f32.mrb[18].mxu0 }
 0xad8   : > { %v2242_v4 = vpack.c.bf16 %v2170_v0, %v2170_v0  ;;  %v3684_v5 = vpop.f32.mrb[19].mxu0 }
 0xada   : > { %2355 = vrot.lane.b32.xlu1 %v2242_v4, %s4218_s1  ;;  %3696 = vmatmul.mubr.msk.bf16.vlgmr.msra.gmra.mrb[20].mxu0 %vm1544_vm6, %v2242_v4 }
 0xadb   : > { %3706 = vmatpush3.bf16.xpose.msra.mxu0 %v2363_v6  ;;  %3707 = vmatprep.mubr.msk.bf16.mxu0 %vm4217_vm4, %v4216_v30 }
 0xadc   : > { %3717 = vmatprep.subr.bf16.mxu0 %v4216_v30 }
 0xade   : > { %2466 = vrot.lane.b32.xlu1 %v2242_v4, %s4223_s3 }
 0xae2   : > { %2577 = vrot.lane.b32.xlu1 %v2242_v4, %s4224_s22 }
 0xb4c   : > { %v2356_v8 = vpop.permute.xlu1 %2355 }
 0xb4d   : > { %3708 = vmatmul.mubr.msk.bf16.vlgmr.msra.gmra.mrb[24].mxu0 %vm1544_vm6, %v2356_v8 }
 0xb4e   : > { %3718 = vmatpush3.bf16.xpose.msra.mxu0 %v2474_v9  ;;  %3719 = vmatprep.mubr.msk.bf16.mxu0 %vm4217_vm4, %v4216_v30 }
 0xb4f   : > { %3729 = vmatprep.subr.bf16.mxu0 %v4216_v30 }
 0xb50   : > { %v2467_v11 = vpop.permute.xlu1 %2466 }
 0xb54   : > { %v2578_v13 = vpop.permute.xlu1 %2577 }
 0xb55   : > { %3720 = vmatmul.mubr.msk.bf16.vlgmr.msra.gmra.mrb[28].mxu0 %vm1544_vm6, %v2467_v11 }
 0xb56   : > { %3730 = vmatpush3.bf16.xpose.msra.mxu0 %v2585_v12  ;;  %3731 = vmatprep.mubr.msk.bf16.mxu0 %vm4217_vm4, %v4216_v30 }
 0xb57   : > { %3741 = vmatprep.subr.bf16.mxu0 %v4216_v30 }
 0xb5d   : > { %3732 = vmatmul.mubr.msk.bf16.vlgmr.msra.gmra.mrb[32].mxu0 %vm1544_vm6, %v2578_v13 }
 0xb5e   : > { %3745 = vmatprep.mubr.msk.bf16.mxu0 %vm4217_vm4, %v4216_v30 }
 0xbad   : > { %v2284_v14 = vpop.f32.mrb[20].mxu0 }
 0xbae   : > { %v2290_v15 = vmul.f32 0.35355338, %v2284_v14  ;;  %v3697_v16 = vpop.f32.mrb[21].mxu0 }
 0xbaf   : > { %v2287_v17 = vpop.f32.mrb[22].mxu0 }
 0xbb0   : > { %v3698_v18 = vpop.f32.mrb[23].mxu0  ;;  %v2292_v19 = vsel %vm2291_vm13, %v2290_v15, -inf }
 0xbb1   : > { %2293 = vmax.xlane.f32.xlu0 %v2292_v19 }
 0xc20   : > { %v2399_v20 = vpop.f32.mrb[24].mxu0 }
 0xc21   : > { %v2405_v21 = vmul.f32 0.35355338, %v2399_v20  ;;  %v3709_v22 = vpop.f32.mrb[25].mxu0 }
 0xc22   : > { %v2402_v23 = vpop.f32.mrb[26].mxu0 }
 0xc23   : > { %v3710_v24 = vpop.f32.mrb[27].mxu0  ;;  %v2406_v25 = vsel %vm2291_vm13, %v2405_v21, -inf }
 0xc24   : > { %2407 = vmax.xlane.f32.xlu1 %v2406_v25  ;;  %v3941_v24 = vld [vmem:[%s4587_s14] sm:$0xff]  }
 0xc25   : > { %3742 = vmatpush3.bf16.msra.mxu0 %v3941_v24 }
 0xc26   : > { %3743 = vmatprep.subr.bf16.mxu0 %v4216_v30 }
 0xc28   : > { %v2510_v26 = vpop.f32.mrb[28].mxu0 }
 0xc29   : > { %v2516_v27 = vmul.f32 0.35355338, %v2510_v26  ;;  %v3721_v28 = vpop.f32.mrb[29].mxu0 }
 0xc2a   : > { %v2513_v29 = vpop.f32.mrb[30].mxu0 }
 0xc2b   : > { %v3722_v31 = vpop.f32.mrb[31].mxu0  ;;  %v2517_v33 = vsel %vm2291_vm13, %v2516_v27, -inf  ;;  %v3942_v29 = vld [vmem:[%s4587_s14 + $0x8] sm:$0xff]  }
 0xc2c   : > { %2518 = vmax.xlane.f32.xlu0 %v2517_v33  ;;  %3744 = vmatpush3.bf16.msra.mxu0 %v3942_v29 }
 0xc2d   : > { %3757 = vmatprep.subr.bf16.mxu0 %v4216_v30 }
 0xc30   : > { %v2621_v34 = vpop.f32.mrb[32].mxu0 }
 0xc31   : > { %v2627_v35 = vmul.f32 0.35355338, %v2621_v34  ;;  %v3733_v36 = vpop.f32.mrb[33].mxu0 }
 0xc32   : > { %v2624_v37 = vpop.f32.mrb[34].mxu0 }
 0xc33   : > { %v3734_v38 = vpop.f32.mrb[35].mxu0  ;;  %v2628_v40 = vsel %vm2291_vm13, %v2627_v35, -inf }
 0xc34   : > { %2629 = vmax.xlane.f32.xlu0 %v2628_v40 }
 0xc3e   : > { %v2294_v41 = vpop.xlane.xlu0 %2293 }
 0xc3f   : > { %v2295_v42 = vsub.f32 %v2290_v15, %v2294_v41 }
 0xc41   : > { %v2296_v32 = vmul.f32 1.442695, %v2295_v42 }
 0xc43   : > { %3967 = vpow2.f32 %v2296_v32 }
 0xc4d   : > { %v3968_v43 = vpop.eup %3967 }
 0xc4e   : > { %v2298_v44 = vsel %vm2291_vm13, %v3968_v43, 0.0 }
 0xc4f   : > { %2299 = vadd.xlane.f32.xlu1 %v2298_v44 }
 0xc60   : > { %2305 = vrot.lane.b32.xlu1 %v4758_v59, %s4219_s11 }
 0xcb1   : > { %v2408_v45 = vpop.xlane.xlu1 %2407 }
 0xcb2   : > { %v2409_v46 = vsub.f32 %v2405_v21, %v2408_v45 }
 0xcb4   : > { %v2410_v47 = vmul.f32 1.442695, %v2409_v46 }
 0xcb6   : > { %3969 = vpow2.f32 %v2410_v47  ;;  %v3511_v47 = vld [vmem:[%s1342_s19] ss:$0 sm:$0xff] }
 0xcb9   : > { %v2519_v48 = vpop.xlane.xlu0 %2518 }
 0xcba   : > { %v2520_v49 = vsub.f32 %v2516_v27, %v2519_v48 }
 0xcbc   : > { %v2521_v39 = vmul.f32 1.442695, %v2520_v49 }
 0xcbe   : > { %3971 = vpow2.f32 %v2521_v39 }
 0xcc0   : > { %v3970_v50 = vpop.eup %3969 }
 0xcc1   : > { %v2630_v51 = vpop.xlane.xlu0 %2629  ;;  %v2412_v53 = vsel %vm2291_vm13, %v3970_v50, 0.0 }
 0xcc2   : > { %v2631_v54 = vsub.f32 %v2627_v35, %v2630_v51  ;;  %2413 = vadd.xlane.f32.xlu0 %v2412_v53 }
 0xcc4   : > { %v2632_v55 = vmul.f32 1.442695, %v2631_v54 }
 0xcc6   : > { %3973 = vpow2.f32 %v2632_v55 }
 0xcc8   : > { %v3972_v56 = vpop.eup %3971 }
 0xcc9   : > { %v2523_v57 = vsel %vm2291_vm13, %v3972_v56, 0.0 }
 0xcca   : > { %2524 = vadd.xlane.f32.xlu1 %v2523_v57 }
 0xcd0   : > { %v3974_v58 = vpop.eup %3973 }
 0xcd1   : > { %v2634_v60 = vsel %vm2291_vm13, %v3974_v58, 0.0 }
 0xcd2   : > { %2635 = vadd.xlane.f32.xlu0 %v2634_v60 }
 0xcdb   : > { %2529 = vrot.lane.b32.xlu1 %v4758_v59, %s4220_s16 }
 0xcdc   : > { %v2300_v61 = vpop.xlane.xlu1 %2299 }
 0xcdd   : > { %3975 = vrcp.f32 %v2300_v61  ;;  %v3943_v61 = vld [vmem:[%s4596_s7] sm:$0xff]  }
 0xcdf   : > { %2640 = vrot.lane.b32.xlu1 %v4758_v59, %s4222_s2 }
 0xce0   : > { %v2306_v62 = vpop.permute.xlu1 %2305 }
 0xce1   : > { %v2312_v63 = vsel %vm2310_vm14, %v2306_v62, 0  ;;  %v3944_v62 = vld [vmem:[%s4596_s7 + $0x8] sm:$0xff]  }
 0xce2   : > { %3700 = vmatpush3.bf16.msra.mxu1 %v2312_v63  ;;  %v3946_v63 = vld [vmem:[%s4602_s30 + $0x8] sm:$0xff]  }
 0xce3   : > { %3711 = vmatprep.subr.bf16.mxu1 %v4216_v30 }
 0xce7   : > { %v3976_v0 = vpop.eup %3975 }
 0xce8   : > { %v2302_v1 = vmul.f32 %v3976_v0, %v3968_v43  ;;  %2418 = vrot.lane.b32.xlu0 %v4758_v59, %s4221_s21 }
 0xcea   : > { %v2303_v2 = vpack.c.bf16 %v2302_v1, %v2302_v1 }
 0xcec   : > { %3702 = vmatmul.mubr.msk.bf16.vlgmr.msra.gmra.mrb[28].mxu1 %vm1544_vm6, %v2303_v2 }
 0xced   : > { %3713 = vmatprep.mubr.msk.bf16.mxu1 %vm4217_vm4, %v4216_v30 }
 0xd4f   : > { %v2414_v3 = vpop.xlane.xlu0 %2413 }
 0xd50   : > { %3977 = vrcp.f32 %v2414_v3 }
 0xd57   : > { %v2525_v4 = vpop.xlane.xlu1 %2524 }
 0xd58   : > { %3979 = vrcp.f32 %v2525_v4  ;;  %v3515_v4 = vld [vmem:[%s1345_s10] ss:$0 sm:$0xff] }
 0xd5a   : > { %v3978_v5 = vpop.eup %3977 }
 0xd5b   : > { %v2416_v7 = vmul.f32 %v3978_v5, %v3970_v50  ;;  %v2530_v10 = vpop.permute.xlu1 %2529 }
 0xd5c   : > { %v2535_v12 = vsel %vm2310_vm14, %v2530_v10, 0  ;;  %v3947_v10 = vld [vmem:[%s4602_s30 + $0x10] sm:$0xff]  }
 0xd5d   : > { %v2417_v59 = vpack.c.bf16 %v2416_v7, %v2416_v7 }
 0xd5f   : > { %v2636_v6 = vpop.xlane.xlu0 %2635  ;;  %v2641_v14 = vpop.permute.xlu1 %2640 }
 0xd60   : > { %3981 = vrcp.f32 %v2636_v6  ;;  %v2646_v17 = vsel %vm2310_vm14, %v2641_v14, 0  ;;  %v3516_v6 = vld [vmem:[%s1348_s29] ss:$0 sm:$0xff] }
 0xd62   : > { %v3980_v11 = vpop.eup %3979 }
 0xd63   : > { %v2419_v8 = vpop.permute.xlu0 %2418  ;;  %v2527_v13 = vmul.f32 %v3980_v11, %v3972_v56  ;;  %v3517_v11 = vld [vmem:[%s1356_s24] ss:$0 sm:$0xff] }
 0xd64   : > { %v2424_v9 = vsel %vm2310_vm14, %v2419_v8, 0 }
 0xd65   : > { %3712 = vmatpush3.bf16.msra.mxu1 %v2424_v9  ;;  %v2528_v15 = vpack.c.bf16 %v2527_v13, %v2527_v13 }
 0xd66   : > { %3723 = vmatprep.subr.bf16.mxu1 %v4216_v30 }
 0xd68   : > { %3714 = vmatmul.mubr.msk.bf16.vlgmr.msra.gmra.mrb[32].mxu1 %vm1544_vm6, %v2417_v59  ;;  %v3948_v59 = vld [vmem:[%s4602_s30 + $0x18] sm:$0xff]  }
 0xd69   : > { %3724 = vmatpush3.bf16.msra.mxu1 %v2535_v12  ;;  %3725 = vmatprep.mubr.msk.bf16.mxu1 %vm4217_vm4, %v4216_v30 }
 0xd6a   : > { %3735 = vmatprep.subr.bf16.mxu1 %v4216_v30  ;;  %v3982_v16 = vpop.eup %3981 }
 0xd6b   : > { %v2638_v18 = vmul.f32 %v3982_v16, %v3974_v58 }
 0xd6d   : > { %v2639_v19 = vpack.c.bf16 %v2638_v18, %v2638_v18 }
 0xd70   : > { %3726 = vmatmul.mubr.msk.bf16.vlgmr.msra.gmra.mrb[36].mxu1 %vm1544_vm6, %v2528_v15 }
 0xd71   : > { %3736 = vmatpush3.bf16.msra.mxu1 %v2646_v17  ;;  %3737 = vmatprep.mubr.msk.bf16.mxu1 %vm4217_vm4, %v4216_v30 }
 0xd72   : > { %3749 = vmatprep.subr.bf16.mxu1 %v4216_v30 }
 0xd78   : > { %3738 = vmatmul.mubr.msk.bf16.vlgmr.msra.gmra.mrb[40].mxu1 %vm1544_vm6, %v2639_v19  ;;  %v3521_v19 = vld [vmem:[%s1364_s6] ss:$0 sm:$0xff] }
 0xd79   : > { %3753 = vmatprep.mubr.msk.bf16.mxu1 %vm4217_vm4, %v4216_v30  ;;  %3750 = vmatpush3.bf16.msra.mxu1 %v3943_v61 }
 0xd7a   : > { %3751 = vmatprep.subr.bf16.mxu1 %v4216_v30 }
 0xd7d   : > { %3752 = vmatpush3.bf16.msra.mxu1 %v3944_v62 }
 0xdbf   : > { %v2348_v20 = vpop.f32.mrb[28].mxu1 }
 0xdc0   : > { %v3703_v21 = vpop.f32.mrb[29].mxu1 }
 0xdc1   : > { %v2351_v22 = vpop.f32.mrb[30].mxu1 }
 0xdc2   : > { %v3704_v23 = vpop.f32.mrb[31].mxu1 }
 0xe3b   : > { %v2460_v25 = vpop.f32.mrb[32].mxu1 }
 0xe3c   : > { %2689 = vrot.lane.b32.xlu0 %v2460_v25, %s4229_s8  ;;  %v3715_v26 = vpop.f32.mrb[33].mxu1 }
 0xe3d   : > { %v2463_v27 = vpop.f32.mrb[34].mxu1 }
 0xe3e   : > { %v3716_v28 = vpop.f32.mrb[35].mxu1 }
 0xe43   : > { %v2571_v31 = vpop.f32.mrb[36].mxu1 }
 0xe44   : > { %2693 = vrot.lane.b32.xlu1 %v2571_v31, %s4230_s20  ;;  %v3727_v33 = vpop.f32.mrb[37].mxu1 }
 0xe45   : > { %v2574_v34 = vpop.f32.mrb[38].mxu1 }
 0xe46   : > { %v3728_v35 = vpop.f32.mrb[39].mxu1 }
 0xe4b   : > { %v2682_v36 = vpop.f32.mrb[40].mxu1 }
 0xe4c   : > { %2697 = vrot.lane.b32.xlu0 %v2682_v36, %s4231_s28  ;;  %v3739_v37 = vpop.f32.mrb[41].mxu1 }
 0xe4d   : > { %v2685_v38 = vpop.f32.mrb[42].mxu1  ;;  %v3527_v37 = vld [vmem:[%s1367_s9] ss:$0 sm:$0xff] }
 0xe4e   : > { %v3740_v40 = vpop.f32.mrb[43].mxu1 }
 0xe4f   : > { %v3528_v40 = vld [vmem:[%s1370_s12] ss:$0 sm:$0xff] }
 0xeae   : > { %v2690_v41 = vpop.permute.xlu0 %2689 }
 0xeaf   : > { %v2700_v32 = vsel %vm1544_vm6, %v2348_v20, %v2690_v41 }
 0xeb6   : > { %v2694_v42 = vpop.permute.xlu1 %2693 }
 0xeb7   : > { %v2701_v43 = vsel %vm2005_vm10, %v2700_v32, %v2694_v42 }
 0xebe   : > { %v2698_v44 = vpop.permute.xlu0 %2697 }
 0xebf   : > { %v2702_v45 = vsel %vm2007_vm11, %v2701_v43, %v2698_v44 }
 0xec0   : > { %v2708_v46 = vpack.c.bf16 %v2702_v45, %v2702_v45 }
 0xec2   : > { %3746 = vmatmul.mubr.msk.bf16.vlgmr.msra.gmra.mrb[36].mxu0 %vm1495_vm5, %v2708_v46 }
 0xec3   : > { %3765 = vmatprep.mubr.msk.bf16.mxu0 %vm4217_vm4, %v4216_v30 }
 0xf95   : > { %v2764_v48 = vpop.f32.mrb[36].mxu0 }
 0xf96   : > { %v2765_v49 = vadd.f32 %v3511_v47, %v2764_v48  ;;  %v3747_v39 = vpop.f32.mrb[37].mxu0 }
 0xf97   : > { %v2767_v50 = vpop.f32.mrb[38].mxu0 }
 0xf98   : > { %v3748_v51 = vpop.f32.mrb[39].mxu0  ;;  %v2770_v53 = vadd.f32 %v2765_v49, %v4748_v52  ;;  %v3945_v52 = vld [vmem:[%s4602_s30] sm:$0xff]   ;;  %s5075_s30 = sld [smem:[#allocation47_spill]] }
 0xf99   : > { %3758 = vmatpush3.bf16.msra.mxu0 %v3945_v52 }
 0xf9a   : > { %v2773_v54 = vsel %vm2079_vm12, %v2770_v53, 0.0  ;;  %3759 = vmatprep.subr.bf16.mxu0 %v4216_v30 }
 0xf9b   : > { %2774 = vadd.xlane.f32.xlu1 %v2773_v54 }
 0xf9d   : > { %3760 = vmatpush3.bf16.msra.mxu0 %v3946_v63 }
 0xf9e   : > { %3761 = vmatprep.subr.bf16.mxu0 %v4216_v30  ;;  %p3529_p10 = scmp.ne.s32.totalorder %s5075_s30, 1 }
 0xf9f   : > { %s5076_s6 = sld [smem:[#allocation41_spill]] (!%p3529_p10)  ;;  %v4232_v49 = vmov (!%p3529_p10), 0.0   ;;  %vm4233_vm0 = vmmov (!%p3529_p10), 0   ;;  %v3532_v62 = vld [vmem:[#allocation8] ss:$0 sm:$0xff] (!%p3529_p10) }
 0xfa1   : > { %3762 = vmatpush3.bf16.msra.mxu0 %v3947_v10 }
 0xfa2   : > { %3763 = vmatprep.subr.bf16.mxu0 %v4216_v30 }
 0xfa5   : > { %3764 = vmatpush3.bf16.msra.mxu0 %v3948_v59  ;;  %v3987_v48 = vld [vmem:[%s5076_s6] sm:$0xff] (!%p3529_p10)   ;;  %v3988_v39 = vld [vmem:[%s5076_s6 + $0x8] sm:$0xff] (!%p3529_p10)  }
 0xfa6   : > { %3769 = vmatprep.subr.bf16.mxu0 (!%p3529_p10), %v4232_v49 }
0x1028   : > { %v2775_v55 = vpop.xlane.xlu1 %2774 }
0x1029   : > { %v2776_v56 = vmul.f32 0.03125, %v2775_v55  ;;  %v3530_v55 = vld [vmem:[#allocation3] ss:$0 sm:$0xff] (!%p3529_p10) }
0x102b   : > { %v2777_v57 = vsub.f32 %v2770_v53, %v2776_v56 }
0x102d   : > { %v2778_v58 = vmul.f32 %v2777_v57, %v2777_v57 }
0x102f   : > { %v2779_v60 = vsel %vm2079_vm12, %v2778_v58, 0.0 }
0x1030   : > { %2780 = vadd.xlane.f32.xlu0 %v2779_v60 }
0x10bd   : > { %v2781_v0 = vpop.xlane.xlu0 %2780 }
0x10be   : > { %v2782_v1 = vmul.f32 0.03125, %v2781_v0 }
0x10c0   : > { %v2783_v2 = vadd.f32 1e-05, %v2782_v1 }
0x10c2   : > { %3983 = vrsqrt.f32 %v2783_v2 }
0x10cc   : > { %v3984_v3 = vpop.eup %3983 }
0x10cd   : > { %v2785_v5 = vmul.f32 %v3984_v3, %v2777_v57  ;;  %v3531_v57 = vld [vmem:[#allocation6] ss:$0 sm:$0xff] (!%p3529_p10) }
0x10cf   : > { %v2792_v7 = vmul.f32 %v3515_v4, %v2785_v5 }
0x10d1   : > { %v2799_v8 = vadd.f32 %v3516_v6, %v2792_v7 }
0x10d3   : > { %v2805_v9 = vpack.c.bf16 %v2799_v8, %v2799_v8 }
0x10d5   : > { %3754 = vmatmul.mubr.msk.bf16.vlgmr.msra.gmra.mrb[44].mxu1 %vm1495_vm5, %v2805_v9 }
0x11a8   : > { %v2861_v12 = vpop.f32.mrb[44].mxu1 }
0x11a9   : > { %v2862_v13 = vadd.f32 %v3517_v11, %v2861_v12  ;;  %v3755_v14 = vpop.f32.mrb[45].mxu1 }
0x11aa   : > { %v2864_v15 = vpop.f32.mrb[46].mxu1 }
0x11ab   : > { %v2867_v16 = vmax.f32 %v2862_v13, 0.0  ;;  %v3756_v17 = vpop.f32.mrb[47].mxu1 }
0x11ad   : > { %v2877_v18 = vpack.c.bf16 %v2867_v16, %v2867_v16 }
0x11af   : > { %3766 = vmatmul.mubr.msk.bf16.vlgmr.msra.gmra.mrb[40].mxu0 %vm2908_vm15, %v2877_v18 }
0x11b0   : > { %3773 = vmatprep.mubr.msk.bf16.mxu0 (!%p3529_p10), %vm4233_vm0, %v4232_v49  ;;  %3770 = vmatpush3.bf16.msra.mxu0 (!%p3529_p10), %v3987_v48 }
0x11b1   : > { %3771 = vmatprep.subr.bf16.mxu0 (!%p3529_p10), %v4232_v49 }
0x11b4   : > { %3772 = vmatpush3.bf16.msra.mxu0 (!%p3529_p10), %v3988_v39 }
0x1282   : > { %v2946_v20 = vpop.f32.mrb[40].mxu0 }
0x1283   : > { %v2947_v21 = vadd.f32 %v3521_v19, %v2946_v20  ;;  %v3767_v22 = vpop.f32.mrb[41].mxu0 }
0x1284   : > { %v2949_v23 = vpop.f32.mrb[42].mxu0 }
0x1285   : > { %v3768_v30 = vpop.f32.mrb[43].mxu0  ;;  %v2952_v24 = vadd.f32 %v2947_v21, %v2799_v8 }
0x1287   : > { %v2955_v25 = vsel %vm2079_vm12, %v2952_v24, 0.0 }
0x1288   : > { %2956 = vadd.xlane.f32.xlu0 %v2955_v25 }
0x1315   : > { %v2957_v26 = vpop.xlane.xlu0 %2956 }
0x1316   : > { %v2958_v27 = vmul.f32 0.03125, %v2957_v26 }
0x1318   : > { %v2959_v28 = vsub.f32 %v2952_v24, %v2958_v27 }
0x131a   : > { %v2960_v29 = vmul.f32 %v2959_v28, %v2959_v28 }
0x131c   : > { %v2961_v31 = vsel %vm2079_vm12, %v2960_v29, 0.0 }
0x131d   : > { %2962 = vadd.xlane.f32.xlu1 %v2961_v31 }
0x13aa   : > { %v2963_v33 = vpop.xlane.xlu1 %2962 }
0x13ab   : > { %v2964_v34 = vmul.f32 0.03125, %v2963_v33 }
0x13ad   : > { %v2965_v35 = vadd.f32 1e-05, %v2964_v34 }
0x13af   : > { %3985 = vrsqrt.f32 %v2965_v35 }
0x13b9   : > { %v3986_v36 = vpop.eup %3985 }
0x13ba   : > { %v2967_v38 = vmul.f32 %v3986_v36, %v2959_v28  ;;  %2986 = sbr.rel (%p3529_p10) target bundleno = 5586 (0x15d2), region = 168 }
0x13bc   : > { %v2974_v41 = vmul.f32 %v3527_v37, %v2967_v38 }
0x13be   : > { %v2981_v42 = vadd.f32 %v3528_v40, %v2974_v41 }
0x13c0   : > { %2982 = vst.msk [vmem:[#allocation2] sm:$0xf] %vm2079_vm12, %v2981_v42  ;;  %v2989_v32 = vsel (!%p3529_p10), %vm2079_vm12, %v2981_v42, 0.0 }
0x13c1   : > { %2990 = vadd.xlane.f32.xlu0 %v2989_v32 }
0x144e   : > { %v2991_v43 = vpop.xlane.xlu0 %2990 }
0x144f   : > { %v2992_v44 = vmul.f32 0.03125, %v2991_v43 }
0x1451   : > { %v2993_v45 = vsub.f32 %v2981_v42, %v2992_v44 }
0x1453   : > { %v2994_v46 = vmul.f32 %v2993_v45, %v2993_v45 }
0x1455   : > { %v2995_v47 = vsel %vm2079_vm12, %v2994_v46, 0.0 }
0x1456   : > { %2996 = vadd.xlane.f32.xlu0 %v2995_v47 }
0x14e3   : > { %v2997_v50 = vpop.xlane.xlu0 %2996 }
0x14e4   : > { %v2998_v51 = vmul.f32 0.03125, %v2997_v50 }
0x14e6   : > { %v2999_v53 = vadd.f32 1e-05, %v2998_v51 }
0x14e8   : > { %3989 = vrsqrt.f32 %v2999_v53 }
0x14f2   : > { %v3990_v54 = vpop.eup %3989 }
0x14f3   : > { %v3001_v56 = vmul.f32 %v3990_v54, %v2993_v45 }
0x14f5   : > { %v3008_v58 = vmul.f32 %v3530_v55, %v3001_v56 }
0x14f7   : > { %v3015_v60 = vadd.f32 %v3531_v57, %v3008_v58 }
0x14f9   : > { %v3021_v61 = vpack.c.bf16 %v3015_v60, %v3015_v60 }
0x14fb   : > { %3774 = vmatmul.mubr.msk.bf16.vlgmr.msra.gmra.mrb[0].mxu0 %vm1495_vm5, %v3021_v61 }
0x15ce   : > { %v3077_v52 = vpop.f32.mrb[0].mxu0 }
0x15cf   : > { %v3078_v63 = vadd.f32 %v3532_v62, %v3077_v52  ;;  %v3775_v0 = vpop.f32.mrb[1].mxu0 }
0x15d0   : > { %v3080_v1 = vpop.f32.mrb[2].mxu0 }
0x15d1   : > { %3083 = vst.msk [vmem:[%s1288_s15] sm:$0xf] %vm1593_vm7, %v3078_v63  ;;  %v3776_v2 = vpop.f32.mrb[3].mxu0 }
0x15d2 PF: > { %s5077_s9 = sld [smem:[#allocation48_spill]]  ;;  %s5078_s12 = sld [smem:[#allocation43_spill]] }
0x15d3   : > { %s5079_s10 = sld [smem:[#allocation45_spill]]  ;;  %s5080_s18 = sld [smem:[#allocation53_spill]] }
0x15d4   : > { %s3098_s2 = sshll.u32 %s1288_s15, 4  ;;  %s4234_s20 = smov [#allocation9]   ;;  %s3099_s2 = int_to_ptr.vmem [resolvable:$true] %s3098_s2 }
0x15d5   : > { %s4075_s8 = scalar_lea.vmem %s3099_s2, 64  ;;  %s4079_s28 = sshll.u32 %s4234_s20, 4  ;;  %s4080_s28 = int_to_ptr.vmem [resolvable:$false] %s4079_s28 }
0x15d6   : > { %p4076_p13 = scmp.ne.s32.totalorder %s3099_s2, %s4075_s8  ;;  %s4081_s26 = scalar_lea.vmem %s4080_s28, 128 }
0x15d7   : > { %p4082_p7 = scmp.lt.s32.totalorder %s3099_s2, %s4080_s28  ;;  %p4083_p8 = scmp.lt.s32.totalorder %s4081_s26, %s4075_s8 }
0x15d8   : > { %s3537_s16 = sshll.u32 %s5077_s9, 6 }
0x15d9   : > { %s4891_s21 = scalar_lea.hbm %s5078_s12, %s3537_s16  ;;  %s5081_s3 = sand.u32 1, %s5079_s10  }
0x15da   : > { %s3085_s22 = scalar_lea.sflag [#allocation5], %s5081_s3  ;;  %p5082_p4 = scmp.ne.s32.totalorder %s5080_s18, 0 }
0x15db   : > { %p4084_p11 = por %p4083_p8, %p4082_p7 }
0x15dc   : > { %p4077_p5 = pnand %p4076_p13, %p5082_p4 }
0x15de   : > { %p4078_p6 = pneg %p4077_p5 }
0x15e0   : > { %p4085_p12 = pnand %p4084_p11, %p4078_p6 }
0x15e2   : > { %4088 = shalt.err (!%p4085_p12)
}
0x15e3   : > { %s4089_s0 = scalar_lea.hbm %s4891_s21, 64  ;;  %s4093_s15 = scalar_lea.hbm %s5078_s12, 128 }
0x15e4   : > { %p4090_p1 = scmp.ne.s32.totalorder %s4891_s21, %s4089_s0  ;;  %p4094_p2 = scmp.lt.u32.totalorder %s4891_s21, %s5078_s12 }
0x15e5   : > { %p4095_p9 = scmp.lt.u32.totalorder %s4093_s15, %s4089_s0  ;;  %p4097_p13 = scmp.lt.u32.totalorder %s4089_s0, %s4891_s21 }
0x15e6   : > { %p4091_p3 = pnand %p4090_p1, %p5082_p4 }
0x15e7   : > { %p4096_p10 = por %p4095_p9, %p4094_p2 }
0x15e8   : > { %p4092_p0 = pneg %p4091_p3 }
0x15e9   : > { %p4098_p5 = por %p4097_p13, %p4096_p10 }
0x15eb   : > { %p4099_p6 = pnand %p4098_p5, %p4092_p0 }
0x15ed   : > { %4102 = shalt.err (!%p4099_p6)
}
0x15ee   : > { %3789 = dma.vmem_to_hbm [thread:$0]  (%p5082_p4), %s3099_s2, 64, %s4891_s21, %s3085_s22  }
0x15ef PF: > { %s5083_s25 = sld [smem:[#allocation51_spill]]  ;;  %s5084_s23 = sld [smem:[#allocation44_spill]] }
0x15f0   : > { %s5085_s5 = sld [smem:[#allocation55_spill]] }
0x15f5   : > { %p3811_p7 = scmp.ge.s32.totalorder %s5083_s25, 2  ;;  %s3110_s17 = sand.u32 1, %s5084_s23  }
0x15f6   : > { %p5086_p8 = scmp.ne.s32.totalorder %s5085_s5, 0  ;;  %s3111_s13 = scalar_lea.sflag [#allocation5], %s3110_s17 }
0x15f8   : > { %p3802_p11 = pnand %p3811_p7, %p5086_p8 }
0x15fa   : > { %4144 = dma.done.wait (!%p3802_p11), %s3111_s13, 64  }
0x15fb   : > { %4146 = vsyncadd (!%p3802_p11), %s3111_s13, 4294967232  ;;  %s80_s0 = sadd.s32 1, %s5083_s25   ;;  %s5087_s28 = sld [smem:[#allocation45_spill]] }
0x15fc   : > { %p77_p12 = scmp.ge.s32.totalorder %s80_s0, 6   ;;  %s5088_s1 = sld [smem:[#allocation46_spill]] }
0x15fd   : > { %s5089_s2 = sld [smem:[#allocation56_spill]]  ;;  %s5090_s7 = sld [smem:[#allocation49_spill]] }
0x15fe   : > { %s5091_s10 = sld [smem:[#allocation50_spill]]  ;;  %s5092_s11 = sld [smem:[#allocation52_spill]] }
0x15ff   : > { %s5093_s15 = sld [smem:[#allocation54_spill]]  ;;  %79 = sbr.rel (!%p77_p12) target bundleno = 75 (0x4b), region = 299 }
0x1606   :  { %3116 = vsyncpa [#allocation4], 1 }
0x1607   :  { %3118 = vsyncpa [#allocation4 + $0x1], 1 }
0x1608   :  { %3119 = vsyncpa [#allocation7], 1 }
0x1609   :  { %3120 = vsyncpa [#allocation5], 1 }
0x160a   :  { %3122 = vsyncpa [#allocation5 + $0x1], 1 }

</bundles_post_ra>
